<compile_context>
chip_gen: v6e
topology: v6e:2x2x1
jax: 0.10.0
libtpu: 0.0.40
codegen_flags: <defaults>
</compile_context>

<pallas_src>
import functools

import jax
import jax.numpy as jnp
import numpy as np
from jax.experimental import pallas as pl
from jax.experimental.pallas import tpu as pltpu


def _make_dwconv_kernel(tile_b, c, planes):
    """planes: tuple of (token_offset, h, w) for the three spatial scales."""

    def kernel(w_ref, b_ref, x_ref, o_ref, *xp_refs):
        # w_ref: (9, C) taps, b_ref: (1, C) bias
        # x_ref / o_ref: (tile_b, N, C) token block (C on the lane axis)
        # xp_refs: per-plane (tile_b, h, w+2, C) column-padded scratch
        bias = b_ref[0, :].astype(jnp.float32)

        for (off, h, w), xp_ref in zip(planes, xp_refs):
            # Hoisted per-plane broadcasts (sublane splat; lanes stay dense).
            taps = [
                jnp.broadcast_to(w_ref[k, :].astype(jnp.float32)[None, :], (w, c))
                for k in range(9)
            ]
            bias_b = jnp.broadcast_to(bias[None, :], (w, c))

            # Column-padded copy of the plane.  Each spatial row is a contiguous
            # run of w tokens in the sequence, so this is a straight sublane copy
            # (no transpose).  Zero first so columns 0 and w+1 stay zero; row
            # (top/bottom) padding is handled statically in the tap loop below.
            xp_ref[...] = jnp.zeros_like(xp_ref)
            for r in range(h):
                xp_ref[:, r, 1:w + 1, :] = x_ref[:, off + r * w: off + (r + 1) * w, :]

            # Row-wise register accumulation -> one lane-dense store per row,
            # written directly into the fused (tile_b, N, C) output (no concat).
            for i in range(h):
                acc = None
                for di in range(3):
                    si = i + di - 1
                    if si < 0 or si >= h:
                        continue  # zero row-padding folded in statically
                    for dj in range(3):
                        v = xp_ref[:, si, dj:dj + w, :].astype(jnp.float32)
                        v = v * taps[di * 3 + dj]
                        acc = v if acc is None else acc + v
                acc = acc + bias_b
                o_ref[:, off + i * w: off + (i + 1) * w, :] = acc.astype(o_ref.dtype)

    return kernel


def _choose_tile_b(B, per_b_bytes, budget_bytes=8 * 2 ** 20):
    """Largest divisor of B whose block fits the VMEM budget; keep >= 2 grid
    steps when possible so megacore parts can shard the parallel axis."""
    cap = max(1, budget_bytes // max(per_b_bytes, 1))
    tile_b = 1
    for d in range(1, B + 1):
        if B % d == 0 and d <= cap:
            tile_b = d
    if B // tile_b < 2 and B % 2 == 0 and B >= 2:
        tile_b = B // 2
    return max(1, tile_b)


@functools.partial(jax.jit, static_argnames=("H", "W"))
def dwconv(x, weight, bias, *, H, W):
    """Pallas implementation of DWConv.forward.

    x: (B, N, C) with N = 21 * n, n = (H//2)*(W//2)
    weight: (C, 1, 3, 3) depthwise conv weight (PyTorch layout), bias: (C,)
    returns: (B, N, C)
    """
    B, N, C = x.shape
    n = N // 21
    assert N == 21 * n and 4 * n == H * W and H % 2 == 0 and W % 2 == 0

    w9 = jnp.transpose(weight.reshape(C, 9), (1, 0))  # (9, C), tap-major
    b2 = bias.reshape(1, C)

    planes = ((0, 2 * H, 2 * W), (16 * n, H, W), (20 * n, H // 2, W // 2))

    isz = x.dtype.itemsize
    scratch_b = sum(h * (w + 2) * C * isz for _, h, w in planes)
    per_b = 4 * N * C * isz + scratch_b  # double-buffered in + out + pad scratch
    tile_b = _choose_tile_b(B, per_b)
    grid = (B // tile_b,)

    kernel = _make_dwconv_kernel(tile_b, C, planes)

    vmem_bytes = tile_b * per_b + 2 * 10 * C * 4
    flops = 2 * 9 * B * N * C
    bytes_accessed = 2 * B * N * C * isz + 10 * C * 4

    return pl.pallas_call(
        kernel,
        out_shape=jax.ShapeDtypeStruct((B, N, C), x.dtype),
        grid=grid,
        in_specs=[
            pl.BlockSpec((9, C), lambda i: (0, 0)),
            pl.BlockSpec((1, C), lambda i: (0, 0)),
            pl.BlockSpec((tile_b, N, C), lambda i: (i, 0, 0)),
        ],
        out_specs=pl.BlockSpec((tile_b, N, C), lambda i: (i, 0, 0)),
        scratch_shapes=[
            pltpu.VMEM((tile_b, h, w + 2, C), x.dtype) for _, h, w in planes
        ],
        compiler_params=pltpu.CompilerParams(
            dimension_semantics=("parallel",),
            vmem_limit_bytes=int(min(64 * 2 ** 20, max(16 * 2 ** 20, 2 * vmem_bytes))),
        ),
        cost_estimate=pl.CostEstimate(
            flops=flops, transcendentals=0, bytes_accessed=bytes_accessed
        ),
    )(w9, b2, x)


def dwconv_ref(x, H, W, weight, bias):
    """Pure-numpy reference matching the PyTorch DWConv forward."""
    x = np.asarray(x)
    weight = np.asarray(weight)
    bias = np.asarray(bias)
    B, N, C = x.shape
    n = N // 21

    def dw(xs, h, w):
        xi = xs.reshape(B, h, w, C)
        xp = np.pad(xi, ((0, 0), (1, 1), (1, 1), (0, 0)))
        out = np.zeros((B, h, w, C), dtype=np.float32)
        for di in range(3):
            for dj in range(3):
                out += xp[:, di:di + h, dj:dj + w, :] * weight[:, 0, di, dj][None, None, None, :]
        out += bias[None, None, None, :]
        return out.reshape(B, h * w, C)

    y1 = dw(x[:, : 16 * n, :], 2 * H, 2 * W)
    y2 = dw(x[:, 16 * n: 20 * n, :], H, W)
    y3 = dw(x[:, 20 * n:, :], H // 2, W // 2)
    return np.concatenate([y1, y2, y3], axis=1)


if __name__ == "__main__":
    key = jax.random.PRNGKey(0)
    B, C, H, W = 2, 128, 8, 8            # C=128 keeps the channel/lane dim dense
    n = (H // 2) * (W // 2)
    N = 21 * n                           # 336 tokens across the three scales

    kx, kw, kb = jax.random.split(key, 3)
    x = jax.random.normal(kx, (B, N, C), dtype=jnp.float32)
    weight = jax.random.normal(kw, (C, 1, 3, 3), dtype=jnp.float32) * 0.1
    bias = jax.random.normal(kb, (C,), dtype=jnp.float32) * 0.1

    y = jax.block_until_ready(dwconv(x, weight, bias, H=H, W=W))
    y_ref = dwconv_ref(x, H, W, weight, bias)

    assert y.shape == (B, N, C), (y.shape, (B, N, C))
    np.testing.assert_allclose(np.asarray(y), y_ref, rtol=1e-5, atol=1e-5)

    print("KERNEL_OK")
</pallas_src>

<mosaic_0001>
module attributes {stable_mosaic.version = 11 : i64} {
  func.func @kernel(%arg0: i32, %arg1: memref<9x128xf32, #tpu.memory_space<vmem>>, %arg2: memref<1x128xf32, #tpu.memory_space<vmem>>, %arg3: memref<1x336x128xf32, #tpu.memory_space<vmem>>, %arg4: memref<1x336x128xf32, #tpu.memory_space<vmem>>, %arg5: memref<1x16x18x128xf32, #tpu.memory_space<vmem>>, %arg6: memref<1x8x10x128xf32, #tpu.memory_space<vmem>>, %arg7: memref<1x4x6x128xf32, #tpu.memory_space<vmem>>) attributes {dimension_semantics = [#tpu.dimension_semantics<parallel>], iteration_bounds = array<i64: 2>, scalar_prefetch = 0 : i64, scratch_operands = 3 : i64, tpu.core_type = #tpu.core_type<tc>, window_params = [{pipeline_mode = #tpu.pipeline_mode<synchronous>, transform_indices = @transform_0, window_bounds = array<i64: 9, 128>}, {pipeline_mode = #tpu.pipeline_mode<synchronous>, transform_indices = @transform_1, window_bounds = array<i64: 1, 128>}, {transform_indices = @transform_2, window_bounds = array<i64: 1, 336, 128>}, {transform_indices = @transform_3, window_bounds = array<i64: 1, 336, 128>}]} {
    %c0 = arith.constant 0 : index
    %c0_0 = arith.constant 0 : index
    %0 = vector.load %arg2[%c0, %c0_0] : memref<1x128xf32, #tpu.memory_space<vmem>>, vector<1x128xf32>
    %1 = vector.shape_cast %0 : vector<1x128xf32> to vector<128xf32>
    %c0_1 = arith.constant 0 : index
    %c0_2 = arith.constant 0 : index
    %2 = vector.load %arg1[%c0_1, %c0_2] : memref<9x128xf32, #tpu.memory_space<vmem>>, vector<1x128xf32>
    %3 = vector.shape_cast %2 : vector<1x128xf32> to vector<128xf32>
    %4 = vector.shape_cast %3 : vector<128xf32> to vector<1x128xf32>
    %5 = vector.shape_cast %4 : vector<1x128xf32> to vector<1x128xf32>
    %6 = vector.broadcast %5 : vector<1x128xf32> to vector<16x128xf32>
    %c1 = arith.constant 1 : index
    %c0_3 = arith.constant 0 : index
    %7 = vector.load %arg1[%c1, %c0_3] : memref<9x128xf32, #tpu.memory_space<vmem>>, vector<1x128xf32>
    %8 = vector.shape_cast %7 : vector<1x128xf32> to vector<128xf32>
    %9 = vector.shape_cast %8 : vector<128xf32> to vector<1x128xf32>
    %10 = vector.shape_cast %9 : vector<1x128xf32> to vector<1x128xf32>
    %11 = vector.broadcast %10 : vector<1x128xf32> to vector<16x128xf32>
    %c2 = arith.constant 2 : index
    %c0_4 = arith.constant 0 : index
    %12 = vector.load %arg1[%c2, %c0_4] : memref<9x128xf32, #tpu.memory_space<vmem>>, vector<1x128xf32>
    %13 = vector.shape_cast %12 : vector<1x128xf32> to vector<128xf32>
    %14 = vector.shape_cast %13 : vector<128xf32> to vector<1x128xf32>
    %15 = vector.shape_cast %14 : vector<1x128xf32> to vector<1x128xf32>
    %16 = vector.broadcast %15 : vector<1x128xf32> to vector<16x128xf32>
    %c3 = arith.constant 3 : index
    %c0_5 = arith.constant 0 : index
    %17 = vector.load %arg1[%c3, %c0_5] : memref<9x128xf32, #tpu.memory_space<vmem>>, vector<1x128xf32>
    %18 = vector.shape_cast %17 : vector<1x128xf32> to vector<128xf32>
    %19 = vector.shape_cast %18 : vector<128xf32> to vector<1x128xf32>
    %20 = vector.shape_cast %19 : vector<1x128xf32> to vector<1x128xf32>
    %21 = vector.broadcast %20 : vector<1x128xf32> to vector<16x128xf32>
    %c4 = arith.constant 4 : index
    %c0_6 = arith.constant 0 : index
    %22 = vector.load %arg1[%c4, %c0_6] : memref<9x128xf32, #tpu.memory_space<vmem>>, vector<1x128xf32>
    %23 = vector.shape_cast %22 : vector<1x128xf32> to vector<128xf32>
    %24 = vector.shape_cast %23 : vector<128xf32> to vector<1x128xf32>
    %25 = vector.shape_cast %24 : vector<1x128xf32> to vector<1x128xf32>
    %26 = vector.broadcast %25 : vector<1x128xf32> to vector<16x128xf32>
    %c5 = arith.constant 5 : index
    %c0_7 = arith.constant 0 : index
    %27 = vector.load %arg1[%c5, %c0_7] : memref<9x128xf32, #tpu.memory_space<vmem>>, vector<1x128xf32>
    %28 = vector.shape_cast %27 : vector<1x128xf32> to vector<128xf32>
    %29 = vector.shape_cast %28 : vector<128xf32> to vector<1x128xf32>
    %30 = vector.shape_cast %29 : vector<1x128xf32> to vector<1x128xf32>
    %31 = vector.broadcast %30 : vector<1x128xf32> to vector<16x128xf32>
    %c6 = arith.constant 6 : index
    %c0_8 = arith.constant 0 : index
    %32 = vector.load %arg1[%c6, %c0_8] : memref<9x128xf32, #tpu.memory_space<vmem>>, vector<1x128xf32>
    %33 = vector.shape_cast %32 : vector<1x128xf32> to vector<128xf32>
    %34 = vector.shape_cast %33 : vector<128xf32> to vector<1x128xf32>
    %35 = vector.shape_cast %34 : vector<1x128xf32> to vector<1x128xf32>
    %36 = vector.broadcast %35 : vector<1x128xf32> to vector<16x128xf32>
    %c7 = arith.constant 7 : index
    %c0_9 = arith.constant 0 : index
    %37 = vector.load %arg1[%c7, %c0_9] : memref<9x128xf32, #tpu.memory_space<vmem>>, vector<1x128xf32>
    %38 = vector.shape_cast %37 : vector<1x128xf32> to vector<128xf32>
    %39 = vector.shape_cast %38 : vector<128xf32> to vector<1x128xf32>
    %40 = vector.shape_cast %39 : vector<1x128xf32> to vector<1x128xf32>
    %41 = vector.broadcast %40 : vector<1x128xf32> to vector<16x128xf32>
    %c8 = arith.constant 8 : index
    %c0_10 = arith.constant 0 : index
    %42 = vector.load %arg1[%c8, %c0_10] : memref<9x128xf32, #tpu.memory_space<vmem>>, vector<1x128xf32>
    %43 = vector.shape_cast %42 : vector<1x128xf32> to vector<128xf32>
    %44 = vector.shape_cast %43 : vector<128xf32> to vector<1x128xf32>
    %45 = vector.shape_cast %44 : vector<1x128xf32> to vector<1x128xf32>
    %46 = vector.broadcast %45 : vector<1x128xf32> to vector<16x128xf32>
    %47 = vector.shape_cast %1 : vector<128xf32> to vector<1x128xf32>
    %48 = vector.shape_cast %47 : vector<1x128xf32> to vector<1x128xf32>
    %49 = vector.broadcast %48 : vector<1x128xf32> to vector<16x128xf32>
    %cst = arith.constant 0.000000e+00 : f32
    %50 = vector.broadcast %cst : f32 to vector<1x16x18x128xf32>
    %c0_11 = arith.constant 0 : index
    %c0_12 = arith.constant 0 : index
    %c0_13 = arith.constant 0 : index
    %c0_14 = arith.constant 0 : index
    %51 = vector.load %arg5[%c0_11, %c0_12, %c0_13, %c0_14] : memref<1x16x18x128xf32, #tpu.memory_space<vmem>>, vector<1x16x18x128xf32>
    tpu.vector_store %arg5[%c0_11, %c0_12, %c0_13, %c0_14], %50 {strides = array<i32>} : memref<1x16x18x128xf32, #tpu.memory_space<vmem>>, vector<1x16x18x128xf32>,
    %c0_15 = arith.constant 0 : index
    %c0_16 = arith.constant 0 : index
    %c0_17 = arith.constant 0 : index
    %52 = vector.load %arg3[%c0_15, %c0_16, %c0_17] : memref<1x336x128xf32, #tpu.memory_space<vmem>>, vector<1x16x128xf32>
    %c0_18 = arith.constant 0 : index
    %c0_19 = arith.constant 0 : index
    %c1_20 = arith.constant 1 : index
    %c0_21 = arith.constant 0 : index
    %53 = vector.load %arg5[%c0_18, %c0_19, %c1_20, %c0_21] : memref<1x16x18x128xf32, #tpu.memory_space<vmem>>, vector<1x1x16x128xf32>
    %54 = vector.shape_cast %53 : vector<1x1x16x128xf32> to vector<1x16x128xf32>
    %55 = vector.shape_cast %52 : vector<1x16x128xf32> to vector<1x1x16x128xf32>
    tpu.vector_store %arg5[%c0_18, %c0_19, %c1_20, %c0_21], %55 {strides = array<i32>} : memref<1x16x18x128xf32, #tpu.memory_space<vmem>>, vector<1x1x16x128xf32>,
    %c0_22 = arith.constant 0 : index
    %c16 = arith.constant 16 : index
    %c0_23 = arith.constant 0 : index
    %56 = vector.load %arg3[%c0_22, %c16, %c0_23] : memref<1x336x128xf32, #tpu.memory_space<vmem>>, vector<1x16x128xf32>
    %c0_24 = arith.constant 0 : index
    %c1_25 = arith.constant 1 : index
    %c1_26 = arith.constant 1 : index
    %c0_27 = arith.constant 0 : index
    %57 = vector.load %arg5[%c0_24, %c1_25, %c1_26, %c0_27] : memref<1x16x18x128xf32, #tpu.memory_space<vmem>>, vector<1x1x16x128xf32>
    %58 = vector.shape_cast %57 : vector<1x1x16x128xf32> to vector<1x16x128xf32>
    %59 = vector.shape_cast %56 : vector<1x16x128xf32> to vector<1x1x16x128xf32>
    tpu.vector_store %arg5[%c0_24, %c1_25, %c1_26, %c0_27], %59 {strides = array<i32>} : memref<1x16x18x128xf32, #tpu.memory_space<vmem>>, vector<1x1x16x128xf32>,
    %c0_28 = arith.constant 0 : index
    %c32 = arith.constant 32 : index
    %c0_29 = arith.constant 0 : index
    %60 = vector.load %arg3[%c0_28, %c32, %c0_29] : memref<1x336x128xf32, #tpu.memory_space<vmem>>, vector<1x16x128xf32>
    %c0_30 = arith.constant 0 : index
    %c2_31 = arith.constant 2 : index
    %c1_32 = arith.constant 1 : index
    %c0_33 = arith.constant 0 : index
    %61 = vector.load %arg5[%c0_30, %c2_31, %c1_32, %c0_33] : memref<1x16x18x128xf32, #tpu.memory_space<vmem>>, vector<1x1x16x128xf32>
    %62 = vector.shape_cast %61 : vector<1x1x16x128xf32> to vector<1x16x128xf32>
    %63 = vector.shape_cast %60 : vector<1x16x128xf32> to vector<1x1x16x128xf32>
    tpu.vector_store %arg5[%c0_30, %c2_31, %c1_32, %c0_33], %63 {strides = array<i32>} : memref<1x16x18x128xf32, #tpu.memory_space<vmem>>, vector<1x1x16x128xf32>,
    %c0_34 = arith.constant 0 : index
    %c48 = arith.constant 48 : index
    %c0_35 = arith.constant 0 : index
    %64 = vector.load %arg3[%c0_34, %c48, %c0_35] : memref<1x336x128xf32, #tpu.memory_space<vmem>>, vector<1x16x128xf32>
    %c0_36 = arith.constant 0 : index
    %c3_37 = arith.constant 3 : index
    %c1_38 = arith.constant 1 : index
    %c0_39 = arith.constant 0 : index
    %65 = vector.load %arg5[%c0_36, %c3_37, %c1_38, %c0_39] : memref<1x16x18x128xf32, #tpu.memory_space<vmem>>, vector<1x1x16x128xf32>
    %66 = vector.shape_cast %65 : vector<1x1x16x128xf32> to vector<1x16x128xf32>
    %67 = vector.shape_cast %64 : vector<1x16x128xf32> to vector<1x1x16x128xf32>
    tpu.vector_store %arg5[%c0_36, %c3_37, %c1_38, %c0_39], %67 {strides = array<i32>} : memref<1x16x18x128xf32, #tpu.memory_space<vmem>>, vector<1x1x16x128xf32>,
    %c0_40 = arith.constant 0 : index
    %c64 = arith.constant 64 : index
    %c0_41 = arith.constant 0 : index
    %68 = vector.load %arg3[%c0_40, %c64, %c0_41] : memref<1x336x128xf32, #tpu.memory_space<vmem>>, vector<1x16x128xf32>
    %c0_42 = arith.constant 0 : index
    %c4_43 = arith.constant 4 : index
    %c1_44 = arith.constant 1 : index
    %c0_45 = arith.constant 0 : index
    %69 = vector.load %arg5[%c0_42, %c4_43, %c1_44, %c0_45] : memref<1x16x18x128xf32, #tpu.memory_space<vmem>>, vector<1x1x16x128xf32>
    %70 = vector.shape_cast %69 : vector<1x1x16x128xf32> to vector<1x16x128xf32>
    %71 = vector.shape_cast %68 : vector<1x16x128xf32> to vector<1x1x16x128xf32>
    tpu.vector_store %arg5[%c0_42, %c4_43, %c1_44, %c0_45], %71 {strides = array<i32>} : memref<1x16x18x128xf32, #tpu.memory_space<vmem>>, vector<1x1x16x128xf32>,
    %c0_46 = arith.constant 0 : index
    %c80 = arith.constant 80 : index
    %c0_47 = arith.constant 0 : index
    %72 = vector.load %arg3[%c0_46, %c80, %c0_47] : memref<1x336x128xf32, #tpu.memory_space<vmem>>, vector<1x16x128xf32>
    %c0_48 = arith.constant 0 : index
    %c5_49 = arith.constant 5 : index
    %c1_50 = arith.constant 1 : index
    %c0_51 = arith.constant 0 : index
    %73 = vector.load %arg5[%c0_48, %c5_49, %c1_50, %c0_51] : memref<1x16x18x128xf32, #tpu.memory_space<vmem>>, vector<1x1x16x128xf32>
    %74 = vector.shape_cast %73 : vector<1x1x16x128xf32> to vector<1x16x128xf32>
    %75 = vector.shape_cast %72 : vector<1x16x128xf32> to vector<1x1x16x128xf32>
    tpu.vector_store %arg5[%c0_48, %c5_49, %c1_50, %c0_51], %75 {strides = array<i32>} : memref<1x16x18x128xf32, #tpu.memory_space<vmem>>, vector<1x1x16x128xf32>,
    %c0_52 = arith.constant 0 : index
    %c96 = arith.constant 96 : index
    %c0_53 = arith.constant 0 : index
    %76 = vector.load %arg3[%c0_52, %c96, %c0_53] : memref<1x336x128xf32, #tpu.memory_space<vmem>>, vector<1x16x128xf32>
    %c0_54 = arith.constant 0 : index
    %c6_55 = arith.constant 6 : index
    %c1_56 = arith.constant 1 : index
    %c0_57 = arith.constant 0 : index
    %77 = vector.load %arg5[%c0_54, %c6_55, %c1_56, %c0_57] : memref<1x16x18x128xf32, #tpu.memory_space<vmem>>, vector<1x1x16x128xf32>
    %78 = vector.shape_cast %77 : vector<1x1x16x128xf32> to vector<1x16x128xf32>
    %79 = vector.shape_cast %76 : vector<1x16x128xf32> to vector<1x1x16x128xf32>
    tpu.vector_store %arg5[%c0_54, %c6_55, %c1_56, %c0_57], %79 {strides = array<i32>} : memref<1x16x18x128xf32, #tpu.memory_space<vmem>>, vector<1x1x16x128xf32>,
    %c0_58 = arith.constant 0 : index
    %c112 = arith.constant 112 : index
    %c0_59 = arith.constant 0 : index
    %80 = vector.load %arg3[%c0_58, %c112, %c0_59] : memref<1x336x128xf32, #tpu.memory_space<vmem>>, vector<1x16x128xf32>
    %c0_60 = arith.constant 0 : index
    %c7_61 = arith.constant 7 : index
    %c1_62 = arith.constant 1 : index
    %c0_63 = arith.constant 0 : index
    %81 = vector.load %arg5[%c0_60, %c7_61, %c1_62, %c0_63] : memref<1x16x18x128xf32, #tpu.memory_space<vmem>>, vector<1x1x16x128xf32>
    %82 = vector.shape_cast %81 : vector<1x1x16x128xf32> to vector<1x16x128xf32>
    %83 = vector.shape_cast %80 : vector<1x16x128xf32> to vector<1x1x16x128xf32>
    tpu.vector_store %arg5[%c0_60, %c7_61, %c1_62, %c0_63], %83 {strides = array<i32>} : memref<1x16x18x128xf32, #tpu.memory_space<vmem>>, vector<1x1x16x128xf32>,
    %c0_64 = arith.constant 0 : index
    %c128 = arith.constant 128 : index
    %c0_65 = arith.constant 0 : index
    %84 = vector.load %arg3[%c0_64, %c128, %c0_65] : memref<1x336x128xf32, #tpu.memory_space<vmem>>, vector<1x16x128xf32>
    %c0_66 = arith.constant 0 : index
    %c8_67 = arith.constant 8 : index
    %c1_68 = arith.constant 1 : index
    %c0_69 = arith.constant 0 : index
    %85 = vector.load %arg5[%c0_66, %c8_67, %c1_68, %c0_69] : memref<1x16x18x128xf32, #tpu.memory_space<vmem>>, vector<1x1x16x128xf32>
    %86 = vector.shape_cast %85 : vector<1x1x16x128xf32> to vector<1x16x128xf32>
    %87 = vector.shape_cast %84 : vector<1x16x128xf32> to vector<1x1x16x128xf32>
    tpu.vector_store %arg5[%c0_66, %c8_67, %c1_68, %c0_69], %87 {strides = array<i32>} : memref<1x16x18x128xf32, #tpu.memory_space<vmem>>, vector<1x1x16x128xf32>,
    %c0_70 = arith.constant 0 : index
    %c144 = arith.constant 144 : index
    %c0_71 = arith.constant 0 : index
    %88 = vector.load %arg3[%c0_70, %c144, %c0_71] : memref<1x336x128xf32, #tpu.memory_space<vmem>>, vector<1x16x128xf32>
    %c0_72 = arith.constant 0 : index
    %c9 = arith.constant 9 : index
    %c1_73 = arith.constant 1 : index
    %c0_74 = arith.constant 0 : index
    %89 = vector.load %arg5[%c0_72, %c9, %c1_73, %c0_74] : memref<1x16x18x128xf32, #tpu.memory_space<vmem>>, vector<1x1x16x128xf32>
    %90 = vector.shape_cast %89 : vector<1x1x16x128xf32> to vector<1x16x128xf32>
    %91 = vector.shape_cast %88 : vector<1x16x128xf32> to vector<1x1x16x128xf32>
    tpu.vector_store %arg5[%c0_72, %c9, %c1_73, %c0_74], %91 {strides = array<i32>} : memref<1x16x18x128xf32, #tpu.memory_space<vmem>>, vector<1x1x16x128xf32>,
    %c0_75 = arith.constant 0 : index
    %c160 = arith.constant 160 : index
    %c0_76 = arith.constant 0 : index
    %92 = vector.load %arg3[%c0_75, %c160, %c0_76] : memref<1x336x128xf32, #tpu.memory_space<vmem>>, vector<1x16x128xf32>
    %c0_77 = arith.constant 0 : index
    %c10 = arith.constant 10 : index
    %c1_78 = arith.constant 1 : index
    %c0_79 = arith.constant 0 : index
    %93 = vector.load %arg5[%c0_77, %c10, %c1_78, %c0_79] : memref<1x16x18x128xf32, #tpu.memory_space<vmem>>, vector<1x1x16x128xf32>
    %94 = vector.shape_cast %93 : vector<1x1x16x128xf32> to vector<1x16x128xf32>
    %95 = vector.shape_cast %92 : vector<1x16x128xf32> to vector<1x1x16x128xf32>
    tpu.vector_store %arg5[%c0_77, %c10, %c1_78, %c0_79], %95 {strides = array<i32>} : memref<1x16x18x128xf32, #tpu.memory_space<vmem>>, vector<1x1x16x128xf32>,
    %c0_80 = arith.constant 0 : index
    %c176 = arith.constant 176 : index
    %c0_81 = arith.constant 0 : index
    %96 = vector.load %arg3[%c0_80, %c176, %c0_81] : memref<1x336x128xf32, #tpu.memory_space<vmem>>, vector<1x16x128xf32>
    %c0_82 = arith.constant 0 : index
    %c11 = arith.constant 11 : index
    %c1_83 = arith.constant 1 : index
    %c0_84 = arith.constant 0 : index
    %97 = vector.load %arg5[%c0_82, %c11, %c1_83, %c0_84] : memref<1x16x18x128xf32, #tpu.memory_space<vmem>>, vector<1x1x16x128xf32>
    %98 = vector.shape_cast %97 : vector<1x1x16x128xf32> to vector<1x16x128xf32>
    %99 = vector.shape_cast %96 : vector<1x16x128xf32> to vector<1x1x16x128xf32>
    tpu.vector_store %arg5[%c0_82, %c11, %c1_83, %c0_84], %99 {strides = array<i32>} : memref<1x16x18x128xf32, #tpu.memory_space<vmem>>, vector<1x1x16x128xf32>,
    %c0_85 = arith.constant 0 : index
    %c192 = arith.constant 192 : index
    %c0_86 = arith.constant 0 : index
    %100 = vector.load %arg3[%c0_85, %c192, %c0_86] : memref<1x336x128xf32, #tpu.memory_space<vmem>>, vector<1x16x128xf32>
    %c0_87 = arith.constant 0 : index
    %c12 = arith.constant 12 : index
    %c1_88 = arith.constant 1 : index
    %c0_89 = arith.constant 0 : index
    %101 = vector.load %arg5[%c0_87, %c12, %c1_88, %c0_89] : memref<1x16x18x128xf32, #tpu.memory_space<vmem>>, vector<1x1x16x128xf32>
    %102 = vector.shape_cast %101 : vector<1x1x16x128xf32> to vector<1x16x128xf32>
    %103 = vector.shape_cast %100 : vector<1x16x128xf32> to vector<1x1x16x128xf32>
    tpu.vector_store %arg5[%c0_87, %c12, %c1_88, %c0_89], %103 {strides = array<i32>} : memref<1x16x18x128xf32, #tpu.memory_space<vmem>>, vector<1x1x16x128xf32>,
    %c0_90 = arith.constant 0 : index
    %c208 = arith.constant 208 : index
    %c0_91 = arith.constant 0 : index
    %104 = vector.load %arg3[%c0_90, %c208, %c0_91] : memref<1x336x128xf32, #tpu.memory_space<vmem>>, vector<1x16x128xf32>
    %c0_92 = arith.constant 0 : index
    %c13 = arith.constant 13 : index
    %c1_93 = arith.constant 1 : index
    %c0_94 = arith.constant 0 : index
    %105 = vector.load %arg5[%c0_92, %c13, %c1_93, %c0_94] : memref<1x16x18x128xf32, #tpu.memory_space<vmem>>, vector<1x1x16x128xf32>
    %106 = vector.shape_cast %105 : vector<1x1x16x128xf32> to vector<1x16x128xf32>
    %107 = vector.shape_cast %104 : vector<1x16x128xf32> to vector<1x1x16x128xf32>
    tpu.vector_store %arg5[%c0_92, %c13, %c1_93, %c0_94], %107 {strides = array<i32>} : memref<1x16x18x128xf32, #tpu.memory_space<vmem>>, vector<1x1x16x128xf32>,
    %c0_95 = arith.constant 0 : index
    %c224 = arith.constant 224 : index
    %c0_96 = arith.constant 0 : index
    %108 = vector.load %arg3[%c0_95, %c224, %c0_96] : memref<1x336x128xf32, #tpu.memory_space<vmem>>, vector<1x16x128xf32>
    %c0_97 = arith.constant 0 : index
    %c14 = arith.constant 14 : index
    %c1_98 = arith.constant 1 : index
    %c0_99 = arith.constant 0 : index
    %109 = vector.load %arg5[%c0_97, %c14, %c1_98, %c0_99] : memref<1x16x18x128xf32, #tpu.memory_space<vmem>>, vector<1x1x16x128xf32>
    %110 = vector.shape_cast %109 : vector<1x1x16x128xf32> to vector<1x16x128xf32>
    %111 = vector.shape_cast %108 : vector<1x16x128xf32> to vector<1x1x16x128xf32>
    tpu.vector_store %arg5[%c0_97, %c14, %c1_98, %c0_99], %111 {strides = array<i32>} : memref<1x16x18x128xf32, #tpu.memory_space<vmem>>, vector<1x1x16x128xf32>,
    %c0_100 = arith.constant 0 : index
    %c240 = arith.constant 240 : index
    %c0_101 = arith.constant 0 : index
    %112 = vector.load %arg3[%c0_100, %c240, %c0_101] : memref<1x336x128xf32, #tpu.memory_space<vmem>>, vector<1x16x128xf32>
    %c0_102 = arith.constant 0 : index
    %c15 = arith.constant 15 : index
    %c1_103 = arith.constant 1 : index
    %c0_104 = arith.constant 0 : index
    %113 = vector.load %arg5[%c0_102, %c15, %c1_103, %c0_104] : memref<1x16x18x128xf32, #tpu.memory_space<vmem>>, vector<1x1x16x128xf32>
    %114 = vector.shape_cast %113 : vector<1x1x16x128xf32> to vector<1x16x128xf32>
    %115 = vector.shape_cast %112 : vector<1x16x128xf32> to vector<1x1x16x128xf32>
    tpu.vector_store %arg5[%c0_102, %c15, %c1_103, %c0_104], %115 {strides = array<i32>} : memref<1x16x18x128xf32, #tpu.memory_space<vmem>>, vector<1x1x16x128xf32>,
    %c0_105 = arith.constant 0 : index
    %c0_106 = arith.constant 0 : index
    %c0_107 = arith.constant 0 : index
    %c0_108 = arith.constant 0 : index
    %116 = vector.load %arg5[%c0_105, %c0_106, %c0_107, %c0_108] : memref<1x16x18x128xf32, #tpu.memory_space<vmem>>, vector<1x1x16x128xf32>
    %117 = vector.shape_cast %116 : vector<1x1x16x128xf32> to vector<1x16x128xf32>
    %118 = vector.shape_cast %21 : vector<16x128xf32> to vector<1x16x128xf32>
    %119 = arith.mulf %117, %118 : vector<1x16x128xf32>
    %c0_109 = arith.constant 0 : index
    %c0_110 = arith.constant 0 : index
    %c1_111 = arith.constant 1 : index
    %c0_112 = arith.constant 0 : index
    %120 = vector.load %arg5[%c0_109, %c0_110, %c1_111, %c0_112] : memref<1x16x18x128xf32, #tpu.memory_space<vmem>>, vector<1x1x16x128xf32>
    %121 = vector.shape_cast %120 : vector<1x1x16x128xf32> to vector<1x16x128xf32>
    %122 = vector.shape_cast %26 : vector<16x128xf32> to vector<1x16x128xf32>
    %123 = arith.mulf %121, %122 : vector<1x16x128xf32>
    %124 = arith.addf %119, %123 : vector<1x16x128xf32>
    %c0_113 = arith.constant 0 : index
    %c0_114 = arith.constant 0 : index
    %c2_115 = arith.constant 2 : index
    %c0_116 = arith.constant 0 : index
    %125 = vector.load %arg5[%c0_113, %c0_114, %c2_115, %c0_116] : memref<1x16x18x128xf32, #tpu.memory_space<vmem>>, vector<1x1x16x128xf32>
    %126 = vector.shape_cast %125 : vector<1x1x16x128xf32> to vector<1x16x128xf32>
    %127 = vector.shape_cast %31 : vector<16x128xf32> to vector<1x16x128xf32>
    %128 = arith.mulf %126, %127 : vector<1x16x128xf32>
    %129 = arith.addf %124, %128 : vector<1x16x128xf32>
    %c0_117 = arith.constant 0 : index
    %c1_118 = arith.constant 1 : index
    %c0_119 = arith.constant 0 : index
    %c0_120 = arith.constant 0 : index
    %130 = vector.load %arg5[%c0_117, %c1_118, %c0_119, %c0_120] : memref<1x16x18x128xf32, #tpu.memory_space<vmem>>, vector<1x1x16x128xf32>
    %131 = vector.shape_cast %130 : vector<1x1x16x128xf32> to vector<1x16x128xf32>
    %132 = vector.shape_cast %36 : vector<16x128xf32> to vector<1x16x128xf32>
    %133 = arith.mulf %131, %132 : vector<1x16x128xf32>
    %134 = arith.addf %129, %133 : vector<1x16x128xf32>
    %c0_121 = arith.constant 0 : index
    %c1_122 = arith.constant 1 : index
    %c1_123 = arith.constant 1 : index
    %c0_124 = arith.constant 0 : index
    %135 = vector.load %arg5[%c0_121, %c1_122, %c1_123, %c0_124] : memref<1x16x18x128xf32, #tpu.memory_space<vmem>>, vector<1x1x16x128xf32>
    %136 = vector.shape_cast %135 : vector<1x1x16x128xf32> to vector<1x16x128xf32>
    %137 = vector.shape_cast %41 : vector<16x128xf32> to vector<1x16x128xf32>
    %138 = arith.mulf %136, %137 : vector<1x16x128xf32>
    %139 = arith.addf %134, %138 : vector<1x16x128xf32>
    %c0_125 = arith.constant 0 : index
    %c1_126 = arith.constant 1 : index
    %c2_127 = arith.constant 2 : index
    %c0_128 = arith.constant 0 : index
    %140 = vector.load %arg5[%c0_125, %c1_126, %c2_127, %c0_128] : memref<1x16x18x128xf32, #tpu.memory_space<vmem>>, vector<1x1x16x128xf32>
    %141 = vector.shape_cast %140 : vector<1x1x16x128xf32> to vector<1x16x128xf32>
    %142 = vector.shape_cast %46 : vector<16x128xf32> to vector<1x16x128xf32>
    %143 = arith.mulf %141, %142 : vector<1x16x128xf32>
    %144 = arith.addf %139, %143 : vector<1x16x128xf32>
    %145 = vector.shape_cast %49 : vector<16x128xf32> to vector<1x16x128xf32>
    %146 = arith.addf %144, %145 : vector<1x16x128xf32>
    %c0_129 = arith.constant 0 : index
    %c0_130 = arith.constant 0 : index
    %c0_131 = arith.constant 0 : index
    %147 = vector.load %arg4[%c0_129, %c0_130, %c0_131] : memref<1x336x128xf32, #tpu.memory_space<vmem>>, vector<1x16x128xf32>
    tpu.vector_store %arg4[%c0_129, %c0_130, %c0_131], %146 {strides = array<i32>} : memref<1x336x128xf32, #tpu.memory_space<vmem>>, vector<1x16x128xf32>,
    %c0_132 = arith.constant 0 : index
    %c0_133 = arith.constant 0 : index
    %c0_134 = arith.constant 0 : index
    %c0_135 = arith.constant 0 : index
    %148 = vector.load %arg5[%c0_132, %c0_133, %c0_134, %c0_135] : memref<1x16x18x128xf32, #tpu.memory_space<vmem>>, vector<1x1x16x128xf32>
    %149 = vector.shape_cast %148 : vector<1x1x16x128xf32> to vector<1x16x128xf32>
    %150 = vector.shape_cast %6 : vector<16x128xf32> to vector<1x16x128xf32>
    %151 = arith.mulf %149, %150 : vector<1x16x128xf32>
    %c0_136 = arith.constant 0 : index
    %c0_137 = arith.constant 0 : index
    %c1_138 = arith.constant 1 : index
    %c0_139 = arith.constant 0 : index
    %152 = vector.load %arg5[%c0_136, %c0_137, %c1_138, %c0_139] : memref<1x16x18x128xf32, #tpu.memory_space<vmem>>, vector<1x1x16x128xf32>
    %153 = vector.shape_cast %152 : vector<1x1x16x128xf32> to vector<1x16x128xf32>
    %154 = vector.shape_cast %11 : vector<16x128xf32> to vector<1x16x128xf32>
    %155 = arith.mulf %153, %154 : vector<1x16x128xf32>
    %156 = arith.addf %151, %155 : vector<1x16x128xf32>
    %c0_140 = arith.constant 0 : index
    %c0_141 = arith.constant 0 : index
    %c2_142 = arith.constant 2 : index
    %c0_143 = arith.constant 0 : index
    %157 = vector.load %arg5[%c0_140, %c0_141, %c2_142, %c0_143] : memref<1x16x18x128xf32, #tpu.memory_space<vmem>>, vector<1x1x16x128xf32>
    %158 = vector.shape_cast %157 : vector<1x1x16x128xf32> to vector<1x16x128xf32>
    %159 = vector.shape_cast %16 : vector<16x128xf32> to vector<1x16x128xf32>
    %160 = arith.mulf %158, %159 : vector<1x16x128xf32>
    %161 = arith.addf %156, %160 : vector<1x16x128xf32>
    %c0_144 = arith.constant 0 : index
    %c1_145 = arith.constant 1 : index
    %c0_146 = arith.constant 0 : index
    %c0_147 = arith.constant 0 : index
    %162 = vector.load %arg5[%c0_144, %c1_145, %c0_146, %c0_147] : memref<1x16x18x128xf32, #tpu.memory_space<vmem>>, vector<1x1x16x128xf32>
    %163 = vector.shape_cast %162 : vector<1x1x16x128xf32> to vector<1x16x128xf32>
    %164 = vector.shape_cast %21 : vector<16x128xf32> to vector<1x16x128xf32>
    %165 = arith.mulf %163, %164 : vector<1x16x128xf32>
    %166 = arith.addf %161, %165 : vector<1x16x128xf32>
    %c0_148 = arith.constant 0 : index
    %c1_149 = arith.constant 1 : index
    %c1_150 = arith.constant 1 : index
    %c0_151 = arith.constant 0 : index
    %167 = vector.load %arg5[%c0_148, %c1_149, %c1_150, %c0_151] : memref<1x16x18x128xf32, #tpu.memory_space<vmem>>, vector<1x1x16x128xf32>
    %168 = vector.shape_cast %167 : vector<1x1x16x128xf32> to vector<1x16x128xf32>
    %169 = vector.shape_cast %26 : vector<16x128xf32> to vector<1x16x128xf32>
    %170 = arith.mulf %168, %169 : vector<1x16x128xf32>
    %171 = arith.addf %166, %170 : vector<1x16x128xf32>
    %c0_152 = arith.constant 0 : index
    %c1_153 = arith.constant 1 : index
    %c2_154 = arith.constant 2 : index
    %c0_155 = arith.constant 0 : index
    %172 = vector.load %arg5[%c0_152, %c1_153, %c2_154, %c0_155] : memref<1x16x18x128xf32, #tpu.memory_space<vmem>>, vector<1x1x16x128xf32>
    %173 = vector.shape_cast %172 : vector<1x1x16x128xf32> to vector<1x16x128xf32>
    %174 = vector.shape_cast %31 : vector<16x128xf32> to vector<1x16x128xf32>
    %175 = arith.mulf %173, %174 : vector<1x16x128xf32>
    %176 = arith.addf %171, %175 : vector<1x16x128xf32>
    %c0_156 = arith.constant 0 : index
    %c2_157 = arith.constant 2 : index
    %c0_158 = arith.constant 0 : index
    %c0_159 = arith.constant 0 : index
    %177 = vector.load %arg5[%c0_156, %c2_157, %c0_158, %c0_159] : memref<1x16x18x128xf32, #tpu.memory_space<vmem>>, vector<1x1x16x128xf32>
    %178 = vector.shape_cast %177 : vector<1x1x16x128xf32> to vector<1x16x128xf32>
    %179 = vector.shape_cast %36 : vector<16x128xf32> to vector<1x16x128xf32>
    %180 = arith.mulf %178, %179 : vector<1x16x128xf32>
    %181 = arith.addf %176, %180 : vector<1x16x128xf32>
    %c0_160 = arith.constant 0 : index
    %c2_161 = arith.constant 2 : index
    %c1_162 = arith.constant 1 : index
    %c0_163 = arith.constant 0 : index
    %182 = vector.load %arg5[%c0_160, %c2_161, %c1_162, %c0_163] : memref<1x16x18x128xf32, #tpu.memory_space<vmem>>, vector<1x1x16x128xf32>
    %183 = vector.shape_cast %182 : vector<1x1x16x128xf32> to vector<1x16x128xf32>
    %184 = vector.shape_cast %41 : vector<16x128xf32> to vector<1x16x128xf32>
    %185 = arith.mulf %183, %184 : vector<1x16x128xf32>
    %186 = arith.addf %181, %185 : vector<1x16x128xf32>
    %c0_164 = arith.constant 0 : index
    %c2_165 = arith.constant 2 : index
    %c2_166 = arith.constant 2 : index
    %c0_167 = arith.constant 0 : index
    %187 = vector.load %arg5[%c0_164, %c2_165, %c2_166, %c0_167] : memref<1x16x18x128xf32, #tpu.memory_space<vmem>>, vector<1x1x16x128xf32>
    %188 = vector.shape_cast %187 : vector<1x1x16x128xf32> to vector<1x16x128xf32>
    %189 = vector.shape_cast %46 : vector<16x128xf32> to vector<1x16x128xf32>
    %190 = arith.mulf %188, %189 : vector<1x16x128xf32>
    %191 = arith.addf %186, %190 : vector<1x16x128xf32>
    %192 = vector.shape_cast %49 : vector<16x128xf32> to vector<1x16x128xf32>
    %193 = arith.addf %191, %192 : vector<1x16x128xf32>
    %c0_168 = arith.constant 0 : index
    %c16_169 = arith.constant 16 : index
    %c0_170 = arith.constant 0 : index
    %194 = vector.load %arg4[%c0_168, %c16_169, %c0_170] : memref<1x336x128xf32, #tpu.memory_space<vmem>>, vector<1x16x128xf32>
    tpu.vector_store %arg4[%c0_168, %c16_169, %c0_170], %193 {strides = array<i32>} : memref<1x336x128xf32, #tpu.memory_space<vmem>>, vector<1x16x128xf32>,
    %c0_171 = arith.constant 0 : index
    %c1_172 = arith.constant 1 : index
    %c0_173 = arith.constant 0 : index
    %c0_174 = arith.constant 0 : index
    %195 = vector.load %arg5[%c0_171, %c1_172, %c0_173, %c0_174] : memref<1x16x18x128xf32, #tpu.memory_space<vmem>>, vector<1x1x16x128xf32>
    %196 = vector.shape_cast %195 : vector<1x1x16x128xf32> to vector<1x16x128xf32>
    %197 = vector.shape_cast %6 : vector<16x128xf32> to vector<1x16x128xf32>
    %198 = arith.mulf %196, %197 : vector<1x16x128xf32>
    %c0_175 = arith.constant 0 : index
    %c1_176 = arith.constant 1 : index
    %c1_177 = arith.constant 1 : index
    %c0_178 = arith.constant 0 : index
    %199 = vector.load %arg5[%c0_175, %c1_176, %c1_177, %c0_178] : memref<1x16x18x128xf32, #tpu.memory_space<vmem>>, vector<1x1x16x128xf32>
    %200 = vector.shape_cast %199 : vector<1x1x16x128xf32> to vector<1x16x128xf32>
    %201 = vector.shape_cast %11 : vector<16x128xf32> to vector<1x16x128xf32>
    %202 = arith.mulf %200, %201 : vector<1x16x128xf32>
    %203 = arith.addf %198, %202 : vector<1x16x128xf32>
    %c0_179 = arith.constant 0 : index
    %c1_180 = arith.constant 1 : index
    %c2_181 = arith.constant 2 : index
    %c0_182 = arith.constant 0 : index
    %204 = vector.load %arg5[%c0_179, %c1_180, %c2_181, %c0_182] : memref<1x16x18x128xf32, #tpu.memory_space<vmem>>, vector<1x1x16x128xf32>
    %205 = vector.shape_cast %204 : vector<1x1x16x128xf32> to vector<1x16x128xf32>
    %206 = vector.shape_cast %16 : vector<16x128xf32> to vector<1x16x128xf32>
    %207 = arith.mulf %205, %206 : vector<1x16x128xf32>
    %208 = arith.addf %203, %207 : vector<1x16x128xf32>
    %c0_183 = arith.constant 0 : index
    %c2_184 = arith.constant 2 : index
    %c0_185 = arith.constant 0 : index
    %c0_186 = arith.constant 0 : index
    %209 = vector.load %arg5[%c0_183, %c2_184, %c0_185, %c0_186] : memref<1x16x18x128xf32, #tpu.memory_space<vmem>>, vector<1x1x16x128xf32>
    %210 = vector.shape_cast %209 : vector<1x1x16x128xf32> to vector<1x16x128xf32>
    %211 = vector.shape_cast %21 : vector<16x128xf32> to vector<1x16x128xf32>
    %212 = arith.mulf %210, %211 : vector<1x16x128xf32>
    %213 = arith.addf %208, %212 : vector<1x16x128xf32>
    %c0_187 = arith.constant 0 : index
    %c2_188 = arith.constant 2 : index
    %c1_189 = arith.constant 1 : index
    %c0_190 = arith.constant 0 : index
    %214 = vector.load %arg5[%c0_187, %c2_188, %c1_189, %c0_190] : memref<1x16x18x128xf32, #tpu.memory_space<vmem>>, vector<1x1x16x128xf32>
    %215 = vector.shape_cast %214 : vector<1x1x16x128xf32> to vector<1x16x128xf32>
    %216 = vector.shape_cast %26 : vector<16x128xf32> to vector<1x16x128xf32>
    %217 = arith.mulf %215, %216 : vector<1x16x128xf32>
    %218 = arith.addf %213, %217 : vector<1x16x128xf32>
    %c0_191 = arith.constant 0 : index
    %c2_192 = arith.constant 2 : index
    %c2_193 = arith.constant 2 : index
    %c0_194 = arith.constant 0 : index
    %219 = vector.load %arg5[%c0_191, %c2_192, %c2_193, %c0_194] : memref<1x16x18x128xf32, #tpu.memory_space<vmem>>, vector<1x1x16x128xf32>
    %220 = vector.shape_cast %219 : vector<1x1x16x128xf32> to vector<1x16x128xf32>
    %221 = vector.shape_cast %31 : vector<16x128xf32> to vector<1x16x128xf32>
    %222 = arith.mulf %220, %221 : vector<1x16x128xf32>
    %223 = arith.addf %218, %222 : vector<1x16x128xf32>
    %c0_195 = arith.constant 0 : index
    %c3_196 = arith.constant 3 : index
    %c0_197 = arith.constant 0 : index
    %c0_198 = arith.constant 0 : index
    %224 = vector.load %arg5[%c0_195, %c3_196, %c0_197, %c0_198] : memref<1x16x18x128xf32, #tpu.memory_space<vmem>>, vector<1x1x16x128xf32>
    %225 = vector.shape_cast %224 : vector<1x1x16x128xf32> to vector<1x16x128xf32>
    %226 = vector.shape_cast %36 : vector<16x128xf32> to vector<1x16x128xf32>
    %227 = arith.mulf %225, %226 : vector<1x16x128xf32>
    %228 = arith.addf %223, %227 : vector<1x16x128xf32>
    %c0_199 = arith.constant 0 : index
    %c3_200 = arith.constant 3 : index
    %c1_201 = arith.constant 1 : index
    %c0_202 = arith.constant 0 : index
    %229 = vector.load %arg5[%c0_199, %c3_200, %c1_201, %c0_202] : memref<1x16x18x128xf32, #tpu.memory_space<vmem>>, vector<1x1x16x128xf32>
    %230 = vector.shape_cast %229 : vector<1x1x16x128xf32> to vector<1x16x128xf32>
    %231 = vector.shape_cast %41 : vector<16x128xf32> to vector<1x16x128xf32>
    %232 = arith.mulf %230, %231 : vector<1x16x128xf32>
    %233 = arith.addf %228, %232 : vector<1x16x128xf32>
    %c0_203 = arith.constant 0 : index
    %c3_204 = arith.constant 3 : index
    %c2_205 = arith.constant 2 : index
    %c0_206 = arith.constant 0 : index
    %234 = vector.load %arg5[%c0_203, %c3_204, %c2_205, %c0_206] : memref<1x16x18x128xf32, #tpu.memory_space<vmem>>, vector<1x1x16x128xf32>
    %235 = vector.shape_cast %234 : vector<1x1x16x128xf32> to vector<1x16x128xf32>
    %236 = vector.shape_cast %46 : vector<16x128xf32> to vector<1x16x128xf32>
    %237 = arith.mulf %235, %236 : vector<1x16x128xf32>
    %238 = arith.addf %233, %237 : vector<1x16x128xf32>
    %239 = vector.shape_cast %49 : vector<16x128xf32> to vector<1x16x128xf32>
    %240 = arith.addf %238, %239 : vector<1x16x128xf32>
    %c0_207 = arith.constant 0 : index
    %c32_208 = arith.constant 32 : index
    %c0_209 = arith.constant 0 : index
    %241 = vector.load %arg4[%c0_207, %c32_208, %c0_209] : memref<1x336x128xf32, #tpu.memory_space<vmem>>, vector<1x16x128xf32>
    tpu.vector_store %arg4[%c0_207, %c32_208, %c0_209], %240 {strides = array<i32>} : memref<1x336x128xf32, #tpu.memory_space<vmem>>, vector<1x16x128xf32>,
    %c0_210 = arith.constant 0 : index
    %c2_211 = arith.constant 2 : index
    %c0_212 = arith.constant 0 : index
    %c0_213 = arith.constant 0 : index
    %242 = vector.load %arg5[%c0_210, %c2_211, %c0_212, %c0_213] : memref<1x16x18x128xf32, #tpu.memory_space<vmem>>, vector<1x1x16x128xf32>
    %243 = vector.shape_cast %242 : vector<1x1x16x128xf32> to vector<1x16x128xf32>
    %244 = vector.shape_cast %6 : vector<16x128xf32> to vector<1x16x128xf32>
    %245 = arith.mulf %243, %244 : vector<1x16x128xf32>
    %c0_214 = arith.constant 0 : index
    %c2_215 = arith.constant 2 : index
    %c1_216 = arith.constant 1 : index
    %c0_217 = arith.constant 0 : index
    %246 = vector.load %arg5[%c0_214, %c2_215, %c1_216, %c0_217] : memref<1x16x18x128xf32, #tpu.memory_space<vmem>>, vector<1x1x16x128xf32>
    %247 = vector.shape_cast %246 : vector<1x1x16x128xf32> to vector<1x16x128xf32>
    %248 = vector.shape_cast %11 : vector<16x128xf32> to vector<1x16x128xf32>
    %249 = arith.mulf %247, %248 : vector<1x16x128xf32>
    %250 = arith.addf %245, %249 : vector<1x16x128xf32>
    %c0_218 = arith.constant 0 : index
    %c2_219 = arith.constant 2 : index
    %c2_220 = arith.constant 2 : index
    %c0_221 = arith.constant 0 : index
    %251 = vector.load %arg5[%c0_218, %c2_219, %c2_220, %c0_221] : memref<1x16x18x128xf32, #tpu.memory_space<vmem>>, vector<1x1x16x128xf32>
    %252 = vector.shape_cast %251 : vector<1x1x16x128xf32> to vector<1x16x128xf32>
    %253 = vector.shape_cast %16 : vector<16x128xf32> to vector<1x16x128xf32>
    %254 = arith.mulf %252, %253 : vector<1x16x128xf32>
    %255 = arith.addf %250, %254 : vector<1x16x128xf32>
    %c0_222 = arith.constant 0 : index
    %c3_223 = arith.constant 3 : index
    %c0_224 = arith.constant 0 : index
    %c0_225 = arith.constant 0 : index
    %256 = vector.load %arg5[%c0_222, %c3_223, %c0_224, %c0_225] : memref<1x16x18x128xf32, #tpu.memory_space<vmem>>, vector<1x1x16x128xf32>
    %257 = vector.shape_cast %256 : vector<1x1x16x128xf32> to vector<1x16x128xf32>
    %258 = vector.shape_cast %21 : vector<16x128xf32> to vector<1x16x128xf32>
    %259 = arith.mulf %257, %258 : vector<1x16x128xf32>
    %260 = arith.addf %255, %259 : vector<1x16x128xf32>
    %c0_226 = arith.constant 0 : index
    %c3_227 = arith.constant 3 : index
    %c1_228 = arith.constant 1 : index
    %c0_229 = arith.constant 0 : index
    %261 = vector.load %arg5[%c0_226, %c3_227, %c1_228, %c0_229] : memref<1x16x18x128xf32, #tpu.memory_space<vmem>>, vector<1x1x16x128xf32>
    %262 = vector.shape_cast %261 : vector<1x1x16x128xf32> to vector<1x16x128xf32>
    %263 = vector.shape_cast %26 : vector<16x128xf32> to vector<1x16x128xf32>
    %264 = arith.mulf %262, %263 : vector<1x16x128xf32>
    %265 = arith.addf %260, %264 : vector<1x16x128xf32>
    %c0_230 = arith.constant 0 : index
    %c3_231 = arith.constant 3 : index
    %c2_232 = arith.constant 2 : index
    %c0_233 = arith.constant 0 : index
    %266 = vector.load %arg5[%c0_230, %c3_231, %c2_232, %c0_233] : memref<1x16x18x128xf32, #tpu.memory_space<vmem>>, vector<1x1x16x128xf32>
    %267 = vector.shape_cast %266 : vector<1x1x16x128xf32> to vector<1x16x128xf32>
    %268 = vector.shape_cast %31 : vector<16x128xf32> to vector<1x16x128xf32>
    %269 = arith.mulf %267, %268 : vector<1x16x128xf32>
    %270 = arith.addf %265, %269 : vector<1x16x128xf32>
    %c0_234 = arith.constant 0 : index
    %c4_235 = arith.constant 4 : index
    %c0_236 = arith.constant 0 : index
    %c0_237 = arith.constant 0 : index
    %271 = vector.load %arg5[%c0_234, %c4_235, %c0_236, %c0_237] : memref<1x16x18x128xf32, #tpu.memory_space<vmem>>, vector<1x1x16x128xf32>
    %272 = vector.shape_cast %271 : vector<1x1x16x128xf32> to vector<1x16x128xf32>
    %273 = vector.shape_cast %36 : vector<16x128xf32> to vector<1x16x128xf32>
    %274 = arith.mulf %272, %273 : vector<1x16x128xf32>
    %275 = arith.addf %270, %274 : vector<1x16x128xf32>
    %c0_238 = arith.constant 0 : index
    %c4_239 = arith.constant 4 : index
    %c1_240 = arith.constant 1 : index
    %c0_241 = arith.constant 0 : index
    %276 = vector.load %arg5[%c0_238, %c4_239, %c1_240, %c0_241] : memref<1x16x18x128xf32, #tpu.memory_space<vmem>>, vector<1x1x16x128xf32>
    %277 = vector.shape_cast %276 : vector<1x1x16x128xf32> to vector<1x16x128xf32>
    %278 = vector.shape_cast %41 : vector<16x128xf32> to vector<1x16x128xf32>
    %279 = arith.mulf %277, %278 : vector<1x16x128xf32>
    %280 = arith.addf %275, %279 : vector<1x16x128xf32>
    %c0_242 = arith.constant 0 : index
    %c4_243 = arith.constant 4 : index
    %c2_244 = arith.constant 2 : index
    %c0_245 = arith.constant 0 : index
    %281 = vector.load %arg5[%c0_242, %c4_243, %c2_244, %c0_245] : memref<1x16x18x128xf32, #tpu.memory_space<vmem>>, vector<1x1x16x128xf32>
    %282 = vector.shape_cast %281 : vector<1x1x16x128xf32> to vector<1x16x128xf32>
    %283 = vector.shape_cast %46 : vector<16x128xf32> to vector<1x16x128xf32>
    %284 = arith.mulf %282, %283 : vector<1x16x128xf32>
    %285 = arith.addf %280, %284 : vector<1x16x128xf32>
    %286 = vector.shape_cast %49 : vector<16x128xf32> to vector<1x16x128xf32>
    %287 = arith.addf %285, %286 : vector<1x16x128xf32>
    %c0_246 = arith.constant 0 : index
    %c48_247 = arith.constant 48 : index
    %c0_248 = arith.constant 0 : index
    %288 = vector.load %arg4[%c0_246, %c48_247, %c0_248] : memref<1x336x128xf32, #tpu.memory_space<vmem>>, vector<1x16x128xf32>
    tpu.vector_store %arg4[%c0_246, %c48_247, %c0_248], %287 {strides = array<i32>} : memref<1x336x128xf32, #tpu.memory_space<vmem>>, vector<1x16x128xf32>,
    %c0_249 = arith.constant 0 : index
    %c3_250 = arith.constant 3 : index
    %c0_251 = arith.constant 0 : index
    %c0_252 = arith.constant 0 : index
    %289 = vector.load %arg5[%c0_249, %c3_250, %c0_251, %c0_252] : memref<1x16x18x128xf32, #tpu.memory_space<vmem>>, vector<1x1x16x128xf32>
    %290 = vector.shape_cast %289 : vector<1x1x16x128xf32> to vector<1x16x128xf32>
    %291 = vector.shape_cast %6 : vector<16x128xf32> to vector<1x16x128xf32>
    %292 = arith.mulf %290, %291 : vector<1x16x128xf32>
    %c0_253 = arith.constant 0 : index
    %c3_254 = arith.constant 3 : index
    %c1_255 = arith.constant 1 : index
    %c0_256 = arith.constant 0 : index
    %293 = vector.load %arg5[%c0_253, %c3_254, %c1_255, %c0_256] : memref<1x16x18x128xf32, #tpu.memory_space<vmem>>, vector<1x1x16x128xf32>
    %294 = vector.shape_cast %293 : vector<1x1x16x128xf32> to vector<1x16x128xf32>
    %295 = vector.shape_cast %11 : vector<16x128xf32> to vector<1x16x128xf32>
    %296 = arith.mulf %294, %295 : vector<1x16x128xf32>
    %297 = arith.addf %292, %296 : vector<1x16x128xf32>
    %c0_257 = arith.constant 0 : index
    %c3_258 = arith.constant 3 : index
    %c2_259 = arith.constant 2 : index
    %c0_260 = arith.constant 0 : index
    %298 = vector.load %arg5[%c0_257, %c3_258, %c2_259, %c0_260] : memref<1x16x18x128xf32, #tpu.memory_space<vmem>>, vector<1x1x16x128xf32>
    %299 = vector.shape_cast %298 : vector<1x1x16x128xf32> to vector<1x16x128xf32>
    %300 = vector.shape_cast %16 : vector<16x128xf32> to vector<1x16x128xf32>
    %301 = arith.mulf %299, %300 : vector<1x16x128xf32>
    %302 = arith.addf %297, %301 : vector<1x16x128xf32>
    %c0_261 = arith.constant 0 : index
    %c4_262 = arith.constant 4 : index
    %c0_263 = arith.constant 0 : index
    %c0_264 = arith.constant 0 : index
    %303 = vector.load %arg5[%c0_261, %c4_262, %c0_263, %c0_264] : memref<1x16x18x128xf32, #tpu.memory_space<vmem>>, vector<1x1x16x128xf32>
    %304 = vector.shape_cast %303 : vector<1x1x16x128xf32> to vector<1x16x128xf32>
    %305 = vector.shape_cast %21 : vector<16x128xf32> to vector<1x16x128xf32>
    %306 = arith.mulf %304, %305 : vector<1x16x128xf32>
    %307 = arith.addf %302, %306 : vector<1x16x128xf32>
    %c0_265 = arith.constant 0 : index
    %c4_266 = arith.constant 4 : index
    %c1_267 = arith.constant 1 : index
    %c0_268 = arith.constant 0 : index
    %308 = vector.load %arg5[%c0_265, %c4_266, %c1_267, %c0_268] : memref<1x16x18x128xf32, #tpu.memory_space<vmem>>, vector<1x1x16x128xf32>
    %309 = vector.shape_cast %308 : vector<1x1x16x128xf32> to vector<1x16x128xf32>
    %310 = vector.shape_cast %26 : vector<16x128xf32> to vector<1x16x128xf32>
    %311 = arith.mulf %309, %310 : vector<1x16x128xf32>
    %312 = arith.addf %307, %311 : vector<1x16x128xf32>
    %c0_269 = arith.constant 0 : index
    %c4_270 = arith.constant 4 : index
    %c2_271 = arith.constant 2 : index
    %c0_272 = arith.constant 0 : index
    %313 = vector.load %arg5[%c0_269, %c4_270, %c2_271, %c0_272] : memref<1x16x18x128xf32, #tpu.memory_space<vmem>>, vector<1x1x16x128xf32>
    %314 = vector.shape_cast %313 : vector<1x1x16x128xf32> to vector<1x16x128xf32>
    %315 = vector.shape_cast %31 : vector<16x128xf32> to vector<1x16x128xf32>
    %316 = arith.mulf %314, %315 : vector<1x16x128xf32>
    %317 = arith.addf %312, %316 : vector<1x16x128xf32>
    %c0_273 = arith.constant 0 : index
    %c5_274 = arith.constant 5 : index
    %c0_275 = arith.constant 0 : index
    %c0_276 = arith.constant 0 : index
    %318 = vector.load %arg5[%c0_273, %c5_274, %c0_275, %c0_276] : memref<1x16x18x128xf32, #tpu.memory_space<vmem>>, vector<1x1x16x128xf32>
    %319 = vector.shape_cast %318 : vector<1x1x16x128xf32> to vector<1x16x128xf32>
    %320 = vector.shape_cast %36 : vector<16x128xf32> to vector<1x16x128xf32>
    %321 = arith.mulf %319, %320 : vector<1x16x128xf32>
    %322 = arith.addf %317, %321 : vector<1x16x128xf32>
    %c0_277 = arith.constant 0 : index
    %c5_278 = arith.constant 5 : index
    %c1_279 = arith.constant 1 : index
    %c0_280 = arith.constant 0 : index
    %323 = vector.load %arg5[%c0_277, %c5_278, %c1_279, %c0_280] : memref<1x16x18x128xf32, #tpu.memory_space<vmem>>, vector<1x1x16x128xf32>
    %324 = vector.shape_cast %323 : vector<1x1x16x128xf32> to vector<1x16x128xf32>
    %325 = vector.shape_cast %41 : vector<16x128xf32> to vector<1x16x128xf32>
    %326 = arith.mulf %324, %325 : vector<1x16x128xf32>
    %327 = arith.addf %322, %326 : vector<1x16x128xf32>
    %c0_281 = arith.constant 0 : index
    %c5_282 = arith.constant 5 : index
    %c2_283 = arith.constant 2 : index
    %c0_284 = arith.constant 0 : index
    %328 = vector.load %arg5[%c0_281, %c5_282, %c2_283, %c0_284] : memref<1x16x18x128xf32, #tpu.memory_space<vmem>>, vector<1x1x16x128xf32>
    %329 = vector.shape_cast %328 : vector<1x1x16x128xf32> to vector<1x16x128xf32>
    %330 = vector.shape_cast %46 : vector<16x128xf32> to vector<1x16x128xf32>
    %331 = arith.mulf %329, %330 : vector<1x16x128xf32>
    %332 = arith.addf %327, %331 : vector<1x16x128xf32>
    %333 = vector.shape_cast %49 : vector<16x128xf32> to vector<1x16x128xf32>
    %334 = arith.addf %332, %333 : vector<1x16x128xf32>
    %c0_285 = arith.constant 0 : index
    %c64_286 = arith.constant 64 : index
    %c0_287 = arith.constant 0 : index
    %335 = vector.load %arg4[%c0_285, %c64_286, %c0_287] : memref<1x336x128xf32, #tpu.memory_space<vmem>>, vector<1x16x128xf32>
    tpu.vector_store %arg4[%c0_285, %c64_286, %c0_287], %334 {strides = array<i32>} : memref<1x336x128xf32, #tpu.memory_space<vmem>>, vector<1x16x128xf32>,
    %c0_288 = arith.constant 0 : index
    %c4_289 = arith.constant 4 : index
    %c0_290 = arith.constant 0 : index
    %c0_291 = arith.constant 0 : index
    %336 = vector.load %arg5[%c0_288, %c4_289, %c0_290, %c0_291] : memref<1x16x18x128xf32, #tpu.memory_space<vmem>>, vector<1x1x16x128xf32>
    %337 = vector.shape_cast %336 : vector<1x1x16x128xf32> to vector<1x16x128xf32>
    %338 = vector.shape_cast %6 : vector<16x128xf32> to vector<1x16x128xf32>
    %339 = arith.mulf %337, %338 : vector<1x16x128xf32>
    %c0_292 = arith.constant 0 : index
    %c4_293 = arith.constant 4 : index
    %c1_294 = arith.constant 1 : index
    %c0_295 = arith.constant 0 : index
    %340 = vector.load %arg5[%c0_292, %c4_293, %c1_294, %c0_295] : memref<1x16x18x128xf32, #tpu.memory_space<vmem>>, vector<1x1x16x128xf32>
    %341 = vector.shape_cast %340 : vector<1x1x16x128xf32> to vector<1x16x128xf32>
    %342 = vector.shape_cast %11 : vector<16x128xf32> to vector<1x16x128xf32>
    %343 = arith.mulf %341, %342 : vector<1x16x128xf32>
    %344 = arith.addf %339, %343 : vector<1x16x128xf32>
    %c0_296 = arith.constant 0 : index
    %c4_297 = arith.constant 4 : index
    %c2_298 = arith.constant 2 : index
    %c0_299 = arith.constant 0 : index
    %345 = vector.load %arg5[%c0_296, %c4_297, %c2_298, %c0_299] : memref<1x16x18x128xf32, #tpu.memory_space<vmem>>, vector<1x1x16x128xf32>
    %346 = vector.shape_cast %345 : vector<1x1x16x128xf32> to vector<1x16x128xf32>
    %347 = vector.shape_cast %16 : vector<16x128xf32> to vector<1x16x128xf32>
    %348 = arith.mulf %346, %347 : vector<1x16x128xf32>
    %349 = arith.addf %344, %348 : vector<1x16x128xf32>
    %c0_300 = arith.constant 0 : index
    %c5_301 = arith.constant 5 : index
    %c0_302 = arith.constant 0 : index
    %c0_303 = arith.constant 0 : index
    %350 = vector.load %arg5[%c0_300, %c5_301, %c0_302, %c0_303] : memref<1x16x18x128xf32, #tpu.memory_space<vmem>>, vector<1x1x16x128xf32>
    %351 = vector.shape_cast %350 : vector<1x1x16x128xf32> to vector<1x16x128xf32>
    %352 = vector.shape_cast %21 : vector<16x128xf32> to vector<1x16x128xf32>
    %353 = arith.mulf %351, %352 : vector<1x16x128xf32>
    %354 = arith.addf %349, %353 : vector<1x16x128xf32>
    %c0_304 = arith.constant 0 : index
    %c5_305 = arith.constant 5 : index
    %c1_306 = arith.constant 1 : index
    %c0_307 = arith.constant 0 : index
    %355 = vector.load %arg5[%c0_304, %c5_305, %c1_306, %c0_307] : memref<1x16x18x128xf32, #tpu.memory_space<vmem>>, vector<1x1x16x128xf32>
    %356 = vector.shape_cast %355 : vector<1x1x16x128xf32> to vector<1x16x128xf32>
    %357 = vector.shape_cast %26 : vector<16x128xf32> to vector<1x16x128xf32>
    %358 = arith.mulf %356, %357 : vector<1x16x128xf32>
    %359 = arith.addf %354, %358 : vector<1x16x128xf32>
    %c0_308 = arith.constant 0 : index
    %c5_309 = arith.constant 5 : index
    %c2_310 = arith.constant 2 : index
    %c0_311 = arith.constant 0 : index
    %360 = vector.load %arg5[%c0_308, %c5_309, %c2_310, %c0_311] : memref<1x16x18x128xf32, #tpu.memory_space<vmem>>, vector<1x1x16x128xf32>
    %361 = vector.shape_cast %360 : vector<1x1x16x128xf32> to vector<1x16x128xf32>
    %362 = vector.shape_cast %31 : vector<16x128xf32> to vector<1x16x128xf32>
    %363 = arith.mulf %361, %362 : vector<1x16x128xf32>
    %364 = arith.addf %359, %363 : vector<1x16x128xf32>
    %c0_312 = arith.constant 0 : index
    %c6_313 = arith.constant 6 : index
    %c0_314 = arith.constant 0 : index
    %c0_315 = arith.constant 0 : index
    %365 = vector.load %arg5[%c0_312, %c6_313, %c0_314, %c0_315] : memref<1x16x18x128xf32, #tpu.memory_space<vmem>>, vector<1x1x16x128xf32>
    %366 = vector.shape_cast %365 : vector<1x1x16x128xf32> to vector<1x16x128xf32>
    %367 = vector.shape_cast %36 : vector<16x128xf32> to vector<1x16x128xf32>
    %368 = arith.mulf %366, %367 : vector<1x16x128xf32>
    %369 = arith.addf %364, %368 : vector<1x16x128xf32>
    %c0_316 = arith.constant 0 : index
    %c6_317 = arith.constant 6 : index
    %c1_318 = arith.constant 1 : index
    %c0_319 = arith.constant 0 : index
    %370 = vector.load %arg5[%c0_316, %c6_317, %c1_318, %c0_319] : memref<1x16x18x128xf32, #tpu.memory_space<vmem>>, vector<1x1x16x128xf32>
    %371 = vector.shape_cast %370 : vector<1x1x16x128xf32> to vector<1x16x128xf32>
    %372 = vector.shape_cast %41 : vector<16x128xf32> to vector<1x16x128xf32>
    %373 = arith.mulf %371, %372 : vector<1x16x128xf32>
    %374 = arith.addf %369, %373 : vector<1x16x128xf32>
    %c0_320 = arith.constant 0 : index
    %c6_321 = arith.constant 6 : index
    %c2_322 = arith.constant 2 : index
    %c0_323 = arith.constant 0 : index
    %375 = vector.load %arg5[%c0_320, %c6_321, %c2_322, %c0_323] : memref<1x16x18x128xf32, #tpu.memory_space<vmem>>, vector<1x1x16x128xf32>
    %376 = vector.shape_cast %375 : vector<1x1x16x128xf32> to vector<1x16x128xf32>
    %377 = vector.shape_cast %46 : vector<16x128xf32> to vector<1x16x128xf32>
    %378 = arith.mulf %376, %377 : vector<1x16x128xf32>
    %379 = arith.addf %374, %378 : vector<1x16x128xf32>
    %380 = vector.shape_cast %49 : vector<16x128xf32> to vector<1x16x128xf32>
    %381 = arith.addf %379, %380 : vector<1x16x128xf32>
    %c0_324 = arith.constant 0 : index
    %c80_325 = arith.constant 80 : index
    %c0_326 = arith.constant 0 : index
    %382 = vector.load %arg4[%c0_324, %c80_325, %c0_326] : memref<1x336x128xf32, #tpu.memory_space<vmem>>, vector<1x16x128xf32>
    tpu.vector_store %arg4[%c0_324, %c80_325, %c0_326], %381 {strides = array<i32>} : memref<1x336x128xf32, #tpu.memory_space<vmem>>, vector<1x16x128xf32>,
    %c0_327 = arith.constant 0 : index
    %c5_328 = arith.constant 5 : index
    %c0_329 = arith.constant 0 : index
    %c0_330 = arith.constant 0 : index
    %383 = vector.load %arg5[%c0_327, %c5_328, %c0_329, %c0_330] : memref<1x16x18x128xf32, #tpu.memory_space<vmem>>, vector<1x1x16x128xf32>
    %384 = vector.shape_cast %383 : vector<1x1x16x128xf32> to vector<1x16x128xf32>
    %385 = vector.shape_cast %6 : vector<16x128xf32> to vector<1x16x128xf32>
    %386 = arith.mulf %384, %385 : vector<1x16x128xf32>
    %c0_331 = arith.constant 0 : index
    %c5_332 = arith.constant 5 : index
    %c1_333 = arith.constant 1 : index
    %c0_334 = arith.constant 0 : index
    %387 = vector.load %arg5[%c0_331, %c5_332, %c1_333, %c0_334] : memref<1x16x18x128xf32, #tpu.memory_space<vmem>>, vector<1x1x16x128xf32>
    %388 = vector.shape_cast %387 : vector<1x1x16x128xf32> to vector<1x16x128xf32>
    %389 = vector.shape_cast %11 : vector<16x128xf32> to vector<1x16x128xf32>
    %390 = arith.mulf %388, %389 : vector<1x16x128xf32>
    %391 = arith.addf %386, %390 : vector<1x16x128xf32>
    %c0_335 = arith.constant 0 : index
    %c5_336 = arith.constant 5 : index
    %c2_337 = arith.constant 2 : index
    %c0_338 = arith.constant 0 : index
    %392 = vector.load %arg5[%c0_335, %c5_336, %c2_337, %c0_338] : memref<1x16x18x128xf32, #tpu.memory_space<vmem>>, vector<1x1x16x128xf32>
    %393 = vector.shape_cast %392 : vector<1x1x16x128xf32> to vector<1x16x128xf32>
    %394 = vector.shape_cast %16 : vector<16x128xf32> to vector<1x16x128xf32>
    %395 = arith.mulf %393, %394 : vector<1x16x128xf32>
    %396 = arith.addf %391, %395 : vector<1x16x128xf32>
    %c0_339 = arith.constant 0 : index
    %c6_340 = arith.constant 6 : index
    %c0_341 = arith.constant 0 : index
    %c0_342 = arith.constant 0 : index
    %397 = vector.load %arg5[%c0_339, %c6_340, %c0_341, %c0_342] : memref<1x16x18x128xf32, #tpu.memory_space<vmem>>, vector<1x1x16x128xf32>
    %398 = vector.shape_cast %397 : vector<1x1x16x128xf32> to vector<1x16x128xf32>
    %399 = vector.shape_cast %21 : vector<16x128xf32> to vector<1x16x128xf32>
    %400 = arith.mulf %398, %399 : vector<1x16x128xf32>
    %401 = arith.addf %396, %400 : vector<1x16x128xf32>
    %c0_343 = arith.constant 0 : index
    %c6_344 = arith.constant 6 : index
    %c1_345 = arith.constant 1 : index
    %c0_346 = arith.constant 0 : index
    %402 = vector.load %arg5[%c0_343, %c6_344, %c1_345, %c0_346] : memref<1x16x18x128xf32, #tpu.memory_space<vmem>>, vector<1x1x16x128xf32>
    %403 = vector.shape_cast %402 : vector<1x1x16x128xf32> to vector<1x16x128xf32>
    %404 = vector.shape_cast %26 : vector<16x128xf32> to vector<1x16x128xf32>
    %405 = arith.mulf %403, %404 : vector<1x16x128xf32>
    %406 = arith.addf %401, %405 : vector<1x16x128xf32>
    %c0_347 = arith.constant 0 : index
    %c6_348 = arith.constant 6 : index
    %c2_349 = arith.constant 2 : index
    %c0_350 = arith.constant 0 : index
    %407 = vector.load %arg5[%c0_347, %c6_348, %c2_349, %c0_350] : memref<1x16x18x128xf32, #tpu.memory_space<vmem>>, vector<1x1x16x128xf32>
    %408 = vector.shape_cast %407 : vector<1x1x16x128xf32> to vector<1x16x128xf32>
    %409 = vector.shape_cast %31 : vector<16x128xf32> to vector<1x16x128xf32>
    %410 = arith.mulf %408, %409 : vector<1x16x128xf32>
    %411 = arith.addf %406, %410 : vector<1x16x128xf32>
    %c0_351 = arith.constant 0 : index
    %c7_352 = arith.constant 7 : index
    %c0_353 = arith.constant 0 : index
    %c0_354 = arith.constant 0 : index
    %412 = vector.load %arg5[%c0_351, %c7_352, %c0_353, %c0_354] : memref<1x16x18x128xf32, #tpu.memory_space<vmem>>, vector<1x1x16x128xf32>
    %413 = vector.shape_cast %412 : vector<1x1x16x128xf32> to vector<1x16x128xf32>
    %414 = vector.shape_cast %36 : vector<16x128xf32> to vector<1x16x128xf32>
    %415 = arith.mulf %413, %414 : vector<1x16x128xf32>
    %416 = arith.addf %411, %415 : vector<1x16x128xf32>
    %c0_355 = arith.constant 0 : index
    %c7_356 = arith.constant 7 : index
    %c1_357 = arith.constant 1 : index
    %c0_358 = arith.constant 0 : index
    %417 = vector.load %arg5[%c0_355, %c7_356, %c1_357, %c0_358] : memref<1x16x18x128xf32, #tpu.memory_space<vmem>>, vector<1x1x16x128xf32>
    %418 = vector.shape_cast %417 : vector<1x1x16x128xf32> to vector<1x16x128xf32>
    %419 = vector.shape_cast %41 : vector<16x128xf32> to vector<1x16x128xf32>
    %420 = arith.mulf %418, %419 : vector<1x16x128xf32>
    %421 = arith.addf %416, %420 : vector<1x16x128xf32>
    %c0_359 = arith.constant 0 : index
    %c7_360 = arith.constant 7 : index
    %c2_361 = arith.constant 2 : index
    %c0_362 = arith.constant 0 : index
    %422 = vector.load %arg5[%c0_359, %c7_360, %c2_361, %c0_362] : memref<1x16x18x128xf32, #tpu.memory_space<vmem>>, vector<1x1x16x128xf32>
    %423 = vector.shape_cast %422 : vector<1x1x16x128xf32> to vector<1x16x128xf32>
    %424 = vector.shape_cast %46 : vector<16x128xf32> to vector<1x16x128xf32>
    %425 = arith.mulf %423, %424 : vector<1x16x128xf32>
    %426 = arith.addf %421, %425 : vector<1x16x128xf32>
    %427 = vector.shape_cast %49 : vector<16x128xf32> to vector<1x16x128xf32>
    %428 = arith.addf %426, %427 : vector<1x16x128xf32>
    %c0_363 = arith.constant 0 : index
    %c96_364 = arith.constant 96 : index
    %c0_365 = arith.constant 0 : index
    %429 = vector.load %arg4[%c0_363, %c96_364, %c0_365] : memref<1x336x128xf32, #tpu.memory_space<vmem>>, vector<1x16x128xf32>
    tpu.vector_store %arg4[%c0_363, %c96_364, %c0_365], %428 {strides = array<i32>} : memref<1x336x128xf32, #tpu.memory_space<vmem>>, vector<1x16x128xf32>,
    %c0_366 = arith.constant 0 : index
    %c6_367 = arith.constant 6 : index
    %c0_368 = arith.constant 0 : index
    %c0_369 = arith.constant 0 : index
    %430 = vector.load %arg5[%c0_366, %c6_367, %c0_368, %c0_369] : memref<1x16x18x128xf32, #tpu.memory_space<vmem>>, vector<1x1x16x128xf32>
    %431 = vector.shape_cast %430 : vector<1x1x16x128xf32> to vector<1x16x128xf32>
    %432 = vector.shape_cast %6 : vector<16x128xf32> to vector<1x16x128xf32>
    %433 = arith.mulf %431, %432 : vector<1x16x128xf32>
    %c0_370 = arith.constant 0 : index
    %c6_371 = arith.constant 6 : index
    %c1_372 = arith.constant 1 : index
    %c0_373 = arith.constant 0 : index
    %434 = vector.load %arg5[%c0_370, %c6_371, %c1_372, %c0_373] : memref<1x16x18x128xf32, #tpu.memory_space<vmem>>, vector<1x1x16x128xf32>
    %435 = vector.shape_cast %434 : vector<1x1x16x128xf32> to vector<1x16x128xf32>
    %436 = vector.shape_cast %11 : vector<16x128xf32> to vector<1x16x128xf32>
    %437 = arith.mulf %435, %436 : vector<1x16x128xf32>
    %438 = arith.addf %433, %437 : vector<1x16x128xf32>
    %c0_374 = arith.constant 0 : index
    %c6_375 = arith.constant 6 : index
    %c2_376 = arith.constant 2 : index
    %c0_377 = arith.constant 0 : index
    %439 = vector.load %arg5[%c0_374, %c6_375, %c2_376, %c0_377] : memref<1x16x18x128xf32, #tpu.memory_space<vmem>>, vector<1x1x16x128xf32>
    %440 = vector.shape_cast %439 : vector<1x1x16x128xf32> to vector<1x16x128xf32>
    %441 = vector.shape_cast %16 : vector<16x128xf32> to vector<1x16x128xf32>
    %442 = arith.mulf %440, %441 : vector<1x16x128xf32>
    %443 = arith.addf %438, %442 : vector<1x16x128xf32>
    %c0_378 = arith.constant 0 : index
    %c7_379 = arith.constant 7 : index
    %c0_380 = arith.constant 0 : index
    %c0_381 = arith.constant 0 : index
    %444 = vector.load %arg5[%c0_378, %c7_379, %c0_380, %c0_381] : memref<1x16x18x128xf32, #tpu.memory_space<vmem>>, vector<1x1x16x128xf32>
    %445 = vector.shape_cast %444 : vector<1x1x16x128xf32> to vector<1x16x128xf32>
    %446 = vector.shape_cast %21 : vector<16x128xf32> to vector<1x16x128xf32>
    %447 = arith.mulf %445, %446 : vector<1x16x128xf32>
    %448 = arith.addf %443, %447 : vector<1x16x128xf32>
    %c0_382 = arith.constant 0 : index
    %c7_383 = arith.constant 7 : index
    %c1_384 = arith.constant 1 : index
    %c0_385 = arith.constant 0 : index
    %449 = vector.load %arg5[%c0_382, %c7_383, %c1_384, %c0_385] : memref<1x16x18x128xf32, #tpu.memory_space<vmem>>, vector<1x1x16x128xf32>
    %450 = vector.shape_cast %449 : vector<1x1x16x128xf32> to vector<1x16x128xf32>
    %451 = vector.shape_cast %26 : vector<16x128xf32> to vector<1x16x128xf32>
    %452 = arith.mulf %450, %451 : vector<1x16x128xf32>
    %453 = arith.addf %448, %452 : vector<1x16x128xf32>
    %c0_386 = arith.constant 0 : index
    %c7_387 = arith.constant 7 : index
    %c2_388 = arith.constant 2 : index
    %c0_389 = arith.constant 0 : index
    %454 = vector.load %arg5[%c0_386, %c7_387, %c2_388, %c0_389] : memref<1x16x18x128xf32, #tpu.memory_space<vmem>>, vector<1x1x16x128xf32>
    %455 = vector.shape_cast %454 : vector<1x1x16x128xf32> to vector<1x16x128xf32>
    %456 = vector.shape_cast %31 : vector<16x128xf32> to vector<1x16x128xf32>
    %457 = arith.mulf %455, %456 : vector<1x16x128xf32>
    %458 = arith.addf %453, %457 : vector<1x16x128xf32>
    %c0_390 = arith.constant 0 : index
    %c8_391 = arith.constant 8 : index
    %c0_392 = arith.constant 0 : index
    %c0_393 = arith.constant 0 : index
    %459 = vector.load %arg5[%c0_390, %c8_391, %c0_392, %c0_393] : memref<1x16x18x128xf32, #tpu.memory_space<vmem>>, vector<1x1x16x128xf32>
    %460 = vector.shape_cast %459 : vector<1x1x16x128xf32> to vector<1x16x128xf32>
    %461 = vector.shape_cast %36 : vector<16x128xf32> to vector<1x16x128xf32>
    %462 = arith.mulf %460, %461 : vector<1x16x128xf32>
    %463 = arith.addf %458, %462 : vector<1x16x128xf32>
    %c0_394 = arith.constant 0 : index
    %c8_395 = arith.constant 8 : index
    %c1_396 = arith.constant 1 : index
    %c0_397 = arith.constant 0 : index
    %464 = vector.load %arg5[%c0_394, %c8_395, %c1_396, %c0_397] : memref<1x16x18x128xf32, #tpu.memory_space<vmem>>, vector<1x1x16x128xf32>
    %465 = vector.shape_cast %464 : vector<1x1x16x128xf32> to vector<1x16x128xf32>
    %466 = vector.shape_cast %41 : vector<16x128xf32> to vector<1x16x128xf32>
    %467 = arith.mulf %465, %466 : vector<1x16x128xf32>
    %468 = arith.addf %463, %467 : vector<1x16x128xf32>
    %c0_398 = arith.constant 0 : index
    %c8_399 = arith.constant 8 : index
    %c2_400 = arith.constant 2 : index
    %c0_401 = arith.constant 0 : index
    %469 = vector.load %arg5[%c0_398, %c8_399, %c2_400, %c0_401] : memref<1x16x18x128xf32, #tpu.memory_space<vmem>>, vector<1x1x16x128xf32>
    %470 = vector.shape_cast %469 : vector<1x1x16x128xf32> to vector<1x16x128xf32>
    %471 = vector.shape_cast %46 : vector<16x128xf32> to vector<1x16x128xf32>
    %472 = arith.mulf %470, %471 : vector<1x16x128xf32>
    %473 = arith.addf %468, %472 : vector<1x16x128xf32>
    %474 = vector.shape_cast %49 : vector<16x128xf32> to vector<1x16x128xf32>
    %475 = arith.addf %473, %474 : vector<1x16x128xf32>
    %c0_402 = arith.constant 0 : index
    %c112_403 = arith.constant 112 : index
    %c0_404 = arith.constant 0 : index
    %476 = vector.load %arg4[%c0_402, %c112_403, %c0_404] : memref<1x336x128xf32, #tpu.memory_space<vmem>>, vector<1x16x128xf32>
    tpu.vector_store %arg4[%c0_402, %c112_403, %c0_404], %475 {strides = array<i32>} : memref<1x336x128xf32, #tpu.memory_space<vmem>>, vector<1x16x128xf32>,
    %c0_405 = arith.constant 0 : index
    %c7_406 = arith.constant 7 : index
    %c0_407 = arith.constant 0 : index
    %c0_408 = arith.constant 0 : index
    %477 = vector.load %arg5[%c0_405, %c7_406, %c0_407, %c0_408] : memref<1x16x18x128xf32, #tpu.memory_space<vmem>>, vector<1x1x16x128xf32>
    %478 = vector.shape_cast %477 : vector<1x1x16x128xf32> to vector<1x16x128xf32>
    %479 = vector.shape_cast %6 : vector<16x128xf32> to vector<1x16x128xf32>
    %480 = arith.mulf %478, %479 : vector<1x16x128xf32>
    %c0_409 = arith.constant 0 : index
    %c7_410 = arith.constant 7 : index
    %c1_411 = arith.constant 1 : index
    %c0_412 = arith.constant 0 : index
    %481 = vector.load %arg5[%c0_409, %c7_410, %c1_411, %c0_412] : memref<1x16x18x128xf32, #tpu.memory_space<vmem>>, vector<1x1x16x128xf32>
    %482 = vector.shape_cast %481 : vector<1x1x16x128xf32> to vector<1x16x128xf32>
    %483 = vector.shape_cast %11 : vector<16x128xf32> to vector<1x16x128xf32>
    %484 = arith.mulf %482, %483 : vector<1x16x128xf32>
    %485 = arith.addf %480, %484 : vector<1x16x128xf32>
    %c0_413 = arith.constant 0 : index
    %c7_414 = arith.constant 7 : index
    %c2_415 = arith.constant 2 : index
    %c0_416 = arith.constant 0 : index
    %486 = vector.load %arg5[%c0_413, %c7_414, %c2_415, %c0_416] : memref<1x16x18x128xf32, #tpu.memory_space<vmem>>, vector<1x1x16x128xf32>
    %487 = vector.shape_cast %486 : vector<1x1x16x128xf32> to vector<1x16x128xf32>
    %488 = vector.shape_cast %16 : vector<16x128xf32> to vector<1x16x128xf32>
    %489 = arith.mulf %487, %488 : vector<1x16x128xf32>
    %490 = arith.addf %485, %489 : vector<1x16x128xf32>
    %c0_417 = arith.constant 0 : index
    %c8_418 = arith.constant 8 : index
    %c0_419 = arith.constant 0 : index
    %c0_420 = arith.constant 0 : index
    %491 = vector.load %arg5[%c0_417, %c8_418, %c0_419, %c0_420] : memref<1x16x18x128xf32, #tpu.memory_space<vmem>>, vector<1x1x16x128xf32>
    %492 = vector.shape_cast %491 : vector<1x1x16x128xf32> to vector<1x16x128xf32>
    %493 = vector.shape_cast %21 : vector<16x128xf32> to vector<1x16x128xf32>
    %494 = arith.mulf %492, %493 : vector<1x16x128xf32>
    %495 = arith.addf %490, %494 : vector<1x16x128xf32>
    %c0_421 = arith.constant 0 : index
    %c8_422 = arith.constant 8 : index
    %c1_423 = arith.constant 1 : index
    %c0_424 = arith.constant 0 : index
    %496 = vector.load %arg5[%c0_421, %c8_422, %c1_423, %c0_424] : memref<1x16x18x128xf32, #tpu.memory_space<vmem>>, vector<1x1x16x128xf32>
    %497 = vector.shape_cast %496 : vector<1x1x16x128xf32> to vector<1x16x128xf32>
    %498 = vector.shape_cast %26 : vector<16x128xf32> to vector<1x16x128xf32>
    %499 = arith.mulf %497, %498 : vector<1x16x128xf32>
    %500 = arith.addf %495, %499 : vector<1x16x128xf32>
    %c0_425 = arith.constant 0 : index
    %c8_426 = arith.constant 8 : index
    %c2_427 = arith.constant 2 : index
    %c0_428 = arith.constant 0 : index
    %501 = vector.load %arg5[%c0_425, %c8_426, %c2_427, %c0_428] : memref<1x16x18x128xf32, #tpu.memory_space<vmem>>, vector<1x1x16x128xf32>
    %502 = vector.shape_cast %501 : vector<1x1x16x128xf32> to vector<1x16x128xf32>
    %503 = vector.shape_cast %31 : vector<16x128xf32> to vector<1x16x128xf32>
    %504 = arith.mulf %502, %503 : vector<1x16x128xf32>
    %505 = arith.addf %500, %504 : vector<1x16x128xf32>
    %c0_429 = arith.constant 0 : index
    %c9_430 = arith.constant 9 : index
    %c0_431 = arith.constant 0 : index
    %c0_432 = arith.constant 0 : index
    %506 = vector.load %arg5[%c0_429, %c9_430, %c0_431, %c0_432] : memref<1x16x18x128xf32, #tpu.memory_space<vmem>>, vector<1x1x16x128xf32>
    %507 = vector.shape_cast %506 : vector<1x1x16x128xf32> to vector<1x16x128xf32>
    %508 = vector.shape_cast %36 : vector<16x128xf32> to vector<1x16x128xf32>
    %509 = arith.mulf %507, %508 : vector<1x16x128xf32>
    %510 = arith.addf %505, %509 : vector<1x16x128xf32>
    %c0_433 = arith.constant 0 : index
    %c9_434 = arith.constant 9 : index
    %c1_435 = arith.constant 1 : index
    %c0_436 = arith.constant 0 : index
    %511 = vector.load %arg5[%c0_433, %c9_434, %c1_435, %c0_436] : memref<1x16x18x128xf32, #tpu.memory_space<vmem>>, vector<1x1x16x128xf32>
    %512 = vector.shape_cast %511 : vector<1x1x16x128xf32> to vector<1x16x128xf32>
    %513 = vector.shape_cast %41 : vector<16x128xf32> to vector<1x16x128xf32>
    %514 = arith.mulf %512, %513 : vector<1x16x128xf32>
    %515 = arith.addf %510, %514 : vector<1x16x128xf32>
    %c0_437 = arith.constant 0 : index
    %c9_438 = arith.constant 9 : index
    %c2_439 = arith.constant 2 : index
    %c0_440 = arith.constant 0 : index
    %516 = vector.load %arg5[%c0_437, %c9_438, %c2_439, %c0_440] : memref<1x16x18x128xf32, #tpu.memory_space<vmem>>, vector<1x1x16x128xf32>
    %517 = vector.shape_cast %516 : vector<1x1x16x128xf32> to vector<1x16x128xf32>
    %518 = vector.shape_cast %46 : vector<16x128xf32> to vector<1x16x128xf32>
    %519 = arith.mulf %517, %518 : vector<1x16x128xf32>
    %520 = arith.addf %515, %519 : vector<1x16x128xf32>
    %521 = vector.shape_cast %49 : vector<16x128xf32> to vector<1x16x128xf32>
    %522 = arith.addf %520, %521 : vector<1x16x128xf32>
    %c0_441 = arith.constant 0 : index
    %c128_442 = arith.constant 128 : index
    %c0_443 = arith.constant 0 : index
    %523 = vector.load %arg4[%c0_441, %c128_442, %c0_443] : memref<1x336x128xf32, #tpu.memory_space<vmem>>, vector<1x16x128xf32>
    tpu.vector_store %arg4[%c0_441, %c128_442, %c0_443], %522 {strides = array<i32>} : memref<1x336x128xf32, #tpu.memory_space<vmem>>, vector<1x16x128xf32>,
    %c0_444 = arith.constant 0 : index
    %c8_445 = arith.constant 8 : index
    %c0_446 = arith.constant 0 : index
    %c0_447 = arith.constant 0 : index
    %524 = vector.load %arg5[%c0_444, %c8_445, %c0_446, %c0_447] : memref<1x16x18x128xf32, #tpu.memory_space<vmem>>, vector<1x1x16x128xf32>
    %525 = vector.shape_cast %524 : vector<1x1x16x128xf32> to vector<1x16x128xf32>
    %526 = vector.shape_cast %6 : vector<16x128xf32> to vector<1x16x128xf32>
    %527 = arith.mulf %525, %526 : vector<1x16x128xf32>
    %c0_448 = arith.constant 0 : index
    %c8_449 = arith.constant 8 : index
    %c1_450 = arith.constant 1 : index
    %c0_451 = arith.constant 0 : index
    %528 = vector.load %arg5[%c0_448, %c8_449, %c1_450, %c0_451] : memref<1x16x18x128xf32, #tpu.memory_space<vmem>>, vector<1x1x16x128xf32>
    %529 = vector.shape_cast %528 : vector<1x1x16x128xf32> to vector<1x16x128xf32>
    %530 = vector.shape_cast %11 : vector<16x128xf32> to vector<1x16x128xf32>
    %531 = arith.mulf %529, %530 : vector<1x16x128xf32>
    %532 = arith.addf %527, %531 : vector<1x16x128xf32>
    %c0_452 = arith.constant 0 : index
    %c8_453 = arith.constant 8 : index
    %c2_454 = arith.constant 2 : index
    %c0_455 = arith.constant 0 : index
    %533 = vector.load %arg5[%c0_452, %c8_453, %c2_454, %c0_455] : memref<1x16x18x128xf32, #tpu.memory_space<vmem>>, vector<1x1x16x128xf32>
    %534 = vector.shape_cast %533 : vector<1x1x16x128xf32> to vector<1x16x128xf32>
    %535 = vector.shape_cast %16 : vector<16x128xf32> to vector<1x16x128xf32>
    %536 = arith.mulf %534, %535 : vector<1x16x128xf32>
    %537 = arith.addf %532, %536 : vector<1x16x128xf32>
    %c0_456 = arith.constant 0 : index
    %c9_457 = arith.constant 9 : index
    %c0_458 = arith.constant 0 : index
    %c0_459 = arith.constant 0 : index
    %538 = vector.load %arg5[%c0_456, %c9_457, %c0_458, %c0_459] : memref<1x16x18x128xf32, #tpu.memory_space<vmem>>, vector<1x1x16x128xf32>
    %539 = vector.shape_cast %538 : vector<1x1x16x128xf32> to vector<1x16x128xf32>
    %540 = vector.shape_cast %21 : vector<16x128xf32> to vector<1x16x128xf32>
    %541 = arith.mulf %539, %540 : vector<1x16x128xf32>
    %542 = arith.addf %537, %541 : vector<1x16x128xf32>
    %c0_460 = arith.constant 0 : index
    %c9_461 = arith.constant 9 : index
    %c1_462 = arith.constant 1 : index
    %c0_463 = arith.constant 0 : index
    %543 = vector.load %arg5[%c0_460, %c9_461, %c1_462, %c0_463] : memref<1x16x18x128xf32, #tpu.memory_space<vmem>>, vector<1x1x16x128xf32>
    %544 = vector.shape_cast %543 : vector<1x1x16x128xf32> to vector<1x16x128xf32>
    %545 = vector.shape_cast %26 : vector<16x128xf32> to vector<1x16x128xf32>
    %546 = arith.mulf %544, %545 : vector<1x16x128xf32>
    %547 = arith.addf %542, %546 : vector<1x16x128xf32>
    %c0_464 = arith.constant 0 : index
    %c9_465 = arith.constant 9 : index
    %c2_466 = arith.constant 2 : index
    %c0_467 = arith.constant 0 : index
    %548 = vector.load %arg5[%c0_464, %c9_465, %c2_466, %c0_467] : memref<1x16x18x128xf32, #tpu.memory_space<vmem>>, vector<1x1x16x128xf32>
    %549 = vector.shape_cast %548 : vector<1x1x16x128xf32> to vector<1x16x128xf32>
    %550 = vector.shape_cast %31 : vector<16x128xf32> to vector<1x16x128xf32>
    %551 = arith.mulf %549, %550 : vector<1x16x128xf32>
    %552 = arith.addf %547, %551 : vector<1x16x128xf32>
    %c0_468 = arith.constant 0 : index
    %c10_469 = arith.constant 10 : index
    %c0_470 = arith.constant 0 : index
    %c0_471 = arith.constant 0 : index
    %553 = vector.load %arg5[%c0_468, %c10_469, %c0_470, %c0_471] : memref<1x16x18x128xf32, #tpu.memory_space<vmem>>, vector<1x1x16x128xf32>
    %554 = vector.shape_cast %553 : vector<1x1x16x128xf32> to vector<1x16x128xf32>
    %555 = vector.shape_cast %36 : vector<16x128xf32> to vector<1x16x128xf32>
    %556 = arith.mulf %554, %555 : vector<1x16x128xf32>
    %557 = arith.addf %552, %556 : vector<1x16x128xf32>
    %c0_472 = arith.constant 0 : index
    %c10_473 = arith.constant 10 : index
    %c1_474 = arith.constant 1 : index
    %c0_475 = arith.constant 0 : index
    %558 = vector.load %arg5[%c0_472, %c10_473, %c1_474, %c0_475] : memref<1x16x18x128xf32, #tpu.memory_space<vmem>>, vector<1x1x16x128xf32>
    %559 = vector.shape_cast %558 : vector<1x1x16x128xf32> to vector<1x16x128xf32>
    %560 = vector.shape_cast %41 : vector<16x128xf32> to vector<1x16x128xf32>
    %561 = arith.mulf %559, %560 : vector<1x16x128xf32>
    %562 = arith.addf %557, %561 : vector<1x16x128xf32>
    %c0_476 = arith.constant 0 : index
    %c10_477 = arith.constant 10 : index
    %c2_478 = arith.constant 2 : index
    %c0_479 = arith.constant 0 : index
    %563 = vector.load %arg5[%c0_476, %c10_477, %c2_478, %c0_479] : memref<1x16x18x128xf32, #tpu.memory_space<vmem>>, vector<1x1x16x128xf32>
    %564 = vector.shape_cast %563 : vector<1x1x16x128xf32> to vector<1x16x128xf32>
    %565 = vector.shape_cast %46 : vector<16x128xf32> to vector<1x16x128xf32>
    %566 = arith.mulf %564, %565 : vector<1x16x128xf32>
    %567 = arith.addf %562, %566 : vector<1x16x128xf32>
    %568 = vector.shape_cast %49 : vector<16x128xf32> to vector<1x16x128xf32>
    %569 = arith.addf %567, %568 : vector<1x16x128xf32>
    %c0_480 = arith.constant 0 : index
    %c144_481 = arith.constant 144 : index
    %c0_482 = arith.constant 0 : index
    %570 = vector.load %arg4[%c0_480, %c144_481, %c0_482] : memref<1x336x128xf32, #tpu.memory_space<vmem>>, vector<1x16x128xf32>
    tpu.vector_store %arg4[%c0_480, %c144_481, %c0_482], %569 {strides = array<i32>} : memref<1x336x128xf32, #tpu.memory_space<vmem>>, vector<1x16x128xf32>,
    %c0_483 = arith.constant 0 : index
    %c9_484 = arith.constant 9 : index
    %c0_485 = arith.constant 0 : index
    %c0_486 = arith.constant 0 : index
    %571 = vector.load %arg5[%c0_483, %c9_484, %c0_485, %c0_486] : memref<1x16x18x128xf32, #tpu.memory_space<vmem>>, vector<1x1x16x128xf32>
    %572 = vector.shape_cast %571 : vector<1x1x16x128xf32> to vector<1x16x128xf32>
    %573 = vector.shape_cast %6 : vector<16x128xf32> to vector<1x16x128xf32>
    %574 = arith.mulf %572, %573 : vector<1x16x128xf32>
    %c0_487 = arith.constant 0 : index
    %c9_488 = arith.constant 9 : index
    %c1_489 = arith.constant 1 : index
    %c0_490 = arith.constant 0 : index
    %575 = vector.load %arg5[%c0_487, %c9_488, %c1_489, %c0_490] : memref<1x16x18x128xf32, #tpu.memory_space<vmem>>, vector<1x1x16x128xf32>
    %576 = vector.shape_cast %575 : vector<1x1x16x128xf32> to vector<1x16x128xf32>
    %577 = vector.shape_cast %11 : vector<16x128xf32> to vector<1x16x128xf32>
    %578 = arith.mulf %576, %577 : vector<1x16x128xf32>
    %579 = arith.addf %574, %578 : vector<1x16x128xf32>
    %c0_491 = arith.constant 0 : index
    %c9_492 = arith.constant 9 : index
    %c2_493 = arith.constant 2 : index
    %c0_494 = arith.constant 0 : index
    %580 = vector.load %arg5[%c0_491, %c9_492, %c2_493, %c0_494] : memref<1x16x18x128xf32, #tpu.memory_space<vmem>>, vector<1x1x16x128xf32>
    %581 = vector.shape_cast %580 : vector<1x1x16x128xf32> to vector<1x16x128xf32>
    %582 = vector.shape_cast %16 : vector<16x128xf32> to vector<1x16x128xf32>
    %583 = arith.mulf %581, %582 : vector<1x16x128xf32>
    %584 = arith.addf %579, %583 : vector<1x16x128xf32>
    %c0_495 = arith.constant 0 : index
    %c10_496 = arith.constant 10 : index
    %c0_497 = arith.constant 0 : index
    %c0_498 = arith.constant 0 : index
    %585 = vector.load %arg5[%c0_495, %c10_496, %c0_497, %c0_498] : memref<1x16x18x128xf32, #tpu.memory_space<vmem>>, vector<1x1x16x128xf32>
    %586 = vector.shape_cast %585 : vector<1x1x16x128xf32> to vector<1x16x128xf32>
    %587 = vector.shape_cast %21 : vector<16x128xf32> to vector<1x16x128xf32>
    %588 = arith.mulf %586, %587 : vector<1x16x128xf32>
    %589 = arith.addf %584, %588 : vector<1x16x128xf32>
    %c0_499 = arith.constant 0 : index
    %c10_500 = arith.constant 10 : index
    %c1_501 = arith.constant 1 : index
    %c0_502 = arith.constant 0 : index
    %590 = vector.load %arg5[%c0_499, %c10_500, %c1_501, %c0_502] : memref<1x16x18x128xf32, #tpu.memory_space<vmem>>, vector<1x1x16x128xf32>
    %591 = vector.shape_cast %590 : vector<1x1x16x128xf32> to vector<1x16x128xf32>
    %592 = vector.shape_cast %26 : vector<16x128xf32> to vector<1x16x128xf32>
    %593 = arith.mulf %591, %592 : vector<1x16x128xf32>
    %594 = arith.addf %589, %593 : vector<1x16x128xf32>
    %c0_503 = arith.constant 0 : index
    %c10_504 = arith.constant 10 : index
    %c2_505 = arith.constant 2 : index
    %c0_506 = arith.constant 0 : index
    %595 = vector.load %arg5[%c0_503, %c10_504, %c2_505, %c0_506] : memref<1x16x18x128xf32, #tpu.memory_space<vmem>>, vector<1x1x16x128xf32>
    %596 = vector.shape_cast %595 : vector<1x1x16x128xf32> to vector<1x16x128xf32>
    %597 = vector.shape_cast %31 : vector<16x128xf32> to vector<1x16x128xf32>
    %598 = arith.mulf %596, %597 : vector<1x16x128xf32>
    %599 = arith.addf %594, %598 : vector<1x16x128xf32>
    %c0_507 = arith.constant 0 : index
    %c11_508 = arith.constant 11 : index
    %c0_509 = arith.constant 0 : index
    %c0_510 = arith.constant 0 : index
    %600 = vector.load %arg5[%c0_507, %c11_508, %c0_509, %c0_510] : memref<1x16x18x128xf32, #tpu.memory_space<vmem>>, vector<1x1x16x128xf32>
    %601 = vector.shape_cast %600 : vector<1x1x16x128xf32> to vector<1x16x128xf32>
    %602 = vector.shape_cast %36 : vector<16x128xf32> to vector<1x16x128xf32>
    %603 = arith.mulf %601, %602 : vector<1x16x128xf32>
    %604 = arith.addf %599, %603 : vector<1x16x128xf32>
    %c0_511 = arith.constant 0 : index
    %c11_512 = arith.constant 11 : index
    %c1_513 = arith.constant 1 : index
    %c0_514 = arith.constant 0 : index
    %605 = vector.load %arg5[%c0_511, %c11_512, %c1_513, %c0_514] : memref<1x16x18x128xf32, #tpu.memory_space<vmem>>, vector<1x1x16x128xf32>
    %606 = vector.shape_cast %605 : vector<1x1x16x128xf32> to vector<1x16x128xf32>
    %607 = vector.shape_cast %41 : vector<16x128xf32> to vector<1x16x128xf32>
    %608 = arith.mulf %606, %607 : vector<1x16x128xf32>
    %609 = arith.addf %604, %608 : vector<1x16x128xf32>
    %c0_515 = arith.constant 0 : index
    %c11_516 = arith.constant 11 : index
    %c2_517 = arith.constant 2 : index
    %c0_518 = arith.constant 0 : index
    %610 = vector.load %arg5[%c0_515, %c11_516, %c2_517, %c0_518] : memref<1x16x18x128xf32, #tpu.memory_space<vmem>>, vector<1x1x16x128xf32>
    %611 = vector.shape_cast %610 : vector<1x1x16x128xf32> to vector<1x16x128xf32>
    %612 = vector.shape_cast %46 : vector<16x128xf32> to vector<1x16x128xf32>
    %613 = arith.mulf %611, %612 : vector<1x16x128xf32>
    %614 = arith.addf %609, %613 : vector<1x16x128xf32>
    %615 = vector.shape_cast %49 : vector<16x128xf32> to vector<1x16x128xf32>
    %616 = arith.addf %614, %615 : vector<1x16x128xf32>
    %c0_519 = arith.constant 0 : index
    %c160_520 = arith.constant 160 : index
    %c0_521 = arith.constant 0 : index
    %617 = vector.load %arg4[%c0_519, %c160_520, %c0_521] : memref<1x336x128xf32, #tpu.memory_space<vmem>>, vector<1x16x128xf32>
    tpu.vector_store %arg4[%c0_519, %c160_520, %c0_521], %616 {strides = array<i32>} : memref<1x336x128xf32, #tpu.memory_space<vmem>>, vector<1x16x128xf32>,
    %c0_522 = arith.constant 0 : index
    %c10_523 = arith.constant 10 : index
    %c0_524 = arith.constant 0 : index
    %c0_525 = arith.constant 0 : index
    %618 = vector.load %arg5[%c0_522, %c10_523, %c0_524, %c0_525] : memref<1x16x18x128xf32, #tpu.memory_space<vmem>>, vector<1x1x16x128xf32>
    %619 = vector.shape_cast %618 : vector<1x1x16x128xf32> to vector<1x16x128xf32>
    %620 = vector.shape_cast %6 : vector<16x128xf32> to vector<1x16x128xf32>
    %621 = arith.mulf %619, %620 : vector<1x16x128xf32>
    %c0_526 = arith.constant 0 : index
    %c10_527 = arith.constant 10 : index
    %c1_528 = arith.constant 1 : index
    %c0_529 = arith.constant 0 : index
    %622 = vector.load %arg5[%c0_526, %c10_527, %c1_528, %c0_529] : memref<1x16x18x128xf32, #tpu.memory_space<vmem>>, vector<1x1x16x128xf32>
    %623 = vector.shape_cast %622 : vector<1x1x16x128xf32> to vector<1x16x128xf32>
    %624 = vector.shape_cast %11 : vector<16x128xf32> to vector<1x16x128xf32>
    %625 = arith.mulf %623, %624 : vector<1x16x128xf32>
    %626 = arith.addf %621, %625 : vector<1x16x128xf32>
    %c0_530 = arith.constant 0 : index
    %c10_531 = arith.constant 10 : index
    %c2_532 = arith.constant 2 : index
    %c0_533 = arith.constant 0 : index
    %627 = vector.load %arg5[%c0_530, %c10_531, %c2_532, %c0_533] : memref<1x16x18x128xf32, #tpu.memory_space<vmem>>, vector<1x1x16x128xf32>
    %628 = vector.shape_cast %627 : vector<1x1x16x128xf32> to vector<1x16x128xf32>
    %629 = vector.shape_cast %16 : vector<16x128xf32> to vector<1x16x128xf32>
    %630 = arith.mulf %628, %629 : vector<1x16x128xf32>
    %631 = arith.addf %626, %630 : vector<1x16x128xf32>
    %c0_534 = arith.constant 0 : index
    %c11_535 = arith.constant 11 : index
    %c0_536 = arith.constant 0 : index
    %c0_537 = arith.constant 0 : index
    %632 = vector.load %arg5[%c0_534, %c11_535, %c0_536, %c0_537] : memref<1x16x18x128xf32, #tpu.memory_space<vmem>>, vector<1x1x16x128xf32>
    %633 = vector.shape_cast %632 : vector<1x1x16x128xf32> to vector<1x16x128xf32>
    %634 = vector.shape_cast %21 : vector<16x128xf32> to vector<1x16x128xf32>
    %635 = arith.mulf %633, %634 : vector<1x16x128xf32>
    %636 = arith.addf %631, %635 : vector<1x16x128xf32>
    %c0_538 = arith.constant 0 : index
    %c11_539 = arith.constant 11 : index
    %c1_540 = arith.constant 1 : index
    %c0_541 = arith.constant 0 : index
    %637 = vector.load %arg5[%c0_538, %c11_539, %c1_540, %c0_541] : memref<1x16x18x128xf32, #tpu.memory_space<vmem>>, vector<1x1x16x128xf32>
    %638 = vector.shape_cast %637 : vector<1x1x16x128xf32> to vector<1x16x128xf32>
    %639 = vector.shape_cast %26 : vector<16x128xf32> to vector<1x16x128xf32>
    %640 = arith.mulf %638, %639 : vector<1x16x128xf32>
    %641 = arith.addf %636, %640 : vector<1x16x128xf32>
    %c0_542 = arith.constant 0 : index
    %c11_543 = arith.constant 11 : index
    %c2_544 = arith.constant 2 : index
    %c0_545 = arith.constant 0 : index
    %642 = vector.load %arg5[%c0_542, %c11_543, %c2_544, %c0_545] : memref<1x16x18x128xf32, #tpu.memory_space<vmem>>, vector<1x1x16x128xf32>
    %643 = vector.shape_cast %642 : vector<1x1x16x128xf32> to vector<1x16x128xf32>
    %644 = vector.shape_cast %31 : vector<16x128xf32> to vector<1x16x128xf32>
    %645 = arith.mulf %643, %644 : vector<1x16x128xf32>
    %646 = arith.addf %641, %645 : vector<1x16x128xf32>
    %c0_546 = arith.constant 0 : index
    %c12_547 = arith.constant 12 : index
    %c0_548 = arith.constant 0 : index
    %c0_549 = arith.constant 0 : index
    %647 = vector.load %arg5[%c0_546, %c12_547, %c0_548, %c0_549] : memref<1x16x18x128xf32, #tpu.memory_space<vmem>>, vector<1x1x16x128xf32>
    %648 = vector.shape_cast %647 : vector<1x1x16x128xf32> to vector<1x16x128xf32>
    %649 = vector.shape_cast %36 : vector<16x128xf32> to vector<1x16x128xf32>
    %650 = arith.mulf %648, %649 : vector<1x16x128xf32>
    %651 = arith.addf %646, %650 : vector<1x16x128xf32>
    %c0_550 = arith.constant 0 : index
    %c12_551 = arith.constant 12 : index
    %c1_552 = arith.constant 1 : index
    %c0_553 = arith.constant 0 : index
    %652 = vector.load %arg5[%c0_550, %c12_551, %c1_552, %c0_553] : memref<1x16x18x128xf32, #tpu.memory_space<vmem>>, vector<1x1x16x128xf32>
    %653 = vector.shape_cast %652 : vector<1x1x16x128xf32> to vector<1x16x128xf32>
    %654 = vector.shape_cast %41 : vector<16x128xf32> to vector<1x16x128xf32>
    %655 = arith.mulf %653, %654 : vector<1x16x128xf32>
    %656 = arith.addf %651, %655 : vector<1x16x128xf32>
    %c0_554 = arith.constant 0 : index
    %c12_555 = arith.constant 12 : index
    %c2_556 = arith.constant 2 : index
    %c0_557 = arith.constant 0 : index
    %657 = vector.load %arg5[%c0_554, %c12_555, %c2_556, %c0_557] : memref<1x16x18x128xf32, #tpu.memory_space<vmem>>, vector<1x1x16x128xf32>
    %658 = vector.shape_cast %657 : vector<1x1x16x128xf32> to vector<1x16x128xf32>
    %659 = vector.shape_cast %46 : vector<16x128xf32> to vector<1x16x128xf32>
    %660 = arith.mulf %658, %659 : vector<1x16x128xf32>
    %661 = arith.addf %656, %660 : vector<1x16x128xf32>
    %662 = vector.shape_cast %49 : vector<16x128xf32> to vector<1x16x128xf32>
    %663 = arith.addf %661, %662 : vector<1x16x128xf32>
    %c0_558 = arith.constant 0 : index
    %c176_559 = arith.constant 176 : index
    %c0_560 = arith.constant 0 : index
    %664 = vector.load %arg4[%c0_558, %c176_559, %c0_560] : memref<1x336x128xf32, #tpu.memory_space<vmem>>, vector<1x16x128xf32>
    tpu.vector_store %arg4[%c0_558, %c176_559, %c0_560], %663 {strides = array<i32>} : memref<1x336x128xf32, #tpu.memory_space<vmem>>, vector<1x16x128xf32>,
    %c0_561 = arith.constant 0 : index
    %c11_562 = arith.constant 11 : index
    %c0_563 = arith.constant 0 : index
    %c0_564 = arith.constant 0 : index
    %665 = vector.load %arg5[%c0_561, %c11_562, %c0_563, %c0_564] : memref<1x16x18x128xf32, #tpu.memory_space<vmem>>, vector<1x1x16x128xf32>
    %666 = vector.shape_cast %665 : vector<1x1x16x128xf32> to vector<1x16x128xf32>
    %667 = vector.shape_cast %6 : vector<16x128xf32> to vector<1x16x128xf32>
    %668 = arith.mulf %666, %667 : vector<1x16x128xf32>
    %c0_565 = arith.constant 0 : index
    %c11_566 = arith.constant 11 : index
    %c1_567 = arith.constant 1 : index
    %c0_568 = arith.constant 0 : index
    %669 = vector.load %arg5[%c0_565, %c11_566, %c1_567, %c0_568] : memref<1x16x18x128xf32, #tpu.memory_space<vmem>>, vector<1x1x16x128xf32>
    %670 = vector.shape_cast %669 : vector<1x1x16x128xf32> to vector<1x16x128xf32>
    %671 = vector.shape_cast %11 : vector<16x128xf32> to vector<1x16x128xf32>
    %672 = arith.mulf %670, %671 : vector<1x16x128xf32>
    %673 = arith.addf %668, %672 : vector<1x16x128xf32>
    %c0_569 = arith.constant 0 : index
    %c11_570 = arith.constant 11 : index
    %c2_571 = arith.constant 2 : index
    %c0_572 = arith.constant 0 : index
    %674 = vector.load %arg5[%c0_569, %c11_570, %c2_571, %c0_572] : memref<1x16x18x128xf32, #tpu.memory_space<vmem>>, vector<1x1x16x128xf32>
    %675 = vector.shape_cast %674 : vector<1x1x16x128xf32> to vector<1x16x128xf32>
    %676 = vector.shape_cast %16 : vector<16x128xf32> to vector<1x16x128xf32>
    %677 = arith.mulf %675, %676 : vector<1x16x128xf32>
    %678 = arith.addf %673, %677 : vector<1x16x128xf32>
    %c0_573 = arith.constant 0 : index
    %c12_574 = arith.constant 12 : index
    %c0_575 = arith.constant 0 : index
    %c0_576 = arith.constant 0 : index
    %679 = vector.load %arg5[%c0_573, %c12_574, %c0_575, %c0_576] : memref<1x16x18x128xf32, #tpu.memory_space<vmem>>, vector<1x1x16x128xf32>
    %680 = vector.shape_cast %679 : vector<1x1x16x128xf32> to vector<1x16x128xf32>
    %681 = vector.shape_cast %21 : vector<16x128xf32> to vector<1x16x128xf32>
    %682 = arith.mulf %680, %681 : vector<1x16x128xf32>
    %683 = arith.addf %678, %682 : vector<1x16x128xf32>
    %c0_577 = arith.constant 0 : index
    %c12_578 = arith.constant 12 : index
    %c1_579 = arith.constant 1 : index
    %c0_580 = arith.constant 0 : index
    %684 = vector.load %arg5[%c0_577, %c12_578, %c1_579, %c0_580] : memref<1x16x18x128xf32, #tpu.memory_space<vmem>>, vector<1x1x16x128xf32>
    %685 = vector.shape_cast %684 : vector<1x1x16x128xf32> to vector<1x16x128xf32>
    %686 = vector.shape_cast %26 : vector<16x128xf32> to vector<1x16x128xf32>
    %687 = arith.mulf %685, %686 : vector<1x16x128xf32>
    %688 = arith.addf %683, %687 : vector<1x16x128xf32>
    %c0_581 = arith.constant 0 : index
    %c12_582 = arith.constant 12 : index
    %c2_583 = arith.constant 2 : index
    %c0_584 = arith.constant 0 : index
    %689 = vector.load %arg5[%c0_581, %c12_582, %c2_583, %c0_584] : memref<1x16x18x128xf32, #tpu.memory_space<vmem>>, vector<1x1x16x128xf32>
    %690 = vector.shape_cast %689 : vector<1x1x16x128xf32> to vector<1x16x128xf32>
    %691 = vector.shape_cast %31 : vector<16x128xf32> to vector<1x16x128xf32>
    %692 = arith.mulf %690, %691 : vector<1x16x128xf32>
    %693 = arith.addf %688, %692 : vector<1x16x128xf32>
    %c0_585 = arith.constant 0 : index
    %c13_586 = arith.constant 13 : index
    %c0_587 = arith.constant 0 : index
    %c0_588 = arith.constant 0 : index
    %694 = vector.load %arg5[%c0_585, %c13_586, %c0_587, %c0_588] : memref<1x16x18x128xf32, #tpu.memory_space<vmem>>, vector<1x1x16x128xf32>
    %695 = vector.shape_cast %694 : vector<1x1x16x128xf32> to vector<1x16x128xf32>
    %696 = vector.shape_cast %36 : vector<16x128xf32> to vector<1x16x128xf32>
    %697 = arith.mulf %695, %696 : vector<1x16x128xf32>
    %698 = arith.addf %693, %697 : vector<1x16x128xf32>
    %c0_589 = arith.constant 0 : index
    %c13_590 = arith.constant 13 : index
    %c1_591 = arith.constant 1 : index
    %c0_592 = arith.constant 0 : index
    %699 = vector.load %arg5[%c0_589, %c13_590, %c1_591, %c0_592] : memref<1x16x18x128xf32, #tpu.memory_space<vmem>>, vector<1x1x16x128xf32>
    %700 = vector.shape_cast %699 : vector<1x1x16x128xf32> to vector<1x16x128xf32>
    %701 = vector.shape_cast %41 : vector<16x128xf32> to vector<1x16x128xf32>
    %702 = arith.mulf %700, %701 : vector<1x16x128xf32>
    %703 = arith.addf %698, %702 : vector<1x16x128xf32>
    %c0_593 = arith.constant 0 : index
    %c13_594 = arith.constant 13 : index
    %c2_595 = arith.constant 2 : index
    %c0_596 = arith.constant 0 : index
    %704 = vector.load %arg5[%c0_593, %c13_594, %c2_595, %c0_596] : memref<1x16x18x128xf32, #tpu.memory_space<vmem>>, vector<1x1x16x128xf32>
    %705 = vector.shape_cast %704 : vector<1x1x16x128xf32> to vector<1x16x128xf32>
    %706 = vector.shape_cast %46 : vector<16x128xf32> to vector<1x16x128xf32>
    %707 = arith.mulf %705, %706 : vector<1x16x128xf32>
    %708 = arith.addf %703, %707 : vector<1x16x128xf32>
    %709 = vector.shape_cast %49 : vector<16x128xf32> to vector<1x16x128xf32>
    %710 = arith.addf %708, %709 : vector<1x16x128xf32>
    %c0_597 = arith.constant 0 : index
    %c192_598 = arith.constant 192 : index
    %c0_599 = arith.constant 0 : index
    %711 = vector.load %arg4[%c0_597, %c192_598, %c0_599] : memref<1x336x128xf32, #tpu.memory_space<vmem>>, vector<1x16x128xf32>
    tpu.vector_store %arg4[%c0_597, %c192_598, %c0_599], %710 {strides = array<i32>} : memref<1x336x128xf32, #tpu.memory_space<vmem>>, vector<1x16x128xf32>,
    %c0_600 = arith.constant 0 : index
    %c12_601 = arith.constant 12 : index
    %c0_602 = arith.constant 0 : index
    %c0_603 = arith.constant 0 : index
    %712 = vector.load %arg5[%c0_600, %c12_601, %c0_602, %c0_603] : memref<1x16x18x128xf32, #tpu.memory_space<vmem>>, vector<1x1x16x128xf32>
    %713 = vector.shape_cast %712 : vector<1x1x16x128xf32> to vector<1x16x128xf32>
    %714 = vector.shape_cast %6 : vector<16x128xf32> to vector<1x16x128xf32>
    %715 = arith.mulf %713, %714 : vector<1x16x128xf32>
    %c0_604 = arith.constant 0 : index
    %c12_605 = arith.constant 12 : index
    %c1_606 = arith.constant 1 : index
    %c0_607 = arith.constant 0 : index
    %716 = vector.load %arg5[%c0_604, %c12_605, %c1_606, %c0_607] : memref<1x16x18x128xf32, #tpu.memory_space<vmem>>, vector<1x1x16x128xf32>
    %717 = vector.shape_cast %716 : vector<1x1x16x128xf32> to vector<1x16x128xf32>
    %718 = vector.shape_cast %11 : vector<16x128xf32> to vector<1x16x128xf32>
    %719 = arith.mulf %717, %718 : vector<1x16x128xf32>
    %720 = arith.addf %715, %719 : vector<1x16x128xf32>
    %c0_608 = arith.constant 0 : index
    %c12_609 = arith.constant 12 : index
    %c2_610 = arith.constant 2 : index
    %c0_611 = arith.constant 0 : index
    %721 = vector.load %arg5[%c0_608, %c12_609, %c2_610, %c0_611] : memref<1x16x18x128xf32, #tpu.memory_space<vmem>>, vector<1x1x16x128xf32>
    %722 = vector.shape_cast %721 : vector<1x1x16x128xf32> to vector<1x16x128xf32>
    %723 = vector.shape_cast %16 : vector<16x128xf32> to vector<1x16x128xf32>
    %724 = arith.mulf %722, %723 : vector<1x16x128xf32>
    %725 = arith.addf %720, %724 : vector<1x16x128xf32>
    %c0_612 = arith.constant 0 : index
    %c13_613 = arith.constant 13 : index
    %c0_614 = arith.constant 0 : index
    %c0_615 = arith.constant 0 : index
    %726 = vector.load %arg5[%c0_612, %c13_613, %c0_614, %c0_615] : memref<1x16x18x128xf32, #tpu.memory_space<vmem>>, vector<1x1x16x128xf32>
    %727 = vector.shape_cast %726 : vector<1x1x16x128xf32> to vector<1x16x128xf32>
    %728 = vector.shape_cast %21 : vector<16x128xf32> to vector<1x16x128xf32>
    %729 = arith.mulf %727, %728 : vector<1x16x128xf32>
    %730 = arith.addf %725, %729 : vector<1x16x128xf32>
    %c0_616 = arith.constant 0 : index
    %c13_617 = arith.constant 13 : index
    %c1_618 = arith.constant 1 : index
    %c0_619 = arith.constant 0 : index
    %731 = vector.load %arg5[%c0_616, %c13_617, %c1_618, %c0_619] : memref<1x16x18x128xf32, #tpu.memory_space<vmem>>, vector<1x1x16x128xf32>
    %732 = vector.shape_cast %731 : vector<1x1x16x128xf32> to vector<1x16x128xf32>
    %733 = vector.shape_cast %26 : vector<16x128xf32> to vector<1x16x128xf32>
    %734 = arith.mulf %732, %733 : vector<1x16x128xf32>
    %735 = arith.addf %730, %734 : vector<1x16x128xf32>
    %c0_620 = arith.constant 0 : index
    %c13_621 = arith.constant 13 : index
    %c2_622 = arith.constant 2 : index
    %c0_623 = arith.constant 0 : index
    %736 = vector.load %arg5[%c0_620, %c13_621, %c2_622, %c0_623] : memref<1x16x18x128xf32, #tpu.memory_space<vmem>>, vector<1x1x16x128xf32>
    %737 = vector.shape_cast %736 : vector<1x1x16x128xf32> to vector<1x16x128xf32>
    %738 = vector.shape_cast %31 : vector<16x128xf32> to vector<1x16x128xf32>
    %739 = arith.mulf %737, %738 : vector<1x16x128xf32>
    %740 = arith.addf %735, %739 : vector<1x16x128xf32>
    %c0_624 = arith.constant 0 : index
    %c14_625 = arith.constant 14 : index
    %c0_626 = arith.constant 0 : index
    %c0_627 = arith.constant 0 : index
    %741 = vector.load %arg5[%c0_624, %c14_625, %c0_626, %c0_627] : memref<1x16x18x128xf32, #tpu.memory_space<vmem>>, vector<1x1x16x128xf32>
    %742 = vector.shape_cast %741 : vector<1x1x16x128xf32> to vector<1x16x128xf32>
    %743 = vector.shape_cast %36 : vector<16x128xf32> to vector<1x16x128xf32>
    %744 = arith.mulf %742, %743 : vector<1x16x128xf32>
    %745 = arith.addf %740, %744 : vector<1x16x128xf32>
    %c0_628 = arith.constant 0 : index
    %c14_629 = arith.constant 14 : index
    %c1_630 = arith.constant 1 : index
    %c0_631 = arith.constant 0 : index
    %746 = vector.load %arg5[%c0_628, %c14_629, %c1_630, %c0_631] : memref<1x16x18x128xf32, #tpu.memory_space<vmem>>, vector<1x1x16x128xf32>
    %747 = vector.shape_cast %746 : vector<1x1x16x128xf32> to vector<1x16x128xf32>
    %748 = vector.shape_cast %41 : vector<16x128xf32> to vector<1x16x128xf32>
    %749 = arith.mulf %747, %748 : vector<1x16x128xf32>
    %750 = arith.addf %745, %749 : vector<1x16x128xf32>
    %c0_632 = arith.constant 0 : index
    %c14_633 = arith.constant 14 : index
    %c2_634 = arith.constant 2 : index
    %c0_635 = arith.constant 0 : index
    %751 = vector.load %arg5[%c0_632, %c14_633, %c2_634, %c0_635] : memref<1x16x18x128xf32, #tpu.memory_space<vmem>>, vector<1x1x16x128xf32>
    %752 = vector.shape_cast %751 : vector<1x1x16x128xf32> to vector<1x16x128xf32>
    %753 = vector.shape_cast %46 : vector<16x128xf32> to vector<1x16x128xf32>
    %754 = arith.mulf %752, %753 : vector<1x16x128xf32>
    %755 = arith.addf %750, %754 : vector<1x16x128xf32>
    %756 = vector.shape_cast %49 : vector<16x128xf32> to vector<1x16x128xf32>
    %757 = arith.addf %755, %756 : vector<1x16x128xf32>
    %c0_636 = arith.constant 0 : index
    %c208_637 = arith.constant 208 : index
    %c0_638 = arith.constant 0 : index
    %758 = vector.load %arg4[%c0_636, %c208_637, %c0_638] : memref<1x336x128xf32, #tpu.memory_space<vmem>>, vector<1x16x128xf32>
    tpu.vector_store %arg4[%c0_636, %c208_637, %c0_638], %757 {strides = array<i32>} : memref<1x336x128xf32, #tpu.memory_space<vmem>>, vector<1x16x128xf32>,
    %c0_639 = arith.constant 0 : index
    %c13_640 = arith.constant 13 : index
    %c0_641 = arith.constant 0 : index
    %c0_642 = arith.constant 0 : index
    %759 = vector.load %arg5[%c0_639, %c13_640, %c0_641, %c0_642] : memref<1x16x18x128xf32, #tpu.memory_space<vmem>>, vector<1x1x16x128xf32>
    %760 = vector.shape_cast %759 : vector<1x1x16x128xf32> to vector<1x16x128xf32>
    %761 = vector.shape_cast %6 : vector<16x128xf32> to vector<1x16x128xf32>
    %762 = arith.mulf %760, %761 : vector<1x16x128xf32>
    %c0_643 = arith.constant 0 : index
    %c13_644 = arith.constant 13 : index
    %c1_645 = arith.constant 1 : index
    %c0_646 = arith.constant 0 : index
    %763 = vector.load %arg5[%c0_643, %c13_644, %c1_645, %c0_646] : memref<1x16x18x128xf32, #tpu.memory_space<vmem>>, vector<1x1x16x128xf32>
    %764 = vector.shape_cast %763 : vector<1x1x16x128xf32> to vector<1x16x128xf32>
    %765 = vector.shape_cast %11 : vector<16x128xf32> to vector<1x16x128xf32>
    %766 = arith.mulf %764, %765 : vector<1x16x128xf32>
    %767 = arith.addf %762, %766 : vector<1x16x128xf32>
    %c0_647 = arith.constant 0 : index
    %c13_648 = arith.constant 13 : index
    %c2_649 = arith.constant 2 : index
    %c0_650 = arith.constant 0 : index
    %768 = vector.load %arg5[%c0_647, %c13_648, %c2_649, %c0_650] : memref<1x16x18x128xf32, #tpu.memory_space<vmem>>, vector<1x1x16x128xf32>
    %769 = vector.shape_cast %768 : vector<1x1x16x128xf32> to vector<1x16x128xf32>
    %770 = vector.shape_cast %16 : vector<16x128xf32> to vector<1x16x128xf32>
    %771 = arith.mulf %769, %770 : vector<1x16x128xf32>
    %772 = arith.addf %767, %771 : vector<1x16x128xf32>
    %c0_651 = arith.constant 0 : index
    %c14_652 = arith.constant 14 : index
    %c0_653 = arith.constant 0 : index
    %c0_654 = arith.constant 0 : index
    %773 = vector.load %arg5[%c0_651, %c14_652, %c0_653, %c0_654] : memref<1x16x18x128xf32, #tpu.memory_space<vmem>>, vector<1x1x16x128xf32>
    %774 = vector.shape_cast %773 : vector<1x1x16x128xf32> to vector<1x16x128xf32>
    %775 = vector.shape_cast %21 : vector<16x128xf32> to vector<1x16x128xf32>
    %776 = arith.mulf %774, %775 : vector<1x16x128xf32>
    %777 = arith.addf %772, %776 : vector<1x16x128xf32>
    %c0_655 = arith.constant 0 : index
    %c14_656 = arith.constant 14 : index
    %c1_657 = arith.constant 1 : index
    %c0_658 = arith.constant 0 : index
    %778 = vector.load %arg5[%c0_655, %c14_656, %c1_657, %c0_658] : memref<1x16x18x128xf32, #tpu.memory_space<vmem>>, vector<1x1x16x128xf32>
    %779 = vector.shape_cast %778 : vector<1x1x16x128xf32> to vector<1x16x128xf32>
    %780 = vector.shape_cast %26 : vector<16x128xf32> to vector<1x16x128xf32>
    %781 = arith.mulf %779, %780 : vector<1x16x128xf32>
    %782 = arith.addf %777, %781 : vector<1x16x128xf32>
    %c0_659 = arith.constant 0 : index
    %c14_660 = arith.constant 14 : index
    %c2_661 = arith.constant 2 : index
    %c0_662 = arith.constant 0 : index
    %783 = vector.load %arg5[%c0_659, %c14_660, %c2_661, %c0_662] : memref<1x16x18x128xf32, #tpu.memory_space<vmem>>, vector<1x1x16x128xf32>
    %784 = vector.shape_cast %783 : vector<1x1x16x128xf32> to vector<1x16x128xf32>
    %785 = vector.shape_cast %31 : vector<16x128xf32> to vector<1x16x128xf32>
    %786 = arith.mulf %784, %785 : vector<1x16x128xf32>
    %787 = arith.addf %782, %786 : vector<1x16x128xf32>
    %c0_663 = arith.constant 0 : index
    %c15_664 = arith.constant 15 : index
    %c0_665 = arith.constant 0 : index
    %c0_666 = arith.constant 0 : index
    %788 = vector.load %arg5[%c0_663, %c15_664, %c0_665, %c0_666] : memref<1x16x18x128xf32, #tpu.memory_space<vmem>>, vector<1x1x16x128xf32>
    %789 = vector.shape_cast %788 : vector<1x1x16x128xf32> to vector<1x16x128xf32>
    %790 = vector.shape_cast %36 : vector<16x128xf32> to vector<1x16x128xf32>
    %791 = arith.mulf %789, %790 : vector<1x16x128xf32>
    %792 = arith.addf %787, %791 : vector<1x16x128xf32>
    %c0_667 = arith.constant 0 : index
    %c15_668 = arith.constant 15 : index
    %c1_669 = arith.constant 1 : index
    %c0_670 = arith.constant 0 : index
    %793 = vector.load %arg5[%c0_667, %c15_668, %c1_669, %c0_670] : memref<1x16x18x128xf32, #tpu.memory_space<vmem>>, vector<1x1x16x128xf32>
    %794 = vector.shape_cast %793 : vector<1x1x16x128xf32> to vector<1x16x128xf32>
    %795 = vector.shape_cast %41 : vector<16x128xf32> to vector<1x16x128xf32>
    %796 = arith.mulf %794, %795 : vector<1x16x128xf32>
    %797 = arith.addf %792, %796 : vector<1x16x128xf32>
    %c0_671 = arith.constant 0 : index
    %c15_672 = arith.constant 15 : index
    %c2_673 = arith.constant 2 : index
    %c0_674 = arith.constant 0 : index
    %798 = vector.load %arg5[%c0_671, %c15_672, %c2_673, %c0_674] : memref<1x16x18x128xf32, #tpu.memory_space<vmem>>, vector<1x1x16x128xf32>
    %799 = vector.shape_cast %798 : vector<1x1x16x128xf32> to vector<1x16x128xf32>
    %800 = vector.shape_cast %46 : vector<16x128xf32> to vector<1x16x128xf32>
    %801 = arith.mulf %799, %800 : vector<1x16x128xf32>
    %802 = arith.addf %797, %801 : vector<1x16x128xf32>
    %803 = vector.shape_cast %49 : vector<16x128xf32> to vector<1x16x128xf32>
    %804 = arith.addf %802, %803 : vector<1x16x128xf32>
    %c0_675 = arith.constant 0 : index
    %c224_676 = arith.constant 224 : index
    %c0_677 = arith.constant 0 : index
    %805 = vector.load %arg4[%c0_675, %c224_676, %c0_677] : memref<1x336x128xf32, #tpu.memory_space<vmem>>, vector<1x16x128xf32>
    tpu.vector_store %arg4[%c0_675, %c224_676, %c0_677], %804 {strides = array<i32>} : memref<1x336x128xf32, #tpu.memory_space<vmem>>, vector<1x16x128xf32>,
    %c0_678 = arith.constant 0 : index
    %c14_679 = arith.constant 14 : index
    %c0_680 = arith.constant 0 : index
    %c0_681 = arith.constant 0 : index
    %806 = vector.load %arg5[%c0_678, %c14_679, %c0_680, %c0_681] : memref<1x16x18x128xf32, #tpu.memory_space<vmem>>, vector<1x1x16x128xf32>
    %807 = vector.shape_cast %806 : vector<1x1x16x128xf32> to vector<1x16x128xf32>
    %808 = vector.shape_cast %6 : vector<16x128xf32> to vector<1x16x128xf32>
    %809 = arith.mulf %807, %808 : vector<1x16x128xf32>
    %c0_682 = arith.constant 0 : index
    %c14_683 = arith.constant 14 : index
    %c1_684 = arith.constant 1 : index
    %c0_685 = arith.constant 0 : index
    %810 = vector.load %arg5[%c0_682, %c14_683, %c1_684, %c0_685] : memref<1x16x18x128xf32, #tpu.memory_space<vmem>>, vector<1x1x16x128xf32>
    %811 = vector.shape_cast %810 : vector<1x1x16x128xf32> to vector<1x16x128xf32>
    %812 = vector.shape_cast %11 : vector<16x128xf32> to vector<1x16x128xf32>
    %813 = arith.mulf %811, %812 : vector<1x16x128xf32>
    %814 = arith.addf %809, %813 : vector<1x16x128xf32>
    %c0_686 = arith.constant 0 : index
    %c14_687 = arith.constant 14 : index
    %c2_688 = arith.constant 2 : index
    %c0_689 = arith.constant 0 : index
    %815 = vector.load %arg5[%c0_686, %c14_687, %c2_688, %c0_689] : memref<1x16x18x128xf32, #tpu.memory_space<vmem>>, vector<1x1x16x128xf32>
    %816 = vector.shape_cast %815 : vector<1x1x16x128xf32> to vector<1x16x128xf32>
    %817 = vector.shape_cast %16 : vector<16x128xf32> to vector<1x16x128xf32>
    %818 = arith.mulf %816, %817 : vector<1x16x128xf32>
    %819 = arith.addf %814, %818 : vector<1x16x128xf32>
    %c0_690 = arith.constant 0 : index
    %c15_691 = arith.constant 15 : index
    %c0_692 = arith.constant 0 : index
    %c0_693 = arith.constant 0 : index
    %820 = vector.load %arg5[%c0_690, %c15_691, %c0_692, %c0_693] : memref<1x16x18x128xf32, #tpu.memory_space<vmem>>, vector<1x1x16x128xf32>
    %821 = vector.shape_cast %820 : vector<1x1x16x128xf32> to vector<1x16x128xf32>
    %822 = vector.shape_cast %21 : vector<16x128xf32> to vector<1x16x128xf32>
    %823 = arith.mulf %821, %822 : vector<1x16x128xf32>
    %824 = arith.addf %819, %823 : vector<1x16x128xf32>
    %c0_694 = arith.constant 0 : index
    %c15_695 = arith.constant 15 : index
    %c1_696 = arith.constant 1 : index
    %c0_697 = arith.constant 0 : index
    %825 = vector.load %arg5[%c0_694, %c15_695, %c1_696, %c0_697] : memref<1x16x18x128xf32, #tpu.memory_space<vmem>>, vector<1x1x16x128xf32>
    %826 = vector.shape_cast %825 : vector<1x1x16x128xf32> to vector<1x16x128xf32>
    %827 = vector.shape_cast %26 : vector<16x128xf32> to vector<1x16x128xf32>
    %828 = arith.mulf %826, %827 : vector<1x16x128xf32>
    %829 = arith.addf %824, %828 : vector<1x16x128xf32>
    %c0_698 = arith.constant 0 : index
    %c15_699 = arith.constant 15 : index
    %c2_700 = arith.constant 2 : index
    %c0_701 = arith.constant 0 : index
    %830 = vector.load %arg5[%c0_698, %c15_699, %c2_700, %c0_701] : memref<1x16x18x128xf32, #tpu.memory_space<vmem>>, vector<1x1x16x128xf32>
    %831 = vector.shape_cast %830 : vector<1x1x16x128xf32> to vector<1x16x128xf32>
    %832 = vector.shape_cast %31 : vector<16x128xf32> to vector<1x16x128xf32>
    %833 = arith.mulf %831, %832 : vector<1x16x128xf32>
    %834 = arith.addf %829, %833 : vector<1x16x128xf32>
    %835 = vector.shape_cast %49 : vector<16x128xf32> to vector<1x16x128xf32>
    %836 = arith.addf %834, %835 : vector<1x16x128xf32>
    %c0_702 = arith.constant 0 : index
    %c240_703 = arith.constant 240 : index
    %c0_704 = arith.constant 0 : index
    %837 = vector.load %arg4[%c0_702, %c240_703, %c0_704] : memref<1x336x128xf32, #tpu.memory_space<vmem>>, vector<1x16x128xf32>
    tpu.vector_store %arg4[%c0_702, %c240_703, %c0_704], %836 {strides = array<i32>} : memref<1x336x128xf32, #tpu.memory_space<vmem>>, vector<1x16x128xf32>,
    %c0_705 = arith.constant 0 : index
    %c0_706 = arith.constant 0 : index
    %838 = vector.load %arg1[%c0_705, %c0_706] : memref<9x128xf32, #tpu.memory_space<vmem>>, vector<1x128xf32>
    %839 = vector.shape_cast %838 : vector<1x128xf32> to vector<128xf32>
    %840 = vector.shape_cast %839 : vector<128xf32> to vector<1x128xf32>
    %841 = vector.shape_cast %840 : vector<1x128xf32> to vector<1x128xf32>
    %842 = vector.broadcast %841 : vector<1x128xf32> to vector<8x128xf32>
    %c1_707 = arith.constant 1 : index
    %c0_708 = arith.constant 0 : index
    %843 = vector.load %arg1[%c1_707, %c0_708] : memref<9x128xf32, #tpu.memory_space<vmem>>, vector<1x128xf32>
    %844 = vector.shape_cast %843 : vector<1x128xf32> to vector<128xf32>
    %845 = vector.shape_cast %844 : vector<128xf32> to vector<1x128xf32>
    %846 = vector.shape_cast %845 : vector<1x128xf32> to vector<1x128xf32>
    %847 = vector.broadcast %846 : vector<1x128xf32> to vector<8x128xf32>
    %c2_709 = arith.constant 2 : index
    %c0_710 = arith.constant 0 : index
    %848 = vector.load %arg1[%c2_709, %c0_710] : memref<9x128xf32, #tpu.memory_space<vmem>>, vector<1x128xf32>
    %849 = vector.shape_cast %848 : vector<1x128xf32> to vector<128xf32>
    %850 = vector.shape_cast %849 : vector<128xf32> to vector<1x128xf32>
    %851 = vector.shape_cast %850 : vector<1x128xf32> to vector<1x128xf32>
    %852 = vector.broadcast %851 : vector<1x128xf32> to vector<8x128xf32>
    %c3_711 = arith.constant 3 : index
    %c0_712 = arith.constant 0 : index
    %853 = vector.load %arg1[%c3_711, %c0_712] : memref<9x128xf32, #tpu.memory_space<vmem>>, vector<1x128xf32>
    %854 = vector.shape_cast %853 : vector<1x128xf32> to vector<128xf32>
    %855 = vector.shape_cast %854 : vector<128xf32> to vector<1x128xf32>
    %856 = vector.shape_cast %855 : vector<1x128xf32> to vector<1x128xf32>
    %857 = vector.broadcast %856 : vector<1x128xf32> to vector<8x128xf32>
    %c4_713 = arith.constant 4 : index
    %c0_714 = arith.constant 0 : index
    %858 = vector.load %arg1[%c4_713, %c0_714] : memref<9x128xf32, #tpu.memory_space<vmem>>, vector<1x128xf32>
    %859 = vector.shape_cast %858 : vector<1x128xf32> to vector<128xf32>
    %860 = vector.shape_cast %859 : vector<128xf32> to vector<1x128xf32>
    %861 = vector.shape_cast %860 : vector<1x128xf32> to vector<1x128xf32>
    %862 = vector.broadcast %861 : vector<1x128xf32> to vector<8x128xf32>
    %c5_715 = arith.constant 5 : index
    %c0_716 = arith.constant 0 : index
    %863 = vector.load %arg1[%c5_715, %c0_716] : memref<9x128xf32, #tpu.memory_space<vmem>>, vector<1x128xf32>
    %864 = vector.shape_cast %863 : vector<1x128xf32> to vector<128xf32>
    %865 = vector.shape_cast %864 : vector<128xf32> to vector<1x128xf32>
    %866 = vector.shape_cast %865 : vector<1x128xf32> to vector<1x128xf32>
    %867 = vector.broadcast %866 : vector<1x128xf32> to vector<8x128xf32>
    %c6_717 = arith.constant 6 : index
    %c0_718 = arith.constant 0 : index
    %868 = vector.load %arg1[%c6_717, %c0_718] : memref<9x128xf32, #tpu.memory_space<vmem>>, vector<1x128xf32>
    %869 = vector.shape_cast %868 : vector<1x128xf32> to vector<128xf32>
    %870 = vector.shape_cast %869 : vector<128xf32> to vector<1x128xf32>
    %871 = vector.shape_cast %870 : vector<1x128xf32> to vector<1x128xf32>
    %872 = vector.broadcast %871 : vector<1x128xf32> to vector<8x128xf32>
    %c7_719 = arith.constant 7 : index
    %c0_720 = arith.constant 0 : index
    %873 = vector.load %arg1[%c7_719, %c0_720] : memref<9x128xf32, #tpu.memory_space<vmem>>, vector<1x128xf32>
    %874 = vector.shape_cast %873 : vector<1x128xf32> to vector<128xf32>
    %875 = vector.shape_cast %874 : vector<128xf32> to vector<1x128xf32>
    %876 = vector.shape_cast %875 : vector<1x128xf32> to vector<1x128xf32>
    %877 = vector.broadcast %876 : vector<1x128xf32> to vector<8x128xf32>
    %c8_721 = arith.constant 8 : index
    %c0_722 = arith.constant 0 : index
    %878 = vector.load %arg1[%c8_721, %c0_722] : memref<9x128xf32, #tpu.memory_space<vmem>>, vector<1x128xf32>
    %879 = vector.shape_cast %878 : vector<1x128xf32> to vector<128xf32>
    %880 = vector.shape_cast %879 : vector<128xf32> to vector<1x128xf32>
    %881 = vector.shape_cast %880 : vector<1x128xf32> to vector<1x128xf32>
    %882 = vector.broadcast %881 : vector<1x128xf32> to vector<8x128xf32>
    %883 = vector.shape_cast %1 : vector<128xf32> to vector<1x128xf32>
    %884 = vector.shape_cast %883 : vector<1x128xf32> to vector<1x128xf32>
    %885 = vector.broadcast %884 : vector<1x128xf32> to vector<8x128xf32>
    %cst_723 = arith.constant 0.000000e+00 : f32
    %886 = vector.broadcast %cst_723 : f32 to vector<1x8x10x128xf32>
    %c0_724 = arith.constant 0 : index
    %c0_725 = arith.constant 0 : index
    %c0_726 = arith.constant 0 : index
    %c0_727 = arith.constant 0 : index
    %887 = vector.load %arg6[%c0_724, %c0_725, %c0_726, %c0_727] : memref<1x8x10x128xf32, #tpu.memory_space<vmem>>, vector<1x8x10x128xf32>
    tpu.vector_store %arg6[%c0_724, %c0_725, %c0_726, %c0_727], %886 {strides = array<i32>} : memref<1x8x10x128xf32, #tpu.memory_space<vmem>>, vector<1x8x10x128xf32>,
    %c0_728 = arith.constant 0 : index
    %c256 = arith.constant 256 : index
    %c0_729 = arith.constant 0 : index
    %888 = vector.load %arg3[%c0_728, %c256, %c0_729] : memref<1x336x128xf32, #tpu.memory_space<vmem>>, vector<1x8x128xf32>
    %c0_730 = arith.constant 0 : index
    %c0_731 = arith.constant 0 : index
    %c1_732 = arith.constant 1 : index
    %c0_733 = arith.constant 0 : index
    %889 = vector.load %arg6[%c0_730, %c0_731, %c1_732, %c0_733] : memref<1x8x10x128xf32, #tpu.memory_space<vmem>>, vector<1x1x8x128xf32>
    %890 = vector.shape_cast %889 : vector<1x1x8x128xf32> to vector<1x8x128xf32>
    %891 = vector.shape_cast %888 : vector<1x8x128xf32> to vector<1x1x8x128xf32>
    tpu.vector_store %arg6[%c0_730, %c0_731, %c1_732, %c0_733], %891 {strides = array<i32>} : memref<1x8x10x128xf32, #tpu.memory_space<vmem>>, vector<1x1x8x128xf32>,
    %c0_734 = arith.constant 0 : index
    %c264 = arith.constant 264 : index
    %c0_735 = arith.constant 0 : index
    %892 = vector.load %arg3[%c0_734, %c264, %c0_735] : memref<1x336x128xf32, #tpu.memory_space<vmem>>, vector<1x8x128xf32>
    %c0_736 = arith.constant 0 : index
    %c1_737 = arith.constant 1 : index
    %c1_738 = arith.constant 1 : index
    %c0_739 = arith.constant 0 : index
    %893 = vector.load %arg6[%c0_736, %c1_737, %c1_738, %c0_739] : memref<1x8x10x128xf32, #tpu.memory_space<vmem>>, vector<1x1x8x128xf32>
    %894 = vector.shape_cast %893 : vector<1x1x8x128xf32> to vector<1x8x128xf32>
    %895 = vector.shape_cast %892 : vector<1x8x128xf32> to vector<1x1x8x128xf32>
    tpu.vector_store %arg6[%c0_736, %c1_737, %c1_738, %c0_739], %895 {strides = array<i32>} : memref<1x8x10x128xf32, #tpu.memory_space<vmem>>, vector<1x1x8x128xf32>,
    %c0_740 = arith.constant 0 : index
    %c272 = arith.constant 272 : index
    %c0_741 = arith.constant 0 : index
    %896 = vector.load %arg3[%c0_740, %c272, %c0_741] : memref<1x336x128xf32, #tpu.memory_space<vmem>>, vector<1x8x128xf32>
    %c0_742 = arith.constant 0 : index
    %c2_743 = arith.constant 2 : index
    %c1_744 = arith.constant 1 : index
    %c0_745 = arith.constant 0 : index
    %897 = vector.load %arg6[%c0_742, %c2_743, %c1_744, %c0_745] : memref<1x8x10x128xf32, #tpu.memory_space<vmem>>, vector<1x1x8x128xf32>
    %898 = vector.shape_cast %897 : vector<1x1x8x128xf32> to vector<1x8x128xf32>
    %899 = vector.shape_cast %896 : vector<1x8x128xf32> to vector<1x1x8x128xf32>
    tpu.vector_store %arg6[%c0_742, %c2_743, %c1_744, %c0_745], %899 {strides = array<i32>} : memref<1x8x10x128xf32, #tpu.memory_space<vmem>>, vector<1x1x8x128xf32>,
    %c0_746 = arith.constant 0 : index
    %c280 = arith.constant 280 : index
    %c0_747 = arith.constant 0 : index
    %900 = vector.load %arg3[%c0_746, %c280, %c0_747] : memref<1x336x128xf32, #tpu.memory_space<vmem>>, vector<1x8x128xf32>
    %c0_748 = arith.constant 0 : index
    %c3_749 = arith.constant 3 : index
    %c1_750 = arith.constant 1 : index
    %c0_751 = arith.constant 0 : index
    %901 = vector.load %arg6[%c0_748, %c3_749, %c1_750, %c0_751] : memref<1x8x10x128xf32, #tpu.memory_space<vmem>>, vector<1x1x8x128xf32>
    %902 = vector.shape_cast %901 : vector<1x1x8x128xf32> to vector<1x8x128xf32>
    %903 = vector.shape_cast %900 : vector<1x8x128xf32> to vector<1x1x8x128xf32>
    tpu.vector_store %arg6[%c0_748, %c3_749, %c1_750, %c0_751], %903 {strides = array<i32>} : memref<1x8x10x128xf32, #tpu.memory_space<vmem>>, vector<1x1x8x128xf32>,
    %c0_752 = arith.constant 0 : index
    %c288 = arith.constant 288 : index
    %c0_753 = arith.constant 0 : index
    %904 = vector.load %arg3[%c0_752, %c288, %c0_753] : memref<1x336x128xf32, #tpu.memory_space<vmem>>, vector<1x8x128xf32>
    %c0_754 = arith.constant 0 : index
    %c4_755 = arith.constant 4 : index
    %c1_756 = arith.constant 1 : index
    %c0_757 = arith.constant 0 : index
    %905 = vector.load %arg6[%c0_754, %c4_755, %c1_756, %c0_757] : memref<1x8x10x128xf32, #tpu.memory_space<vmem>>, vector<1x1x8x128xf32>
    %906 = vector.shape_cast %905 : vector<1x1x8x128xf32> to vector<1x8x128xf32>
    %907 = vector.shape_cast %904 : vector<1x8x128xf32> to vector<1x1x8x128xf32>
    tpu.vector_store %arg6[%c0_754, %c4_755, %c1_756, %c0_757], %907 {strides = array<i32>} : memref<1x8x10x128xf32, #tpu.memory_space<vmem>>, vector<1x1x8x128xf32>,
    %c0_758 = arith.constant 0 : index
    %c296 = arith.constant 296 : index
    %c0_759 = arith.constant 0 : index
    %908 = vector.load %arg3[%c0_758, %c296, %c0_759] : memref<1x336x128xf32, #tpu.memory_space<vmem>>, vector<1x8x128xf32>
    %c0_760 = arith.constant 0 : index
    %c5_761 = arith.constant 5 : index
    %c1_762 = arith.constant 1 : index
    %c0_763 = arith.constant 0 : index
    %909 = vector.load %arg6[%c0_760, %c5_761, %c1_762, %c0_763] : memref<1x8x10x128xf32, #tpu.memory_space<vmem>>, vector<1x1x8x128xf32>
    %910 = vector.shape_cast %909 : vector<1x1x8x128xf32> to vector<1x8x128xf32>
    %911 = vector.shape_cast %908 : vector<1x8x128xf32> to vector<1x1x8x128xf32>
    tpu.vector_store %arg6[%c0_760, %c5_761, %c1_762, %c0_763], %911 {strides = array<i32>} : memref<1x8x10x128xf32, #tpu.memory_space<vmem>>, vector<1x1x8x128xf32>,
    %c0_764 = arith.constant 0 : index
    %c304 = arith.constant 304 : index
    %c0_765 = arith.constant 0 : index
    %912 = vector.load %arg3[%c0_764, %c304, %c0_765] : memref<1x336x128xf32, #tpu.memory_space<vmem>>, vector<1x8x128xf32>
    %c0_766 = arith.constant 0 : index
    %c6_767 = arith.constant 6 : index
    %c1_768 = arith.constant 1 : index
    %c0_769 = arith.constant 0 : index
    %913 = vector.load %arg6[%c0_766, %c6_767, %c1_768, %c0_769] : memref<1x8x10x128xf32, #tpu.memory_space<vmem>>, vector<1x1x8x128xf32>
    %914 = vector.shape_cast %913 : vector<1x1x8x128xf32> to vector<1x8x128xf32>
    %915 = vector.shape_cast %912 : vector<1x8x128xf32> to vector<1x1x8x128xf32>
    tpu.vector_store %arg6[%c0_766, %c6_767, %c1_768, %c0_769], %915 {strides = array<i32>} : memref<1x8x10x128xf32, #tpu.memory_space<vmem>>, vector<1x1x8x128xf32>,
    %c0_770 = arith.constant 0 : index
    %c312 = arith.constant 312 : index
    %c0_771 = arith.constant 0 : index
    %916 = vector.load %arg3[%c0_770, %c312, %c0_771] : memref<1x336x128xf32, #tpu.memory_space<vmem>>, vector<1x8x128xf32>
    %c0_772 = arith.constant 0 : index
    %c7_773 = arith.constant 7 : index
    %c1_774 = arith.constant 1 : index
    %c0_775 = arith.constant 0 : index
    %917 = vector.load %arg6[%c0_772, %c7_773, %c1_774, %c0_775] : memref<1x8x10x128xf32, #tpu.memory_space<vmem>>, vector<1x1x8x128xf32>
    %918 = vector.shape_cast %917 : vector<1x1x8x128xf32> to vector<1x8x128xf32>
    %919 = vector.shape_cast %916 : vector<1x8x128xf32> to vector<1x1x8x128xf32>
    tpu.vector_store %arg6[%c0_772, %c7_773, %c1_774, %c0_775], %919 {strides = array<i32>} : memref<1x8x10x128xf32, #tpu.memory_space<vmem>>, vector<1x1x8x128xf32>,
    %c0_776 = arith.constant 0 : index
    %c0_777 = arith.constant 0 : index
    %c0_778 = arith.constant 0 : index
    %c0_779 = arith.constant 0 : index
    %920 = vector.load %arg6[%c0_776, %c0_777, %c0_778, %c0_779] : memref<1x8x10x128xf32, #tpu.memory_space<vmem>>, vector<1x1x8x128xf32>
    %921 = vector.shape_cast %920 : vector<1x1x8x128xf32> to vector<1x8x128xf32>
    %922 = vector.shape_cast %857 : vector<8x128xf32> to vector<1x8x128xf32>
    %923 = arith.mulf %921, %922 : vector<1x8x128xf32>
    %c0_780 = arith.constant 0 : index
    %c0_781 = arith.constant 0 : index
    %c1_782 = arith.constant 1 : index
    %c0_783 = arith.constant 0 : index
    %924 = vector.load %arg6[%c0_780, %c0_781, %c1_782, %c0_783] : memref<1x8x10x128xf32, #tpu.memory_space<vmem>>, vector<1x1x8x128xf32>
    %925 = vector.shape_cast %924 : vector<1x1x8x128xf32> to vector<1x8x128xf32>
    %926 = vector.shape_cast %862 : vector<8x128xf32> to vector<1x8x128xf32>
    %927 = arith.mulf %925, %926 : vector<1x8x128xf32>
    %928 = arith.addf %923, %927 : vector<1x8x128xf32>
    %c0_784 = arith.constant 0 : index
    %c0_785 = arith.constant 0 : index
    %c2_786 = arith.constant 2 : index
    %c0_787 = arith.constant 0 : index
    %929 = vector.load %arg6[%c0_784, %c0_785, %c2_786, %c0_787] : memref<1x8x10x128xf32, #tpu.memory_space<vmem>>, vector<1x1x8x128xf32>
    %930 = vector.shape_cast %929 : vector<1x1x8x128xf32> to vector<1x8x128xf32>
    %931 = vector.shape_cast %867 : vector<8x128xf32> to vector<1x8x128xf32>
    %932 = arith.mulf %930, %931 : vector<1x8x128xf32>
    %933 = arith.addf %928, %932 : vector<1x8x128xf32>
    %c0_788 = arith.constant 0 : index
    %c1_789 = arith.constant 1 : index
    %c0_790 = arith.constant 0 : index
    %c0_791 = arith.constant 0 : index
    %934 = vector.load %arg6[%c0_788, %c1_789, %c0_790, %c0_791] : memref<1x8x10x128xf32, #tpu.memory_space<vmem>>, vector<1x1x8x128xf32>
    %935 = vector.shape_cast %934 : vector<1x1x8x128xf32> to vector<1x8x128xf32>
    %936 = vector.shape_cast %872 : vector<8x128xf32> to vector<1x8x128xf32>
    %937 = arith.mulf %935, %936 : vector<1x8x128xf32>
    %938 = arith.addf %933, %937 : vector<1x8x128xf32>
    %c0_792 = arith.constant 0 : index
    %c1_793 = arith.constant 1 : index
    %c1_794 = arith.constant 1 : index
    %c0_795 = arith.constant 0 : index
    %939 = vector.load %arg6[%c0_792, %c1_793, %c1_794, %c0_795] : memref<1x8x10x128xf32, #tpu.memory_space<vmem>>, vector<1x1x8x128xf32>
    %940 = vector.shape_cast %939 : vector<1x1x8x128xf32> to vector<1x8x128xf32>
    %941 = vector.shape_cast %877 : vector<8x128xf32> to vector<1x8x128xf32>
    %942 = arith.mulf %940, %941 : vector<1x8x128xf32>
    %943 = arith.addf %938, %942 : vector<1x8x128xf32>
    %c0_796 = arith.constant 0 : index
    %c1_797 = arith.constant 1 : index
    %c2_798 = arith.constant 2 : index
    %c0_799 = arith.constant 0 : index
    %944 = vector.load %arg6[%c0_796, %c1_797, %c2_798, %c0_799] : memref<1x8x10x128xf32, #tpu.memory_space<vmem>>, vector<1x1x8x128xf32>
    %945 = vector.shape_cast %944 : vector<1x1x8x128xf32> to vector<1x8x128xf32>
    %946 = vector.shape_cast %882 : vector<8x128xf32> to vector<1x8x128xf32>
    %947 = arith.mulf %945, %946 : vector<1x8x128xf32>
    %948 = arith.addf %943, %947 : vector<1x8x128xf32>
    %949 = vector.shape_cast %885 : vector<8x128xf32> to vector<1x8x128xf32>
    %950 = arith.addf %948, %949 : vector<1x8x128xf32>
    %c0_800 = arith.constant 0 : index
    %c256_801 = arith.constant 256 : index
    %c0_802 = arith.constant 0 : index
    %951 = vector.load %arg4[%c0_800, %c256_801, %c0_802] : memref<1x336x128xf32, #tpu.memory_space<vmem>>, vector<1x8x128xf32>
    tpu.vector_store %arg4[%c0_800, %c256_801, %c0_802], %950 {strides = array<i32>} : memref<1x336x128xf32, #tpu.memory_space<vmem>>, vector<1x8x128xf32>,
    %c0_803 = arith.constant 0 : index
    %c0_804 = arith.constant 0 : index
    %c0_805 = arith.constant 0 : index
    %c0_806 = arith.constant 0 : index
    %952 = vector.load %arg6[%c0_803, %c0_804, %c0_805, %c0_806] : memref<1x8x10x128xf32, #tpu.memory_space<vmem>>, vector<1x1x8x128xf32>
    %953 = vector.shape_cast %952 : vector<1x1x8x128xf32> to vector<1x8x128xf32>
    %954 = vector.shape_cast %842 : vector<8x128xf32> to vector<1x8x128xf32>
    %955 = arith.mulf %953, %954 : vector<1x8x128xf32>
    %c0_807 = arith.constant 0 : index
    %c0_808 = arith.constant 0 : index
    %c1_809 = arith.constant 1 : index
    %c0_810 = arith.constant 0 : index
    %956 = vector.load %arg6[%c0_807, %c0_808, %c1_809, %c0_810] : memref<1x8x10x128xf32, #tpu.memory_space<vmem>>, vector<1x1x8x128xf32>
    %957 = vector.shape_cast %956 : vector<1x1x8x128xf32> to vector<1x8x128xf32>
    %958 = vector.shape_cast %847 : vector<8x128xf32> to vector<1x8x128xf32>
    %959 = arith.mulf %957, %958 : vector<1x8x128xf32>
    %960 = arith.addf %955, %959 : vector<1x8x128xf32>
    %c0_811 = arith.constant 0 : index
    %c0_812 = arith.constant 0 : index
    %c2_813 = arith.constant 2 : index
    %c0_814 = arith.constant 0 : index
    %961 = vector.load %arg6[%c0_811, %c0_812, %c2_813, %c0_814] : memref<1x8x10x128xf32, #tpu.memory_space<vmem>>, vector<1x1x8x128xf32>
    %962 = vector.shape_cast %961 : vector<1x1x8x128xf32> to vector<1x8x128xf32>
    %963 = vector.shape_cast %852 : vector<8x128xf32> to vector<1x8x128xf32>
    %964 = arith.mulf %962, %963 : vector<1x8x128xf32>
    %965 = arith.addf %960, %964 : vector<1x8x128xf32>
    %c0_815 = arith.constant 0 : index
    %c1_816 = arith.constant 1 : index
    %c0_817 = arith.constant 0 : index
    %c0_818 = arith.constant 0 : index
    %966 = vector.load %arg6[%c0_815, %c1_816, %c0_817, %c0_818] : memref<1x8x10x128xf32, #tpu.memory_space<vmem>>, vector<1x1x8x128xf32>
    %967 = vector.shape_cast %966 : vector<1x1x8x128xf32> to vector<1x8x128xf32>
    %968 = vector.shape_cast %857 : vector<8x128xf32> to vector<1x8x128xf32>
    %969 = arith.mulf %967, %968 : vector<1x8x128xf32>
    %970 = arith.addf %965, %969 : vector<1x8x128xf32>
    %c0_819 = arith.constant 0 : index
    %c1_820 = arith.constant 1 : index
    %c1_821 = arith.constant 1 : index
    %c0_822 = arith.constant 0 : index
    %971 = vector.load %arg6[%c0_819, %c1_820, %c1_821, %c0_822] : memref<1x8x10x128xf32, #tpu.memory_space<vmem>>, vector<1x1x8x128xf32>
    %972 = vector.shape_cast %971 : vector<1x1x8x128xf32> to vector<1x8x128xf32>
    %973 = vector.shape_cast %862 : vector<8x128xf32> to vector<1x8x128xf32>
    %974 = arith.mulf %972, %973 : vector<1x8x128xf32>
    %975 = arith.addf %970, %974 : vector<1x8x128xf32>
    %c0_823 = arith.constant 0 : index
    %c1_824 = arith.constant 1 : index
    %c2_825 = arith.constant 2 : index
    %c0_826 = arith.constant 0 : index
    %976 = vector.load %arg6[%c0_823, %c1_824, %c2_825, %c0_826] : memref<1x8x10x128xf32, #tpu.memory_space<vmem>>, vector<1x1x8x128xf32>
    %977 = vector.shape_cast %976 : vector<1x1x8x128xf32> to vector<1x8x128xf32>
    %978 = vector.shape_cast %867 : vector<8x128xf32> to vector<1x8x128xf32>
    %979 = arith.mulf %977, %978 : vector<1x8x128xf32>
    %980 = arith.addf %975, %979 : vector<1x8x128xf32>
    %c0_827 = arith.constant 0 : index
    %c2_828 = arith.constant 2 : index
    %c0_829 = arith.constant 0 : index
    %c0_830 = arith.constant 0 : index
    %981 = vector.load %arg6[%c0_827, %c2_828, %c0_829, %c0_830] : memref<1x8x10x128xf32, #tpu.memory_space<vmem>>, vector<1x1x8x128xf32>
    %982 = vector.shape_cast %981 : vector<1x1x8x128xf32> to vector<1x8x128xf32>
    %983 = vector.shape_cast %872 : vector<8x128xf32> to vector<1x8x128xf32>
    %984 = arith.mulf %982, %983 : vector<1x8x128xf32>
    %985 = arith.addf %980, %984 : vector<1x8x128xf32>
    %c0_831 = arith.constant 0 : index
    %c2_832 = arith.constant 2 : index
    %c1_833 = arith.constant 1 : index
    %c0_834 = arith.constant 0 : index
    %986 = vector.load %arg6[%c0_831, %c2_832, %c1_833, %c0_834] : memref<1x8x10x128xf32, #tpu.memory_space<vmem>>, vector<1x1x8x128xf32>
    %987 = vector.shape_cast %986 : vector<1x1x8x128xf32> to vector<1x8x128xf32>
    %988 = vector.shape_cast %877 : vector<8x128xf32> to vector<1x8x128xf32>
    %989 = arith.mulf %987, %988 : vector<1x8x128xf32>
    %990 = arith.addf %985, %989 : vector<1x8x128xf32>
    %c0_835 = arith.constant 0 : index
    %c2_836 = arith.constant 2 : index
    %c2_837 = arith.constant 2 : index
    %c0_838 = arith.constant 0 : index
    %991 = vector.load %arg6[%c0_835, %c2_836, %c2_837, %c0_838] : memref<1x8x10x128xf32, #tpu.memory_space<vmem>>, vector<1x1x8x128xf32>
    %992 = vector.shape_cast %991 : vector<1x1x8x128xf32> to vector<1x8x128xf32>
    %993 = vector.shape_cast %882 : vector<8x128xf32> to vector<1x8x128xf32>
    %994 = arith.mulf %992, %993 : vector<1x8x128xf32>
    %995 = arith.addf %990, %994 : vector<1x8x128xf32>
    %996 = vector.shape_cast %885 : vector<8x128xf32> to vector<1x8x128xf32>
    %997 = arith.addf %995, %996 : vector<1x8x128xf32>
    %c0_839 = arith.constant 0 : index
    %c264_840 = arith.constant 264 : index
    %c0_841 = arith.constant 0 : index
    %998 = vector.load %arg4[%c0_839, %c264_840, %c0_841] : memref<1x336x128xf32, #tpu.memory_space<vmem>>, vector<1x8x128xf32>
    tpu.vector_store %arg4[%c0_839, %c264_840, %c0_841], %997 {strides = array<i32>} : memref<1x336x128xf32, #tpu.memory_space<vmem>>, vector<1x8x128xf32>,
    %c0_842 = arith.constant 0 : index
    %c1_843 = arith.constant 1 : index
    %c0_844 = arith.constant 0 : index
    %c0_845 = arith.constant 0 : index
    %999 = vector.load %arg6[%c0_842, %c1_843, %c0_844, %c0_845] : memref<1x8x10x128xf32, #tpu.memory_space<vmem>>, vector<1x1x8x128xf32>
    %1000 = vector.shape_cast %999 : vector<1x1x8x128xf32> to vector<1x8x128xf32>
    %1001 = vector.shape_cast %842 : vector<8x128xf32> to vector<1x8x128xf32>
    %1002 = arith.mulf %1000, %1001 : vector<1x8x128xf32>
    %c0_846 = arith.constant 0 : index
    %c1_847 = arith.constant 1 : index
    %c1_848 = arith.constant 1 : index
    %c0_849 = arith.constant 0 : index
    %1003 = vector.load %arg6[%c0_846, %c1_847, %c1_848, %c0_849] : memref<1x8x10x128xf32, #tpu.memory_space<vmem>>, vector<1x1x8x128xf32>
    %1004 = vector.shape_cast %1003 : vector<1x1x8x128xf32> to vector<1x8x128xf32>
    %1005 = vector.shape_cast %847 : vector<8x128xf32> to vector<1x8x128xf32>
    %1006 = arith.mulf %1004, %1005 : vector<1x8x128xf32>
    %1007 = arith.addf %1002, %1006 : vector<1x8x128xf32>
    %c0_850 = arith.constant 0 : index
    %c1_851 = arith.constant 1 : index
    %c2_852 = arith.constant 2 : index
    %c0_853 = arith.constant 0 : index
    %1008 = vector.load %arg6[%c0_850, %c1_851, %c2_852, %c0_853] : memref<1x8x10x128xf32, #tpu.memory_space<vmem>>, vector<1x1x8x128xf32>
    %1009 = vector.shape_cast %1008 : vector<1x1x8x128xf32> to vector<1x8x128xf32>
    %1010 = vector.shape_cast %852 : vector<8x128xf32> to vector<1x8x128xf32>
    %1011 = arith.mulf %1009, %1010 : vector<1x8x128xf32>
    %1012 = arith.addf %1007, %1011 : vector<1x8x128xf32>
    %c0_854 = arith.constant 0 : index
    %c2_855 = arith.constant 2 : index
    %c0_856 = arith.constant 0 : index
    %c0_857 = arith.constant 0 : index
    %1013 = vector.load %arg6[%c0_854, %c2_855, %c0_856, %c0_857] : memref<1x8x10x128xf32, #tpu.memory_space<vmem>>, vector<1x1x8x128xf32>
    %1014 = vector.shape_cast %1013 : vector<1x1x8x128xf32> to vector<1x8x128xf32>
    %1015 = vector.shape_cast %857 : vector<8x128xf32> to vector<1x8x128xf32>
    %1016 = arith.mulf %1014, %1015 : vector<1x8x128xf32>
    %1017 = arith.addf %1012, %1016 : vector<1x8x128xf32>
    %c0_858 = arith.constant 0 : index
    %c2_859 = arith.constant 2 : index
    %c1_860 = arith.constant 1 : index
    %c0_861 = arith.constant 0 : index
    %1018 = vector.load %arg6[%c0_858, %c2_859, %c1_860, %c0_861] : memref<1x8x10x128xf32, #tpu.memory_space<vmem>>, vector<1x1x8x128xf32>
    %1019 = vector.shape_cast %1018 : vector<1x1x8x128xf32> to vector<1x8x128xf32>
    %1020 = vector.shape_cast %862 : vector<8x128xf32> to vector<1x8x128xf32>
    %1021 = arith.mulf %1019, %1020 : vector<1x8x128xf32>
    %1022 = arith.addf %1017, %1021 : vector<1x8x128xf32>
    %c0_862 = arith.constant 0 : index
    %c2_863 = arith.constant 2 : index
    %c2_864 = arith.constant 2 : index
    %c0_865 = arith.constant 0 : index
    %1023 = vector.load %arg6[%c0_862, %c2_863, %c2_864, %c0_865] : memref<1x8x10x128xf32, #tpu.memory_space<vmem>>, vector<1x1x8x128xf32>
    %1024 = vector.shape_cast %1023 : vector<1x1x8x128xf32> to vector<1x8x128xf32>
    %1025 = vector.shape_cast %867 : vector<8x128xf32> to vector<1x8x128xf32>
    %1026 = arith.mulf %1024, %1025 : vector<1x8x128xf32>
    %1027 = arith.addf %1022, %1026 : vector<1x8x128xf32>
    %c0_866 = arith.constant 0 : index
    %c3_867 = arith.constant 3 : index
    %c0_868 = arith.constant 0 : index
    %c0_869 = arith.constant 0 : index
    %1028 = vector.load %arg6[%c0_866, %c3_867, %c0_868, %c0_869] : memref<1x8x10x128xf32, #tpu.memory_space<vmem>>, vector<1x1x8x128xf32>
    %1029 = vector.shape_cast %1028 : vector<1x1x8x128xf32> to vector<1x8x128xf32>
    %1030 = vector.shape_cast %872 : vector<8x128xf32> to vector<1x8x128xf32>
    %1031 = arith.mulf %1029, %1030 : vector<1x8x128xf32>
    %1032 = arith.addf %1027, %1031 : vector<1x8x128xf32>
    %c0_870 = arith.constant 0 : index
    %c3_871 = arith.constant 3 : index
    %c1_872 = arith.constant 1 : index
    %c0_873 = arith.constant 0 : index
    %1033 = vector.load %arg6[%c0_870, %c3_871, %c1_872, %c0_873] : memref<1x8x10x128xf32, #tpu.memory_space<vmem>>, vector<1x1x8x128xf32>
    %1034 = vector.shape_cast %1033 : vector<1x1x8x128xf32> to vector<1x8x128xf32>
    %1035 = vector.shape_cast %877 : vector<8x128xf32> to vector<1x8x128xf32>
    %1036 = arith.mulf %1034, %1035 : vector<1x8x128xf32>
    %1037 = arith.addf %1032, %1036 : vector<1x8x128xf32>
    %c0_874 = arith.constant 0 : index
    %c3_875 = arith.constant 3 : index
    %c2_876 = arith.constant 2 : index
    %c0_877 = arith.constant 0 : index
    %1038 = vector.load %arg6[%c0_874, %c3_875, %c2_876, %c0_877] : memref<1x8x10x128xf32, #tpu.memory_space<vmem>>, vector<1x1x8x128xf32>
    %1039 = vector.shape_cast %1038 : vector<1x1x8x128xf32> to vector<1x8x128xf32>
    %1040 = vector.shape_cast %882 : vector<8x128xf32> to vector<1x8x128xf32>
    %1041 = arith.mulf %1039, %1040 : vector<1x8x128xf32>
    %1042 = arith.addf %1037, %1041 : vector<1x8x128xf32>
    %1043 = vector.shape_cast %885 : vector<8x128xf32> to vector<1x8x128xf32>
    %1044 = arith.addf %1042, %1043 : vector<1x8x128xf32>
    %c0_878 = arith.constant 0 : index
    %c272_879 = arith.constant 272 : index
    %c0_880 = arith.constant 0 : index
    %1045 = vector.load %arg4[%c0_878, %c272_879, %c0_880] : memref<1x336x128xf32, #tpu.memory_space<vmem>>, vector<1x8x128xf32>
    tpu.vector_store %arg4[%c0_878, %c272_879, %c0_880], %1044 {strides = array<i32>} : memref<1x336x128xf32, #tpu.memory_space<vmem>>, vector<1x8x128xf32>,
    %c0_881 = arith.constant 0 : index
    %c2_882 = arith.constant 2 : index
    %c0_883 = arith.constant 0 : index
    %c0_884 = arith.constant 0 : index
    %1046 = vector.load %arg6[%c0_881, %c2_882, %c0_883, %c0_884] : memref<1x8x10x128xf32, #tpu.memory_space<vmem>>, vector<1x1x8x128xf32>
    %1047 = vector.shape_cast %1046 : vector<1x1x8x128xf32> to vector<1x8x128xf32>
    %1048 = vector.shape_cast %842 : vector<8x128xf32> to vector<1x8x128xf32>
    %1049 = arith.mulf %1047, %1048 : vector<1x8x128xf32>
    %c0_885 = arith.constant 0 : index
    %c2_886 = arith.constant 2 : index
    %c1_887 = arith.constant 1 : index
    %c0_888 = arith.constant 0 : index
    %1050 = vector.load %arg6[%c0_885, %c2_886, %c1_887, %c0_888] : memref<1x8x10x128xf32, #tpu.memory_space<vmem>>, vector<1x1x8x128xf32>
    %1051 = vector.shape_cast %1050 : vector<1x1x8x128xf32> to vector<1x8x128xf32>
    %1052 = vector.shape_cast %847 : vector<8x128xf32> to vector<1x8x128xf32>
    %1053 = arith.mulf %1051, %1052 : vector<1x8x128xf32>
    %1054 = arith.addf %1049, %1053 : vector<1x8x128xf32>
    %c0_889 = arith.constant 0 : index
    %c2_890 = arith.constant 2 : index
    %c2_891 = arith.constant 2 : index
    %c0_892 = arith.constant 0 : index
    %1055 = vector.load %arg6[%c0_889, %c2_890, %c2_891, %c0_892] : memref<1x8x10x128xf32, #tpu.memory_space<vmem>>, vector<1x1x8x128xf32>
    %1056 = vector.shape_cast %1055 : vector<1x1x8x128xf32> to vector<1x8x128xf32>
    %1057 = vector.shape_cast %852 : vector<8x128xf32> to vector<1x8x128xf32>
    %1058 = arith.mulf %1056, %1057 : vector<1x8x128xf32>
    %1059 = arith.addf %1054, %1058 : vector<1x8x128xf32>
    %c0_893 = arith.constant 0 : index
    %c3_894 = arith.constant 3 : index
    %c0_895 = arith.constant 0 : index
    %c0_896 = arith.constant 0 : index
    %1060 = vector.load %arg6[%c0_893, %c3_894, %c0_895, %c0_896] : memref<1x8x10x128xf32, #tpu.memory_space<vmem>>, vector<1x1x8x128xf32>
    %1061 = vector.shape_cast %1060 : vector<1x1x8x128xf32> to vector<1x8x128xf32>
    %1062 = vector.shape_cast %857 : vector<8x128xf32> to vector<1x8x128xf32>
    %1063 = arith.mulf %1061, %1062 : vector<1x8x128xf32>
    %1064 = arith.addf %1059, %1063 : vector<1x8x128xf32>
    %c0_897 = arith.constant 0 : index
    %c3_898 = arith.constant 3 : index
    %c1_899 = arith.constant 1 : index
    %c0_900 = arith.constant 0 : index
    %1065 = vector.load %arg6[%c0_897, %c3_898, %c1_899, %c0_900] : memref<1x8x10x128xf32, #tpu.memory_space<vmem>>, vector<1x1x8x128xf32>
    %1066 = vector.shape_cast %1065 : vector<1x1x8x128xf32> to vector<1x8x128xf32>
    %1067 = vector.shape_cast %862 : vector<8x128xf32> to vector<1x8x128xf32>
    %1068 = arith.mulf %1066, %1067 : vector<1x8x128xf32>
    %1069 = arith.addf %1064, %1068 : vector<1x8x128xf32>
    %c0_901 = arith.constant 0 : index
    %c3_902 = arith.constant 3 : index
    %c2_903 = arith.constant 2 : index
    %c0_904 = arith.constant 0 : index
    %1070 = vector.load %arg6[%c0_901, %c3_902, %c2_903, %c0_904] : memref<1x8x10x128xf32, #tpu.memory_space<vmem>>, vector<1x1x8x128xf32>
    %1071 = vector.shape_cast %1070 : vector<1x1x8x128xf32> to vector<1x8x128xf32>
    %1072 = vector.shape_cast %867 : vector<8x128xf32> to vector<1x8x128xf32>
    %1073 = arith.mulf %1071, %1072 : vector<1x8x128xf32>
    %1074 = arith.addf %1069, %1073 : vector<1x8x128xf32>
    %c0_905 = arith.constant 0 : index
    %c4_906 = arith.constant 4 : index
    %c0_907 = arith.constant 0 : index
    %c0_908 = arith.constant 0 : index
    %1075 = vector.load %arg6[%c0_905, %c4_906, %c0_907, %c0_908] : memref<1x8x10x128xf32, #tpu.memory_space<vmem>>, vector<1x1x8x128xf32>
    %1076 = vector.shape_cast %1075 : vector<1x1x8x128xf32> to vector<1x8x128xf32>
    %1077 = vector.shape_cast %872 : vector<8x128xf32> to vector<1x8x128xf32>
    %1078 = arith.mulf %1076, %1077 : vector<1x8x128xf32>
    %1079 = arith.addf %1074, %1078 : vector<1x8x128xf32>
    %c0_909 = arith.constant 0 : index
    %c4_910 = arith.constant 4 : index
    %c1_911 = arith.constant 1 : index
    %c0_912 = arith.constant 0 : index
    %1080 = vector.load %arg6[%c0_909, %c4_910, %c1_911, %c0_912] : memref<1x8x10x128xf32, #tpu.memory_space<vmem>>, vector<1x1x8x128xf32>
    %1081 = vector.shape_cast %1080 : vector<1x1x8x128xf32> to vector<1x8x128xf32>
    %1082 = vector.shape_cast %877 : vector<8x128xf32> to vector<1x8x128xf32>
    %1083 = arith.mulf %1081, %1082 : vector<1x8x128xf32>
    %1084 = arith.addf %1079, %1083 : vector<1x8x128xf32>
    %c0_913 = arith.constant 0 : index
    %c4_914 = arith.constant 4 : index
    %c2_915 = arith.constant 2 : index
    %c0_916 = arith.constant 0 : index
    %1085 = vector.load %arg6[%c0_913, %c4_914, %c2_915, %c0_916] : memref<1x8x10x128xf32, #tpu.memory_space<vmem>>, vector<1x1x8x128xf32>
    %1086 = vector.shape_cast %1085 : vector<1x1x8x128xf32> to vector<1x8x128xf32>
    %1087 = vector.shape_cast %882 : vector<8x128xf32> to vector<1x8x128xf32>
    %1088 = arith.mulf %1086, %1087 : vector<1x8x128xf32>
    %1089 = arith.addf %1084, %1088 : vector<1x8x128xf32>
    %1090 = vector.shape_cast %885 : vector<8x128xf32> to vector<1x8x128xf32>
    %1091 = arith.addf %1089, %1090 : vector<1x8x128xf32>
    %c0_917 = arith.constant 0 : index
    %c280_918 = arith.constant 280 : index
    %c0_919 = arith.constant 0 : index
    %1092 = vector.load %arg4[%c0_917, %c280_918, %c0_919] : memref<1x336x128xf32, #tpu.memory_space<vmem>>, vector<1x8x128xf32>
    tpu.vector_store %arg4[%c0_917, %c280_918, %c0_919], %1091 {strides = array<i32>} : memref<1x336x128xf32, #tpu.memory_space<vmem>>, vector<1x8x128xf32>,
    %c0_920 = arith.constant 0 : index
    %c3_921 = arith.constant 3 : index
    %c0_922 = arith.constant 0 : index
    %c0_923 = arith.constant 0 : index
    %1093 = vector.load %arg6[%c0_920, %c3_921, %c0_922, %c0_923] : memref<1x8x10x128xf32, #tpu.memory_space<vmem>>, vector<1x1x8x128xf32>
    %1094 = vector.shape_cast %1093 : vector<1x1x8x128xf32> to vector<1x8x128xf32>
    %1095 = vector.shape_cast %842 : vector<8x128xf32> to vector<1x8x128xf32>
    %1096 = arith.mulf %1094, %1095 : vector<1x8x128xf32>
    %c0_924 = arith.constant 0 : index
    %c3_925 = arith.constant 3 : index
    %c1_926 = arith.constant 1 : index
    %c0_927 = arith.constant 0 : index
    %1097 = vector.load %arg6[%c0_924, %c3_925, %c1_926, %c0_927] : memref<1x8x10x128xf32, #tpu.memory_space<vmem>>, vector<1x1x8x128xf32>
    %1098 = vector.shape_cast %1097 : vector<1x1x8x128xf32> to vector<1x8x128xf32>
    %1099 = vector.shape_cast %847 : vector<8x128xf32> to vector<1x8x128xf32>
    %1100 = arith.mulf %1098, %1099 : vector<1x8x128xf32>
    %1101 = arith.addf %1096, %1100 : vector<1x8x128xf32>
    %c0_928 = arith.constant 0 : index
    %c3_929 = arith.constant 3 : index
    %c2_930 = arith.constant 2 : index
    %c0_931 = arith.constant 0 : index
    %1102 = vector.load %arg6[%c0_928, %c3_929, %c2_930, %c0_931] : memref<1x8x10x128xf32, #tpu.memory_space<vmem>>, vector<1x1x8x128xf32>
    %1103 = vector.shape_cast %1102 : vector<1x1x8x128xf32> to vector<1x8x128xf32>
    %1104 = vector.shape_cast %852 : vector<8x128xf32> to vector<1x8x128xf32>
    %1105 = arith.mulf %1103, %1104 : vector<1x8x128xf32>
    %1106 = arith.addf %1101, %1105 : vector<1x8x128xf32>
    %c0_932 = arith.constant 0 : index
    %c4_933 = arith.constant 4 : index
    %c0_934 = arith.constant 0 : index
    %c0_935 = arith.constant 0 : index
    %1107 = vector.load %arg6[%c0_932, %c4_933, %c0_934, %c0_935] : memref<1x8x10x128xf32, #tpu.memory_space<vmem>>, vector<1x1x8x128xf32>
    %1108 = vector.shape_cast %1107 : vector<1x1x8x128xf32> to vector<1x8x128xf32>
    %1109 = vector.shape_cast %857 : vector<8x128xf32> to vector<1x8x128xf32>
    %1110 = arith.mulf %1108, %1109 : vector<1x8x128xf32>
    %1111 = arith.addf %1106, %1110 : vector<1x8x128xf32>
    %c0_936 = arith.constant 0 : index
    %c4_937 = arith.constant 4 : index
    %c1_938 = arith.constant 1 : index
    %c0_939 = arith.constant 0 : index
    %1112 = vector.load %arg6[%c0_936, %c4_937, %c1_938, %c0_939] : memref<1x8x10x128xf32, #tpu.memory_space<vmem>>, vector<1x1x8x128xf32>
    %1113 = vector.shape_cast %1112 : vector<1x1x8x128xf32> to vector<1x8x128xf32>
    %1114 = vector.shape_cast %862 : vector<8x128xf32> to vector<1x8x128xf32>
    %1115 = arith.mulf %1113, %1114 : vector<1x8x128xf32>
    %1116 = arith.addf %1111, %1115 : vector<1x8x128xf32>
    %c0_940 = arith.constant 0 : index
    %c4_941 = arith.constant 4 : index
    %c2_942 = arith.constant 2 : index
    %c0_943 = arith.constant 0 : index
    %1117 = vector.load %arg6[%c0_940, %c4_941, %c2_942, %c0_943] : memref<1x8x10x128xf32, #tpu.memory_space<vmem>>, vector<1x1x8x128xf32>
    %1118 = vector.shape_cast %1117 : vector<1x1x8x128xf32> to vector<1x8x128xf32>
    %1119 = vector.shape_cast %867 : vector<8x128xf32> to vector<1x8x128xf32>
    %1120 = arith.mulf %1118, %1119 : vector<1x8x128xf32>
    %1121 = arith.addf %1116, %1120 : vector<1x8x128xf32>
    %c0_944 = arith.constant 0 : index
    %c5_945 = arith.constant 5 : index
    %c0_946 = arith.constant 0 : index
    %c0_947 = arith.constant 0 : index
    %1122 = vector.load %arg6[%c0_944, %c5_945, %c0_946, %c0_947] : memref<1x8x10x128xf32, #tpu.memory_space<vmem>>, vector<1x1x8x128xf32>
    %1123 = vector.shape_cast %1122 : vector<1x1x8x128xf32> to vector<1x8x128xf32>
    %1124 = vector.shape_cast %872 : vector<8x128xf32> to vector<1x8x128xf32>
    %1125 = arith.mulf %1123, %1124 : vector<1x8x128xf32>
    %1126 = arith.addf %1121, %1125 : vector<1x8x128xf32>
    %c0_948 = arith.constant 0 : index
    %c5_949 = arith.constant 5 : index
    %c1_950 = arith.constant 1 : index
    %c0_951 = arith.constant 0 : index
    %1127 = vector.load %arg6[%c0_948, %c5_949, %c1_950, %c0_951] : memref<1x8x10x128xf32, #tpu.memory_space<vmem>>, vector<1x1x8x128xf32>
    %1128 = vector.shape_cast %1127 : vector<1x1x8x128xf32> to vector<1x8x128xf32>
    %1129 = vector.shape_cast %877 : vector<8x128xf32> to vector<1x8x128xf32>
    %1130 = arith.mulf %1128, %1129 : vector<1x8x128xf32>
    %1131 = arith.addf %1126, %1130 : vector<1x8x128xf32>
    %c0_952 = arith.constant 0 : index
    %c5_953 = arith.constant 5 : index
    %c2_954 = arith.constant 2 : index
    %c0_955 = arith.constant 0 : index
    %1132 = vector.load %arg6[%c0_952, %c5_953, %c2_954, %c0_955] : memref<1x8x10x128xf32, #tpu.memory_space<vmem>>, vector<1x1x8x128xf32>
    %1133 = vector.shape_cast %1132 : vector<1x1x8x128xf32> to vector<1x8x128xf32>
    %1134 = vector.shape_cast %882 : vector<8x128xf32> to vector<1x8x128xf32>
    %1135 = arith.mulf %1133, %1134 : vector<1x8x128xf32>
    %1136 = arith.addf %1131, %1135 : vector<1x8x128xf32>
    %1137 = vector.shape_cast %885 : vector<8x128xf32> to vector<1x8x128xf32>
    %1138 = arith.addf %1136, %1137 : vector<1x8x128xf32>
    %c0_956 = arith.constant 0 : index
    %c288_957 = arith.constant 288 : index
    %c0_958 = arith.constant 0 : index
    %1139 = vector.load %arg4[%c0_956, %c288_957, %c0_958] : memref<1x336x128xf32, #tpu.memory_space<vmem>>, vector<1x8x128xf32>
    tpu.vector_store %arg4[%c0_956, %c288_957, %c0_958], %1138 {strides = array<i32>} : memref<1x336x128xf32, #tpu.memory_space<vmem>>, vector<1x8x128xf32>,
    %c0_959 = arith.constant 0 : index
    %c4_960 = arith.constant 4 : index
    %c0_961 = arith.constant 0 : index
    %c0_962 = arith.constant 0 : index
    %1140 = vector.load %arg6[%c0_959, %c4_960, %c0_961, %c0_962] : memref<1x8x10x128xf32, #tpu.memory_space<vmem>>, vector<1x1x8x128xf32>
    %1141 = vector.shape_cast %1140 : vector<1x1x8x128xf32> to vector<1x8x128xf32>
    %1142 = vector.shape_cast %842 : vector<8x128xf32> to vector<1x8x128xf32>
    %1143 = arith.mulf %1141, %1142 : vector<1x8x128xf32>
    %c0_963 = arith.constant 0 : index
    %c4_964 = arith.constant 4 : index
    %c1_965 = arith.constant 1 : index
    %c0_966 = arith.constant 0 : index
    %1144 = vector.load %arg6[%c0_963, %c4_964, %c1_965, %c0_966] : memref<1x8x10x128xf32, #tpu.memory_space<vmem>>, vector<1x1x8x128xf32>
    %1145 = vector.shape_cast %1144 : vector<1x1x8x128xf32> to vector<1x8x128xf32>
    %1146 = vector.shape_cast %847 : vector<8x128xf32> to vector<1x8x128xf32>
    %1147 = arith.mulf %1145, %1146 : vector<1x8x128xf32>
    %1148 = arith.addf %1143, %1147 : vector<1x8x128xf32>
    %c0_967 = arith.constant 0 : index
    %c4_968 = arith.constant 4 : index
    %c2_969 = arith.constant 2 : index
    %c0_970 = arith.constant 0 : index
    %1149 = vector.load %arg6[%c0_967, %c4_968, %c2_969, %c0_970] : memref<1x8x10x128xf32, #tpu.memory_space<vmem>>, vector<1x1x8x128xf32>
    %1150 = vector.shape_cast %1149 : vector<1x1x8x128xf32> to vector<1x8x128xf32>
    %1151 = vector.shape_cast %852 : vector<8x128xf32> to vector<1x8x128xf32>
    %1152 = arith.mulf %1150, %1151 : vector<1x8x128xf32>
    %1153 = arith.addf %1148, %1152 : vector<1x8x128xf32>
    %c0_971 = arith.constant 0 : index
    %c5_972 = arith.constant 5 : index
    %c0_973 = arith.constant 0 : index
    %c0_974 = arith.constant 0 : index
    %1154 = vector.load %arg6[%c0_971, %c5_972, %c0_973, %c0_974] : memref<1x8x10x128xf32, #tpu.memory_space<vmem>>, vector<1x1x8x128xf32>
    %1155 = vector.shape_cast %1154 : vector<1x1x8x128xf32> to vector<1x8x128xf32>
    %1156 = vector.shape_cast %857 : vector<8x128xf32> to vector<1x8x128xf32>
    %1157 = arith.mulf %1155, %1156 : vector<1x8x128xf32>
    %1158 = arith.addf %1153, %1157 : vector<1x8x128xf32>
    %c0_975 = arith.constant 0 : index
    %c5_976 = arith.constant 5 : index
    %c1_977 = arith.constant 1 : index
    %c0_978 = arith.constant 0 : index
    %1159 = vector.load %arg6[%c0_975, %c5_976, %c1_977, %c0_978] : memref<1x8x10x128xf32, #tpu.memory_space<vmem>>, vector<1x1x8x128xf32>
    %1160 = vector.shape_cast %1159 : vector<1x1x8x128xf32> to vector<1x8x128xf32>
    %1161 = vector.shape_cast %862 : vector<8x128xf32> to vector<1x8x128xf32>
    %1162 = arith.mulf %1160, %1161 : vector<1x8x128xf32>
    %1163 = arith.addf %1158, %1162 : vector<1x8x128xf32>
    %c0_979 = arith.constant 0 : index
    %c5_980 = arith.constant 5 : index
    %c2_981 = arith.constant 2 : index
    %c0_982 = arith.constant 0 : index
    %1164 = vector.load %arg6[%c0_979, %c5_980, %c2_981, %c0_982] : memref<1x8x10x128xf32, #tpu.memory_space<vmem>>, vector<1x1x8x128xf32>
    %1165 = vector.shape_cast %1164 : vector<1x1x8x128xf32> to vector<1x8x128xf32>
    %1166 = vector.shape_cast %867 : vector<8x128xf32> to vector<1x8x128xf32>
    %1167 = arith.mulf %1165, %1166 : vector<1x8x128xf32>
    %1168 = arith.addf %1163, %1167 : vector<1x8x128xf32>
    %c0_983 = arith.constant 0 : index
    %c6_984 = arith.constant 6 : index
    %c0_985 = arith.constant 0 : index
    %c0_986 = arith.constant 0 : index
    %1169 = vector.load %arg6[%c0_983, %c6_984, %c0_985, %c0_986] : memref<1x8x10x128xf32, #tpu.memory_space<vmem>>, vector<1x1x8x128xf32>
    %1170 = vector.shape_cast %1169 : vector<1x1x8x128xf32> to vector<1x8x128xf32>
    %1171 = vector.shape_cast %872 : vector<8x128xf32> to vector<1x8x128xf32>
    %1172 = arith.mulf %1170, %1171 : vector<1x8x128xf32>
    %1173 = arith.addf %1168, %1172 : vector<1x8x128xf32>
    %c0_987 = arith.constant 0 : index
    %c6_988 = arith.constant 6 : index
    %c1_989 = arith.constant 1 : index
    %c0_990 = arith.constant 0 : index
    %1174 = vector.load %arg6[%c0_987, %c6_988, %c1_989, %c0_990] : memref<1x8x10x128xf32, #tpu.memory_space<vmem>>, vector<1x1x8x128xf32>
    %1175 = vector.shape_cast %1174 : vector<1x1x8x128xf32> to vector<1x8x128xf32>
    %1176 = vector.shape_cast %877 : vector<8x128xf32> to vector<1x8x128xf32>
    %1177 = arith.mulf %1175, %1176 : vector<1x8x128xf32>
    %1178 = arith.addf %1173, %1177 : vector<1x8x128xf32>
    %c0_991 = arith.constant 0 : index
    %c6_992 = arith.constant 6 : index
    %c2_993 = arith.constant 2 : index
    %c0_994 = arith.constant 0 : index
    %1179 = vector.load %arg6[%c0_991, %c6_992, %c2_993, %c0_994] : memref<1x8x10x128xf32, #tpu.memory_space<vmem>>, vector<1x1x8x128xf32>
    %1180 = vector.shape_cast %1179 : vector<1x1x8x128xf32> to vector<1x8x128xf32>
    %1181 = vector.shape_cast %882 : vector<8x128xf32> to vector<1x8x128xf32>
    %1182 = arith.mulf %1180, %1181 : vector<1x8x128xf32>
    %1183 = arith.addf %1178, %1182 : vector<1x8x128xf32>
    %1184 = vector.shape_cast %885 : vector<8x128xf32> to vector<1x8x128xf32>
    %1185 = arith.addf %1183, %1184 : vector<1x8x128xf32>
    %c0_995 = arith.constant 0 : index
    %c296_996 = arith.constant 296 : index
    %c0_997 = arith.constant 0 : index
    %1186 = vector.load %arg4[%c0_995, %c296_996, %c0_997] : memref<1x336x128xf32, #tpu.memory_space<vmem>>, vector<1x8x128xf32>
    tpu.vector_store %arg4[%c0_995, %c296_996, %c0_997], %1185 {strides = array<i32>} : memref<1x336x128xf32, #tpu.memory_space<vmem>>, vector<1x8x128xf32>,
    %c0_998 = arith.constant 0 : index
    %c5_999 = arith.constant 5 : index
    %c0_1000 = arith.constant 0 : index
    %c0_1001 = arith.constant 0 : index
    %1187 = vector.load %arg6[%c0_998, %c5_999, %c0_1000, %c0_1001] : memref<1x8x10x128xf32, #tpu.memory_space<vmem>>, vector<1x1x8x128xf32>
    %1188 = vector.shape_cast %1187 : vector<1x1x8x128xf32> to vector<1x8x128xf32>
    %1189 = vector.shape_cast %842 : vector<8x128xf32> to vector<1x8x128xf32>
    %1190 = arith.mulf %1188, %1189 : vector<1x8x128xf32>
    %c0_1002 = arith.constant 0 : index
    %c5_1003 = arith.constant 5 : index
    %c1_1004 = arith.constant 1 : index
    %c0_1005 = arith.constant 0 : index
    %1191 = vector.load %arg6[%c0_1002, %c5_1003, %c1_1004, %c0_1005] : memref<1x8x10x128xf32, #tpu.memory_space<vmem>>, vector<1x1x8x128xf32>
    %1192 = vector.shape_cast %1191 : vector<1x1x8x128xf32> to vector<1x8x128xf32>
    %1193 = vector.shape_cast %847 : vector<8x128xf32> to vector<1x8x128xf32>
    %1194 = arith.mulf %1192, %1193 : vector<1x8x128xf32>
    %1195 = arith.addf %1190, %1194 : vector<1x8x128xf32>
    %c0_1006 = arith.constant 0 : index
    %c5_1007 = arith.constant 5 : index
    %c2_1008 = arith.constant 2 : index
    %c0_1009 = arith.constant 0 : index
    %1196 = vector.load %arg6[%c0_1006, %c5_1007, %c2_1008, %c0_1009] : memref<1x8x10x128xf32, #tpu.memory_space<vmem>>, vector<1x1x8x128xf32>
    %1197 = vector.shape_cast %1196 : vector<1x1x8x128xf32> to vector<1x8x128xf32>
    %1198 = vector.shape_cast %852 : vector<8x128xf32> to vector<1x8x128xf32>
    %1199 = arith.mulf %1197, %1198 : vector<1x8x128xf32>
    %1200 = arith.addf %1195, %1199 : vector<1x8x128xf32>
    %c0_1010 = arith.constant 0 : index
    %c6_1011 = arith.constant 6 : index
    %c0_1012 = arith.constant 0 : index
    %c0_1013 = arith.constant 0 : index
    %1201 = vector.load %arg6[%c0_1010, %c6_1011, %c0_1012, %c0_1013] : memref<1x8x10x128xf32, #tpu.memory_space<vmem>>, vector<1x1x8x128xf32>
    %1202 = vector.shape_cast %1201 : vector<1x1x8x128xf32> to vector<1x8x128xf32>
    %1203 = vector.shape_cast %857 : vector<8x128xf32> to vector<1x8x128xf32>
    %1204 = arith.mulf %1202, %1203 : vector<1x8x128xf32>
    %1205 = arith.addf %1200, %1204 : vector<1x8x128xf32>
    %c0_1014 = arith.constant 0 : index
    %c6_1015 = arith.constant 6 : index
    %c1_1016 = arith.constant 1 : index
    %c0_1017 = arith.constant 0 : index
    %1206 = vector.load %arg6[%c0_1014, %c6_1015, %c1_1016, %c0_1017] : memref<1x8x10x128xf32, #tpu.memory_space<vmem>>, vector<1x1x8x128xf32>
    %1207 = vector.shape_cast %1206 : vector<1x1x8x128xf32> to vector<1x8x128xf32>
    %1208 = vector.shape_cast %862 : vector<8x128xf32> to vector<1x8x128xf32>
    %1209 = arith.mulf %1207, %1208 : vector<1x8x128xf32>
    %1210 = arith.addf %1205, %1209 : vector<1x8x128xf32>
    %c0_1018 = arith.constant 0 : index
    %c6_1019 = arith.constant 6 : index
    %c2_1020 = arith.constant 2 : index
    %c0_1021 = arith.constant 0 : index
    %1211 = vector.load %arg6[%c0_1018, %c6_1019, %c2_1020, %c0_1021] : memref<1x8x10x128xf32, #tpu.memory_space<vmem>>, vector<1x1x8x128xf32>
    %1212 = vector.shape_cast %1211 : vector<1x1x8x128xf32> to vector<1x8x128xf32>
    %1213 = vector.shape_cast %867 : vector<8x128xf32> to vector<1x8x128xf32>
    %1214 = arith.mulf %1212, %1213 : vector<1x8x128xf32>
    %1215 = arith.addf %1210, %1214 : vector<1x8x128xf32>
    %c0_1022 = arith.constant 0 : index
    %c7_1023 = arith.constant 7 : index
    %c0_1024 = arith.constant 0 : index
    %c0_1025 = arith.constant 0 : index
    %1216 = vector.load %arg6[%c0_1022, %c7_1023, %c0_1024, %c0_1025] : memref<1x8x10x128xf32, #tpu.memory_space<vmem>>, vector<1x1x8x128xf32>
    %1217 = vector.shape_cast %1216 : vector<1x1x8x128xf32> to vector<1x8x128xf32>
    %1218 = vector.shape_cast %872 : vector<8x128xf32> to vector<1x8x128xf32>
    %1219 = arith.mulf %1217, %1218 : vector<1x8x128xf32>
    %1220 = arith.addf %1215, %1219 : vector<1x8x128xf32>
    %c0_1026 = arith.constant 0 : index
    %c7_1027 = arith.constant 7 : index
    %c1_1028 = arith.constant 1 : index
    %c0_1029 = arith.constant 0 : index
    %1221 = vector.load %arg6[%c0_1026, %c7_1027, %c1_1028, %c0_1029] : memref<1x8x10x128xf32, #tpu.memory_space<vmem>>, vector<1x1x8x128xf32>
    %1222 = vector.shape_cast %1221 : vector<1x1x8x128xf32> to vector<1x8x128xf32>
    %1223 = vector.shape_cast %877 : vector<8x128xf32> to vector<1x8x128xf32>
    %1224 = arith.mulf %1222, %1223 : vector<1x8x128xf32>
    %1225 = arith.addf %1220, %1224 : vector<1x8x128xf32>
    %c0_1030 = arith.constant 0 : index
    %c7_1031 = arith.constant 7 : index
    %c2_1032 = arith.constant 2 : index
    %c0_1033 = arith.constant 0 : index
    %1226 = vector.load %arg6[%c0_1030, %c7_1031, %c2_1032, %c0_1033] : memref<1x8x10x128xf32, #tpu.memory_space<vmem>>, vector<1x1x8x128xf32>
    %1227 = vector.shape_cast %1226 : vector<1x1x8x128xf32> to vector<1x8x128xf32>
    %1228 = vector.shape_cast %882 : vector<8x128xf32> to vector<1x8x128xf32>
    %1229 = arith.mulf %1227, %1228 : vector<1x8x128xf32>
    %1230 = arith.addf %1225, %1229 : vector<1x8x128xf32>
    %1231 = vector.shape_cast %885 : vector<8x128xf32> to vector<1x8x128xf32>
    %1232 = arith.addf %1230, %1231 : vector<1x8x128xf32>
    %c0_1034 = arith.constant 0 : index
    %c304_1035 = arith.constant 304 : index
    %c0_1036 = arith.constant 0 : index
    %1233 = vector.load %arg4[%c0_1034, %c304_1035, %c0_1036] : memref<1x336x128xf32, #tpu.memory_space<vmem>>, vector<1x8x128xf32>
    tpu.vector_store %arg4[%c0_1034, %c304_1035, %c0_1036], %1232 {strides = array<i32>} : memref<1x336x128xf32, #tpu.memory_space<vmem>>, vector<1x8x128xf32>,
    %c0_1037 = arith.constant 0 : index
    %c6_1038 = arith.constant 6 : index
    %c0_1039 = arith.constant 0 : index
    %c0_1040 = arith.constant 0 : index
    %1234 = vector.load %arg6[%c0_1037, %c6_1038, %c0_1039, %c0_1040] : memref<1x8x10x128xf32, #tpu.memory_space<vmem>>, vector<1x1x8x128xf32>
    %1235 = vector.shape_cast %1234 : vector<1x1x8x128xf32> to vector<1x8x128xf32>
    %1236 = vector.shape_cast %842 : vector<8x128xf32> to vector<1x8x128xf32>
    %1237 = arith.mulf %1235, %1236 : vector<1x8x128xf32>
    %c0_1041 = arith.constant 0 : index
    %c6_1042 = arith.constant 6 : index
    %c1_1043 = arith.constant 1 : index
    %c0_1044 = arith.constant 0 : index
    %1238 = vector.load %arg6[%c0_1041, %c6_1042, %c1_1043, %c0_1044] : memref<1x8x10x128xf32, #tpu.memory_space<vmem>>, vector<1x1x8x128xf32>
    %1239 = vector.shape_cast %1238 : vector<1x1x8x128xf32> to vector<1x8x128xf32>
    %1240 = vector.shape_cast %847 : vector<8x128xf32> to vector<1x8x128xf32>
    %1241 = arith.mulf %1239, %1240 : vector<1x8x128xf32>
    %1242 = arith.addf %1237, %1241 : vector<1x8x128xf32>
    %c0_1045 = arith.constant 0 : index
    %c6_1046 = arith.constant 6 : index
    %c2_1047 = arith.constant 2 : index
    %c0_1048 = arith.constant 0 : index
    %1243 = vector.load %arg6[%c0_1045, %c6_1046, %c2_1047, %c0_1048] : memref<1x8x10x128xf32, #tpu.memory_space<vmem>>, vector<1x1x8x128xf32>
    %1244 = vector.shape_cast %1243 : vector<1x1x8x128xf32> to vector<1x8x128xf32>
    %1245 = vector.shape_cast %852 : vector<8x128xf32> to vector<1x8x128xf32>
    %1246 = arith.mulf %1244, %1245 : vector<1x8x128xf32>
    %1247 = arith.addf %1242, %1246 : vector<1x8x128xf32>
    %c0_1049 = arith.constant 0 : index
    %c7_1050 = arith.constant 7 : index
    %c0_1051 = arith.constant 0 : index
    %c0_1052 = arith.constant 0 : index
    %1248 = vector.load %arg6[%c0_1049, %c7_1050, %c0_1051, %c0_1052] : memref<1x8x10x128xf32, #tpu.memory_space<vmem>>, vector<1x1x8x128xf32>
    %1249 = vector.shape_cast %1248 : vector<1x1x8x128xf32> to vector<1x8x128xf32>
    %1250 = vector.shape_cast %857 : vector<8x128xf32> to vector<1x8x128xf32>
    %1251 = arith.mulf %1249, %1250 : vector<1x8x128xf32>
    %1252 = arith.addf %1247, %1251 : vector<1x8x128xf32>
    %c0_1053 = arith.constant 0 : index
    %c7_1054 = arith.constant 7 : index
    %c1_1055 = arith.constant 1 : index
    %c0_1056 = arith.constant 0 : index
    %1253 = vector.load %arg6[%c0_1053, %c7_1054, %c1_1055, %c0_1056] : memref<1x8x10x128xf32, #tpu.memory_space<vmem>>, vector<1x1x8x128xf32>
    %1254 = vector.shape_cast %1253 : vector<1x1x8x128xf32> to vector<1x8x128xf32>
    %1255 = vector.shape_cast %862 : vector<8x128xf32> to vector<1x8x128xf32>
    %1256 = arith.mulf %1254, %1255 : vector<1x8x128xf32>
    %1257 = arith.addf %1252, %1256 : vector<1x8x128xf32>
    %c0_1057 = arith.constant 0 : index
    %c7_1058 = arith.constant 7 : index
    %c2_1059 = arith.constant 2 : index
    %c0_1060 = arith.constant 0 : index
    %1258 = vector.load %arg6[%c0_1057, %c7_1058, %c2_1059, %c0_1060] : memref<1x8x10x128xf32, #tpu.memory_space<vmem>>, vector<1x1x8x128xf32>
    %1259 = vector.shape_cast %1258 : vector<1x1x8x128xf32> to vector<1x8x128xf32>
    %1260 = vector.shape_cast %867 : vector<8x128xf32> to vector<1x8x128xf32>
    %1261 = arith.mulf %1259, %1260 : vector<1x8x128xf32>
    %1262 = arith.addf %1257, %1261 : vector<1x8x128xf32>
    %1263 = vector.shape_cast %885 : vector<8x128xf32> to vector<1x8x128xf32>
    %1264 = arith.addf %1262, %1263 : vector<1x8x128xf32>
    %c0_1061 = arith.constant 0 : index
    %c312_1062 = arith.constant 312 : index
    %c0_1063 = arith.constant 0 : index
    %1265 = vector.load %arg4[%c0_1061, %c312_1062, %c0_1063] : memref<1x336x128xf32, #tpu.memory_space<vmem>>, vector<1x8x128xf32>
    tpu.vector_store %arg4[%c0_1061, %c312_1062, %c0_1063], %1264 {strides = array<i32>} : memref<1x336x128xf32, #tpu.memory_space<vmem>>, vector<1x8x128xf32>,
    %c0_1064 = arith.constant 0 : index
    %c0_1065 = arith.constant 0 : index
    %1266 = vector.load %arg1[%c0_1064, %c0_1065] : memref<9x128xf32, #tpu.memory_space<vmem>>, vector<1x128xf32>
    %1267 = vector.shape_cast %1266 : vector<1x128xf32> to vector<128xf32>
    %1268 = vector.shape_cast %1267 : vector<128xf32> to vector<1x128xf32>
    %1269 = vector.shape_cast %1268 : vector<1x128xf32> to vector<1x128xf32>
    %1270 = vector.broadcast %1269 : vector<1x128xf32> to vector<4x128xf32>
    %c1_1066 = arith.constant 1 : index
    %c0_1067 = arith.constant 0 : index
    %1271 = vector.load %arg1[%c1_1066, %c0_1067] : memref<9x128xf32, #tpu.memory_space<vmem>>, vector<1x128xf32>
    %1272 = vector.shape_cast %1271 : vector<1x128xf32> to vector<128xf32>
    %1273 = vector.shape_cast %1272 : vector<128xf32> to vector<1x128xf32>
    %1274 = vector.shape_cast %1273 : vector<1x128xf32> to vector<1x128xf32>
    %1275 = vector.broadcast %1274 : vector<1x128xf32> to vector<4x128xf32>
    %c2_1068 = arith.constant 2 : index
    %c0_1069 = arith.constant 0 : index
    %1276 = vector.load %arg1[%c2_1068, %c0_1069] : memref<9x128xf32, #tpu.memory_space<vmem>>, vector<1x128xf32>
    %1277 = vector.shape_cast %1276 : vector<1x128xf32> to vector<128xf32>
    %1278 = vector.shape_cast %1277 : vector<128xf32> to vector<1x128xf32>
    %1279 = vector.shape_cast %1278 : vector<1x128xf32> to vector<1x128xf32>
    %1280 = vector.broadcast %1279 : vector<1x128xf32> to vector<4x128xf32>
    %c3_1070 = arith.constant 3 : index
    %c0_1071 = arith.constant 0 : index
    %1281 = vector.load %arg1[%c3_1070, %c0_1071] : memref<9x128xf32, #tpu.memory_space<vmem>>, vector<1x128xf32>
    %1282 = vector.shape_cast %1281 : vector<1x128xf32> to vector<128xf32>
    %1283 = vector.shape_cast %1282 : vector<128xf32> to vector<1x128xf32>
    %1284 = vector.shape_cast %1283 : vector<1x128xf32> to vector<1x128xf32>
    %1285 = vector.broadcast %1284 : vector<1x128xf32> to vector<4x128xf32>
    %c4_1072 = arith.constant 4 : index
    %c0_1073 = arith.constant 0 : index
    %1286 = vector.load %arg1[%c4_1072, %c0_1073] : memref<9x128xf32, #tpu.memory_space<vmem>>, vector<1x128xf32>
    %1287 = vector.shape_cast %1286 : vector<1x128xf32> to vector<128xf32>
    %1288 = vector.shape_cast %1287 : vector<128xf32> to vector<1x128xf32>
    %1289 = vector.shape_cast %1288 : vector<1x128xf32> to vector<1x128xf32>
    %1290 = vector.broadcast %1289 : vector<1x128xf32> to vector<4x128xf32>
    %c5_1074 = arith.constant 5 : index
    %c0_1075 = arith.constant 0 : index
    %1291 = vector.load %arg1[%c5_1074, %c0_1075] : memref<9x128xf32, #tpu.memory_space<vmem>>, vector<1x128xf32>
    %1292 = vector.shape_cast %1291 : vector<1x128xf32> to vector<128xf32>
    %1293 = vector.shape_cast %1292 : vector<128xf32> to vector<1x128xf32>
    %1294 = vector.shape_cast %1293 : vector<1x128xf32> to vector<1x128xf32>
    %1295 = vector.broadcast %1294 : vector<1x128xf32> to vector<4x128xf32>
    %c6_1076 = arith.constant 6 : index
    %c0_1077 = arith.constant 0 : index
    %1296 = vector.load %arg1[%c6_1076, %c0_1077] : memref<9x128xf32, #tpu.memory_space<vmem>>, vector<1x128xf32>
    %1297 = vector.shape_cast %1296 : vector<1x128xf32> to vector<128xf32>
    %1298 = vector.shape_cast %1297 : vector<128xf32> to vector<1x128xf32>
    %1299 = vector.shape_cast %1298 : vector<1x128xf32> to vector<1x128xf32>
    %1300 = vector.broadcast %1299 : vector<1x128xf32> to vector<4x128xf32>
    %c7_1078 = arith.constant 7 : index
    %c0_1079 = arith.constant 0 : index
    %1301 = vector.load %arg1[%c7_1078, %c0_1079] : memref<9x128xf32, #tpu.memory_space<vmem>>, vector<1x128xf32>
    %1302 = vector.shape_cast %1301 : vector<1x128xf32> to vector<128xf32>
    %1303 = vector.shape_cast %1302 : vector<128xf32> to vector<1x128xf32>
    %1304 = vector.shape_cast %1303 : vector<1x128xf32> to vector<1x128xf32>
    %1305 = vector.broadcast %1304 : vector<1x128xf32> to vector<4x128xf32>
    %c8_1080 = arith.constant 8 : index
    %c0_1081 = arith.constant 0 : index
    %1306 = vector.load %arg1[%c8_1080, %c0_1081] : memref<9x128xf32, #tpu.memory_space<vmem>>, vector<1x128xf32>
    %1307 = vector.shape_cast %1306 : vector<1x128xf32> to vector<128xf32>
    %1308 = vector.shape_cast %1307 : vector<128xf32> to vector<1x128xf32>
    %1309 = vector.shape_cast %1308 : vector<1x128xf32> to vector<1x128xf32>
    %1310 = vector.broadcast %1309 : vector<1x128xf32> to vector<4x128xf32>
    %1311 = vector.shape_cast %1 : vector<128xf32> to vector<1x128xf32>
    %1312 = vector.shape_cast %1311 : vector<1x128xf32> to vector<1x128xf32>
    %1313 = vector.broadcast %1312 : vector<1x128xf32> to vector<4x128xf32>
    %cst_1082 = arith.constant 0.000000e+00 : f32
    %1314 = vector.broadcast %cst_1082 : f32 to vector<1x4x6x128xf32>
    %c0_1083 = arith.constant 0 : index
    %c0_1084 = arith.constant 0 : index
    %c0_1085 = arith.constant 0 : index
    %c0_1086 = arith.constant 0 : index
    %1315 = vector.load %arg7[%c0_1083, %c0_1084, %c0_1085, %c0_1086] : memref<1x4x6x128xf32, #tpu.memory_space<vmem>>, vector<1x4x6x128xf32>
    tpu.vector_store %arg7[%c0_1083, %c0_1084, %c0_1085, %c0_1086], %1314 {strides = array<i32>} : memref<1x4x6x128xf32, #tpu.memory_space<vmem>>, vector<1x4x6x128xf32>,
    %c0_1087 = arith.constant 0 : index
    %c320 = arith.constant 320 : index
    %c0_1088 = arith.constant 0 : index
    %1316 = vector.load %arg3[%c0_1087, %c320, %c0_1088] : memref<1x336x128xf32, #tpu.memory_space<vmem>>, vector<1x4x128xf32>
    %c0_1089 = arith.constant 0 : index
    %c0_1090 = arith.constant 0 : index
    %c1_1091 = arith.constant 1 : index
    %c0_1092 = arith.constant 0 : index
    %1317 = vector.load %arg7[%c0_1089, %c0_1090, %c1_1091, %c0_1092] : memref<1x4x6x128xf32, #tpu.memory_space<vmem>>, vector<1x1x4x128xf32>
    %1318 = vector.shape_cast %1317 : vector<1x1x4x128xf32> to vector<1x4x128xf32>
    %1319 = vector.shape_cast %1316 : vector<1x4x128xf32> to vector<1x1x4x128xf32>
    tpu.vector_store %arg7[%c0_1089, %c0_1090, %c1_1091, %c0_1092], %1319 {strides = array<i32>} : memref<1x4x6x128xf32, #tpu.memory_space<vmem>>, vector<1x1x4x128xf32>,
    %c0_1093 = arith.constant 0 : index
    %c324 = arith.constant 324 : index
    %c0_1094 = arith.constant 0 : index
    %1320 = vector.load %arg3[%c0_1093, %c324, %c0_1094] : memref<1x336x128xf32, #tpu.memory_space<vmem>>, vector<1x4x128xf32>
    %c0_1095 = arith.constant 0 : index
    %c1_1096 = arith.constant 1 : index
    %c1_1097 = arith.constant 1 : index
    %c0_1098 = arith.constant 0 : index
    %1321 = vector.load %arg7[%c0_1095, %c1_1096, %c1_1097, %c0_1098] : memref<1x4x6x128xf32, #tpu.memory_space<vmem>>, vector<1x1x4x128xf32>
    %1322 = vector.shape_cast %1321 : vector<1x1x4x128xf32> to vector<1x4x128xf32>
    %1323 = vector.shape_cast %1320 : vector<1x4x128xf32> to vector<1x1x4x128xf32>
    tpu.vector_store %arg7[%c0_1095, %c1_1096, %c1_1097, %c0_1098], %1323 {strides = array<i32>} : memref<1x4x6x128xf32, #tpu.memory_space<vmem>>, vector<1x1x4x128xf32>,
    %c0_1099 = arith.constant 0 : index
    %c328 = arith.constant 328 : index
    %c0_1100 = arith.constant 0 : index
    %1324 = vector.load %arg3[%c0_1099, %c328, %c0_1100] : memref<1x336x128xf32, #tpu.memory_space<vmem>>, vector<1x4x128xf32>
    %c0_1101 = arith.constant 0 : index
    %c2_1102 = arith.constant 2 : index
    %c1_1103 = arith.constant 1 : index
    %c0_1104 = arith.constant 0 : index
    %1325 = vector.load %arg7[%c0_1101, %c2_1102, %c1_1103, %c0_1104] : memref<1x4x6x128xf32, #tpu.memory_space<vmem>>, vector<1x1x4x128xf32>
    %1326 = vector.shape_cast %1325 : vector<1x1x4x128xf32> to vector<1x4x128xf32>
    %1327 = vector.shape_cast %1324 : vector<1x4x128xf32> to vector<1x1x4x128xf32>
    tpu.vector_store %arg7[%c0_1101, %c2_1102, %c1_1103, %c0_1104], %1327 {strides = array<i32>} : memref<1x4x6x128xf32, #tpu.memory_space<vmem>>, vector<1x1x4x128xf32>,
    %c0_1105 = arith.constant 0 : index
    %c332 = arith.constant 332 : index
    %c0_1106 = arith.constant 0 : index
    %1328 = vector.load %arg3[%c0_1105, %c332, %c0_1106] : memref<1x336x128xf32, #tpu.memory_space<vmem>>, vector<1x4x128xf32>
    %c0_1107 = arith.constant 0 : index
    %c3_1108 = arith.constant 3 : index
    %c1_1109 = arith.constant 1 : index
    %c0_1110 = arith.constant 0 : index
    %1329 = vector.load %arg7[%c0_1107, %c3_1108, %c1_1109, %c0_1110] : memref<1x4x6x128xf32, #tpu.memory_space<vmem>>, vector<1x1x4x128xf32>
    %1330 = vector.shape_cast %1329 : vector<1x1x4x128xf32> to vector<1x4x128xf32>
    %1331 = vector.shape_cast %1328 : vector<1x4x128xf32> to vector<1x1x4x128xf32>
    tpu.vector_store %arg7[%c0_1107, %c3_1108, %c1_1109, %c0_1110], %1331 {strides = array<i32>} : memref<1x4x6x128xf32, #tpu.memory_space<vmem>>, vector<1x1x4x128xf32>,
    %c0_1111 = arith.constant 0 : index
    %c0_1112 = arith.constant 0 : index
    %c0_1113 = arith.constant 0 : index
    %c0_1114 = arith.constant 0 : index
    %1332 = vector.load %arg7[%c0_1111, %c0_1112, %c0_1113, %c0_1114] : memref<1x4x6x128xf32, #tpu.memory_space<vmem>>, vector<1x1x4x128xf32>
    %1333 = vector.shape_cast %1332 : vector<1x1x4x128xf32> to vector<1x4x128xf32>
    %1334 = vector.shape_cast %1285 : vector<4x128xf32> to vector<1x4x128xf32>
    %1335 = arith.mulf %1333, %1334 : vector<1x4x128xf32>
    %c0_1115 = arith.constant 0 : index
    %c0_1116 = arith.constant 0 : index
    %c1_1117 = arith.constant 1 : index
    %c0_1118 = arith.constant 0 : index
    %1336 = vector.load %arg7[%c0_1115, %c0_1116, %c1_1117, %c0_1118] : memref<1x4x6x128xf32, #tpu.memory_space<vmem>>, vector<1x1x4x128xf32>
    %1337 = vector.shape_cast %1336 : vector<1x1x4x128xf32> to vector<1x4x128xf32>
    %1338 = vector.shape_cast %1290 : vector<4x128xf32> to vector<1x4x128xf32>
    %1339 = arith.mulf %1337, %1338 : vector<1x4x128xf32>
    %1340 = arith.addf %1335, %1339 : vector<1x4x128xf32>
    %c0_1119 = arith.constant 0 : index
    %c0_1120 = arith.constant 0 : index
    %c2_1121 = arith.constant 2 : index
    %c0_1122 = arith.constant 0 : index
    %1341 = vector.load %arg7[%c0_1119, %c0_1120, %c2_1121, %c0_1122] : memref<1x4x6x128xf32, #tpu.memory_space<vmem>>, vector<1x1x4x128xf32>
    %1342 = vector.shape_cast %1341 : vector<1x1x4x128xf32> to vector<1x4x128xf32>
    %1343 = vector.shape_cast %1295 : vector<4x128xf32> to vector<1x4x128xf32>
    %1344 = arith.mulf %1342, %1343 : vector<1x4x128xf32>
    %1345 = arith.addf %1340, %1344 : vector<1x4x128xf32>
    %c0_1123 = arith.constant 0 : index
    %c1_1124 = arith.constant 1 : index
    %c0_1125 = arith.constant 0 : index
    %c0_1126 = arith.constant 0 : index
    %1346 = vector.load %arg7[%c0_1123, %c1_1124, %c0_1125, %c0_1126] : memref<1x4x6x128xf32, #tpu.memory_space<vmem>>, vector<1x1x4x128xf32>
    %1347 = vector.shape_cast %1346 : vector<1x1x4x128xf32> to vector<1x4x128xf32>
    %1348 = vector.shape_cast %1300 : vector<4x128xf32> to vector<1x4x128xf32>
    %1349 = arith.mulf %1347, %1348 : vector<1x4x128xf32>
    %1350 = arith.addf %1345, %1349 : vector<1x4x128xf32>
    %c0_1127 = arith.constant 0 : index
    %c1_1128 = arith.constant 1 : index
    %c1_1129 = arith.constant 1 : index
    %c0_1130 = arith.constant 0 : index
    %1351 = vector.load %arg7[%c0_1127, %c1_1128, %c1_1129, %c0_1130] : memref<1x4x6x128xf32, #tpu.memory_space<vmem>>, vector<1x1x4x128xf32>
    %1352 = vector.shape_cast %1351 : vector<1x1x4x128xf32> to vector<1x4x128xf32>
    %1353 = vector.shape_cast %1305 : vector<4x128xf32> to vector<1x4x128xf32>
    %1354 = arith.mulf %1352, %1353 : vector<1x4x128xf32>
    %1355 = arith.addf %1350, %1354 : vector<1x4x128xf32>
    %c0_1131 = arith.constant 0 : index
    %c1_1132 = arith.constant 1 : index
    %c2_1133 = arith.constant 2 : index
    %c0_1134 = arith.constant 0 : index
    %1356 = vector.load %arg7[%c0_1131, %c1_1132, %c2_1133, %c0_1134] : memref<1x4x6x128xf32, #tpu.memory_space<vmem>>, vector<1x1x4x128xf32>
    %1357 = vector.shape_cast %1356 : vector<1x1x4x128xf32> to vector<1x4x128xf32>
    %1358 = vector.shape_cast %1310 : vector<4x128xf32> to vector<1x4x128xf32>
    %1359 = arith.mulf %1357, %1358 : vector<1x4x128xf32>
    %1360 = arith.addf %1355, %1359 : vector<1x4x128xf32>
    %1361 = vector.shape_cast %1313 : vector<4x128xf32> to vector<1x4x128xf32>
    %1362 = arith.addf %1360, %1361 : vector<1x4x128xf32>
    %c0_1135 = arith.constant 0 : index
    %c320_1136 = arith.constant 320 : index
    %c0_1137 = arith.constant 0 : index
    %1363 = vector.load %arg4[%c0_1135, %c320_1136, %c0_1137] : memref<1x336x128xf32, #tpu.memory_space<vmem>>, vector<1x4x128xf32>
    tpu.vector_store %arg4[%c0_1135, %c320_1136, %c0_1137], %1362 {strides = array<i32>} : memref<1x336x128xf32, #tpu.memory_space<vmem>>, vector<1x4x128xf32>,
    %c0_1138 = arith.constant 0 : index
    %c0_1139 = arith.constant 0 : index
    %c0_1140 = arith.constant 0 : index
    %c0_1141 = arith.constant 0 : index
    %1364 = vector.load %arg7[%c0_1138, %c0_1139, %c0_1140, %c0_1141] : memref<1x4x6x128xf32, #tpu.memory_space<vmem>>, vector<1x1x4x128xf32>
    %1365 = vector.shape_cast %1364 : vector<1x1x4x128xf32> to vector<1x4x128xf32>
    %1366 = vector.shape_cast %1270 : vector<4x128xf32> to vector<1x4x128xf32>
    %1367 = arith.mulf %1365, %1366 : vector<1x4x128xf32>
    %c0_1142 = arith.constant 0 : index
    %c0_1143 = arith.constant 0 : index
    %c1_1144 = arith.constant 1 : index
    %c0_1145 = arith.constant 0 : index
    %1368 = vector.load %arg7[%c0_1142, %c0_1143, %c1_1144, %c0_1145] : memref<1x4x6x128xf32, #tpu.memory_space<vmem>>, vector<1x1x4x128xf32>
    %1369 = vector.shape_cast %1368 : vector<1x1x4x128xf32> to vector<1x4x128xf32>
    %1370 = vector.shape_cast %1275 : vector<4x128xf32> to vector<1x4x128xf32>
    %1371 = arith.mulf %1369, %1370 : vector<1x4x128xf32>
    %1372 = arith.addf %1367, %1371 : vector<1x4x128xf32>
    %c0_1146 = arith.constant 0 : index
    %c0_1147 = arith.constant 0 : index
    %c2_1148 = arith.constant 2 : index
    %c0_1149 = arith.constant 0 : index
    %1373 = vector.load %arg7[%c0_1146, %c0_1147, %c2_1148, %c0_1149] : memref<1x4x6x128xf32, #tpu.memory_space<vmem>>, vector<1x1x4x128xf32>
    %1374 = vector.shape_cast %1373 : vector<1x1x4x128xf32> to vector<1x4x128xf32>
    %1375 = vector.shape_cast %1280 : vector<4x128xf32> to vector<1x4x128xf32>
    %1376 = arith.mulf %1374, %1375 : vector<1x4x128xf32>
    %1377 = arith.addf %1372, %1376 : vector<1x4x128xf32>
    %c0_1150 = arith.constant 0 : index
    %c1_1151 = arith.constant 1 : index
    %c0_1152 = arith.constant 0 : index
    %c0_1153 = arith.constant 0 : index
    %1378 = vector.load %arg7[%c0_1150, %c1_1151, %c0_1152, %c0_1153] : memref<1x4x6x128xf32, #tpu.memory_space<vmem>>, vector<1x1x4x128xf32>
    %1379 = vector.shape_cast %1378 : vector<1x1x4x128xf32> to vector<1x4x128xf32>
    %1380 = vector.shape_cast %1285 : vector<4x128xf32> to vector<1x4x128xf32>
    %1381 = arith.mulf %1379, %1380 : vector<1x4x128xf32>
    %1382 = arith.addf %1377, %1381 : vector<1x4x128xf32>
    %c0_1154 = arith.constant 0 : index
    %c1_1155 = arith.constant 1 : index
    %c1_1156 = arith.constant 1 : index
    %c0_1157 = arith.constant 0 : index
    %1383 = vector.load %arg7[%c0_1154, %c1_1155, %c1_1156, %c0_1157] : memref<1x4x6x128xf32, #tpu.memory_space<vmem>>, vector<1x1x4x128xf32>
    %1384 = vector.shape_cast %1383 : vector<1x1x4x128xf32> to vector<1x4x128xf32>
    %1385 = vector.shape_cast %1290 : vector<4x128xf32> to vector<1x4x128xf32>
    %1386 = arith.mulf %1384, %1385 : vector<1x4x128xf32>
    %1387 = arith.addf %1382, %1386 : vector<1x4x128xf32>
    %c0_1158 = arith.constant 0 : index
    %c1_1159 = arith.constant 1 : index
    %c2_1160 = arith.constant 2 : index
    %c0_1161 = arith.constant 0 : index
    %1388 = vector.load %arg7[%c0_1158, %c1_1159, %c2_1160, %c0_1161] : memref<1x4x6x128xf32, #tpu.memory_space<vmem>>, vector<1x1x4x128xf32>
    %1389 = vector.shape_cast %1388 : vector<1x1x4x128xf32> to vector<1x4x128xf32>
    %1390 = vector.shape_cast %1295 : vector<4x128xf32> to vector<1x4x128xf32>
    %1391 = arith.mulf %1389, %1390 : vector<1x4x128xf32>
    %1392 = arith.addf %1387, %1391 : vector<1x4x128xf32>
    %c0_1162 = arith.constant 0 : index
    %c2_1163 = arith.constant 2 : index
    %c0_1164 = arith.constant 0 : index
    %c0_1165 = arith.constant 0 : index
    %1393 = vector.load %arg7[%c0_1162, %c2_1163, %c0_1164, %c0_1165] : memref<1x4x6x128xf32, #tpu.memory_space<vmem>>, vector<1x1x4x128xf32>
    %1394 = vector.shape_cast %1393 : vector<1x1x4x128xf32> to vector<1x4x128xf32>
    %1395 = vector.shape_cast %1300 : vector<4x128xf32> to vector<1x4x128xf32>
    %1396 = arith.mulf %1394, %1395 : vector<1x4x128xf32>
    %1397 = arith.addf %1392, %1396 : vector<1x4x128xf32>
    %c0_1166 = arith.constant 0 : index
    %c2_1167 = arith.constant 2 : index
    %c1_1168 = arith.constant 1 : index
    %c0_1169 = arith.constant 0 : index
    %1398 = vector.load %arg7[%c0_1166, %c2_1167, %c1_1168, %c0_1169] : memref<1x4x6x128xf32, #tpu.memory_space<vmem>>, vector<1x1x4x128xf32>
    %1399 = vector.shape_cast %1398 : vector<1x1x4x128xf32> to vector<1x4x128xf32>
    %1400 = vector.shape_cast %1305 : vector<4x128xf32> to vector<1x4x128xf32>
    %1401 = arith.mulf %1399, %1400 : vector<1x4x128xf32>
    %1402 = arith.addf %1397, %1401 : vector<1x4x128xf32>
    %c0_1170 = arith.constant 0 : index
    %c2_1171 = arith.constant 2 : index
    %c2_1172 = arith.constant 2 : index
    %c0_1173 = arith.constant 0 : index
    %1403 = vector.load %arg7[%c0_1170, %c2_1171, %c2_1172, %c0_1173] : memref<1x4x6x128xf32, #tpu.memory_space<vmem>>, vector<1x1x4x128xf32>
    %1404 = vector.shape_cast %1403 : vector<1x1x4x128xf32> to vector<1x4x128xf32>
    %1405 = vector.shape_cast %1310 : vector<4x128xf32> to vector<1x4x128xf32>
    %1406 = arith.mulf %1404, %1405 : vector<1x4x128xf32>
    %1407 = arith.addf %1402, %1406 : vector<1x4x128xf32>
    %1408 = vector.shape_cast %1313 : vector<4x128xf32> to vector<1x4x128xf32>
    %1409 = arith.addf %1407, %1408 : vector<1x4x128xf32>
    %c0_1174 = arith.constant 0 : index
    %c324_1175 = arith.constant 324 : index
    %c0_1176 = arith.constant 0 : index
    %1410 = vector.load %arg4[%c0_1174, %c324_1175, %c0_1176] : memref<1x336x128xf32, #tpu.memory_space<vmem>>, vector<1x4x128xf32>
    tpu.vector_store %arg4[%c0_1174, %c324_1175, %c0_1176], %1409 {strides = array<i32>} : memref<1x336x128xf32, #tpu.memory_space<vmem>>, vector<1x4x128xf32>,
    %c0_1177 = arith.constant 0 : index
    %c1_1178 = arith.constant 1 : index
    %c0_1179 = arith.constant 0 : index
    %c0_1180 = arith.constant 0 : index
    %1411 = vector.load %arg7[%c0_1177, %c1_1178, %c0_1179, %c0_1180] : memref<1x4x6x128xf32, #tpu.memory_space<vmem>>, vector<1x1x4x128xf32>
    %1412 = vector.shape_cast %1411 : vector<1x1x4x128xf32> to vector<1x4x128xf32>
    %1413 = vector.shape_cast %1270 : vector<4x128xf32> to vector<1x4x128xf32>
    %1414 = arith.mulf %1412, %1413 : vector<1x4x128xf32>
    %c0_1181 = arith.constant 0 : index
    %c1_1182 = arith.constant 1 : index
    %c1_1183 = arith.constant 1 : index
    %c0_1184 = arith.constant 0 : index
    %1415 = vector.load %arg7[%c0_1181, %c1_1182, %c1_1183, %c0_1184] : memref<1x4x6x128xf32, #tpu.memory_space<vmem>>, vector<1x1x4x128xf32>
    %1416 = vector.shape_cast %1415 : vector<1x1x4x128xf32> to vector<1x4x128xf32>
    %1417 = vector.shape_cast %1275 : vector<4x128xf32> to vector<1x4x128xf32>
    %1418 = arith.mulf %1416, %1417 : vector<1x4x128xf32>
    %1419 = arith.addf %1414, %1418 : vector<1x4x128xf32>
    %c0_1185 = arith.constant 0 : index
    %c1_1186 = arith.constant 1 : index
    %c2_1187 = arith.constant 2 : index
    %c0_1188 = arith.constant 0 : index
    %1420 = vector.load %arg7[%c0_1185, %c1_1186, %c2_1187, %c0_1188] : memref<1x4x6x128xf32, #tpu.memory_space<vmem>>, vector<1x1x4x128xf32>
    %1421 = vector.shape_cast %1420 : vector<1x1x4x128xf32> to vector<1x4x128xf32>
    %1422 = vector.shape_cast %1280 : vector<4x128xf32> to vector<1x4x128xf32>
    %1423 = arith.mulf %1421, %1422 : vector<1x4x128xf32>
    %1424 = arith.addf %1419, %1423 : vector<1x4x128xf32>
    %c0_1189 = arith.constant 0 : index
    %c2_1190 = arith.constant 2 : index
    %c0_1191 = arith.constant 0 : index
    %c0_1192 = arith.constant 0 : index
    %1425 = vector.load %arg7[%c0_1189, %c2_1190, %c0_1191, %c0_1192] : memref<1x4x6x128xf32, #tpu.memory_space<vmem>>, vector<1x1x4x128xf32>
    %1426 = vector.shape_cast %1425 : vector<1x1x4x128xf32> to vector<1x4x128xf32>
    %1427 = vector.shape_cast %1285 : vector<4x128xf32> to vector<1x4x128xf32>
    %1428 = arith.mulf %1426, %1427 : vector<1x4x128xf32>
    %1429 = arith.addf %1424, %1428 : vector<1x4x128xf32>
    %c0_1193 = arith.constant 0 : index
    %c2_1194 = arith.constant 2 : index
    %c1_1195 = arith.constant 1 : index
    %c0_1196 = arith.constant 0 : index
    %1430 = vector.load %arg7[%c0_1193, %c2_1194, %c1_1195, %c0_1196] : memref<1x4x6x128xf32, #tpu.memory_space<vmem>>, vector<1x1x4x128xf32>
    %1431 = vector.shape_cast %1430 : vector<1x1x4x128xf32> to vector<1x4x128xf32>
    %1432 = vector.shape_cast %1290 : vector<4x128xf32> to vector<1x4x128xf32>
    %1433 = arith.mulf %1431, %1432 : vector<1x4x128xf32>
    %1434 = arith.addf %1429, %1433 : vector<1x4x128xf32>
    %c0_1197 = arith.constant 0 : index
    %c2_1198 = arith.constant 2 : index
    %c2_1199 = arith.constant 2 : index
    %c0_1200 = arith.constant 0 : index
    %1435 = vector.load %arg7[%c0_1197, %c2_1198, %c2_1199, %c0_1200] : memref<1x4x6x128xf32, #tpu.memory_space<vmem>>, vector<1x1x4x128xf32>
    %1436 = vector.shape_cast %1435 : vector<1x1x4x128xf32> to vector<1x4x128xf32>
    %1437 = vector.shape_cast %1295 : vector<4x128xf32> to vector<1x4x128xf32>
    %1438 = arith.mulf %1436, %1437 : vector<1x4x128xf32>
    %1439 = arith.addf %1434, %1438 : vector<1x4x128xf32>
    %c0_1201 = arith.constant 0 : index
    %c3_1202 = arith.constant 3 : index
    %c0_1203 = arith.constant 0 : index
    %c0_1204 = arith.constant 0 : index
    %1440 = vector.load %arg7[%c0_1201, %c3_1202, %c0_1203, %c0_1204] : memref<1x4x6x128xf32, #tpu.memory_space<vmem>>, vector<1x1x4x128xf32>
    %1441 = vector.shape_cast %1440 : vector<1x1x4x128xf32> to vector<1x4x128xf32>
    %1442 = vector.shape_cast %1300 : vector<4x128xf32> to vector<1x4x128xf32>
    %1443 = arith.mulf %1441, %1442 : vector<1x4x128xf32>
    %1444 = arith.addf %1439, %1443 : vector<1x4x128xf32>
    %c0_1205 = arith.constant 0 : index
    %c3_1206 = arith.constant 3 : index
    %c1_1207 = arith.constant 1 : index
    %c0_1208 = arith.constant 0 : index
    %1445 = vector.load %arg7[%c0_1205, %c3_1206, %c1_1207, %c0_1208] : memref<1x4x6x128xf32, #tpu.memory_space<vmem>>, vector<1x1x4x128xf32>
    %1446 = vector.shape_cast %1445 : vector<1x1x4x128xf32> to vector<1x4x128xf32>
    %1447 = vector.shape_cast %1305 : vector<4x128xf32> to vector<1x4x128xf32>
    %1448 = arith.mulf %1446, %1447 : vector<1x4x128xf32>
    %1449 = arith.addf %1444, %1448 : vector<1x4x128xf32>
    %c0_1209 = arith.constant 0 : index
    %c3_1210 = arith.constant 3 : index
    %c2_1211 = arith.constant 2 : index
    %c0_1212 = arith.constant 0 : index
    %1450 = vector.load %arg7[%c0_1209, %c3_1210, %c2_1211, %c0_1212] : memref<1x4x6x128xf32, #tpu.memory_space<vmem>>, vector<1x1x4x128xf32>
    %1451 = vector.shape_cast %1450 : vector<1x1x4x128xf32> to vector<1x4x128xf32>
    %1452 = vector.shape_cast %1310 : vector<4x128xf32> to vector<1x4x128xf32>
    %1453 = arith.mulf %1451, %1452 : vector<1x4x128xf32>
    %1454 = arith.addf %1449, %1453 : vector<1x4x128xf32>
    %1455 = vector.shape_cast %1313 : vector<4x128xf32> to vector<1x4x128xf32>
    %1456 = arith.addf %1454, %1455 : vector<1x4x128xf32>
    %c0_1213 = arith.constant 0 : index
    %c328_1214 = arith.constant 328 : index
    %c0_1215 = arith.constant 0 : index
    %1457 = vector.load %arg4[%c0_1213, %c328_1214, %c0_1215] : memref<1x336x128xf32, #tpu.memory_space<vmem>>, vector<1x4x128xf32>
    tpu.vector_store %arg4[%c0_1213, %c328_1214, %c0_1215], %1456 {strides = array<i32>} : memref<1x336x128xf32, #tpu.memory_space<vmem>>, vector<1x4x128xf32>,
    %c0_1216 = arith.constant 0 : index
    %c2_1217 = arith.constant 2 : index
    %c0_1218 = arith.constant 0 : index
    %c0_1219 = arith.constant 0 : index
    %1458 = vector.load %arg7[%c0_1216, %c2_1217, %c0_1218, %c0_1219] : memref<1x4x6x128xf32, #tpu.memory_space<vmem>>, vector<1x1x4x128xf32>
    %1459 = vector.shape_cast %1458 : vector<1x1x4x128xf32> to vector<1x4x128xf32>
    %1460 = vector.shape_cast %1270 : vector<4x128xf32> to vector<1x4x128xf32>
    %1461 = arith.mulf %1459, %1460 : vector<1x4x128xf32>
    %c0_1220 = arith.constant 0 : index
    %c2_1221 = arith.constant 2 : index
    %c1_1222 = arith.constant 1 : index
    %c0_1223 = arith.constant 0 : index
    %1462 = vector.load %arg7[%c0_1220, %c2_1221, %c1_1222, %c0_1223] : memref<1x4x6x128xf32, #tpu.memory_space<vmem>>, vector<1x1x4x128xf32>
    %1463 = vector.shape_cast %1462 : vector<1x1x4x128xf32> to vector<1x4x128xf32>
    %1464 = vector.shape_cast %1275 : vector<4x128xf32> to vector<1x4x128xf32>
    %1465 = arith.mulf %1463, %1464 : vector<1x4x128xf32>
    %1466 = arith.addf %1461, %1465 : vector<1x4x128xf32>
    %c0_1224 = arith.constant 0 : index
    %c2_1225 = arith.constant 2 : index
    %c2_1226 = arith.constant 2 : index
    %c0_1227 = arith.constant 0 : index
    %1467 = vector.load %arg7[%c0_1224, %c2_1225, %c2_1226, %c0_1227] : memref<1x4x6x128xf32, #tpu.memory_space<vmem>>, vector<1x1x4x128xf32>
    %1468 = vector.shape_cast %1467 : vector<1x1x4x128xf32> to vector<1x4x128xf32>
    %1469 = vector.shape_cast %1280 : vector<4x128xf32> to vector<1x4x128xf32>
    %1470 = arith.mulf %1468, %1469 : vector<1x4x128xf32>
    %1471 = arith.addf %1466, %1470 : vector<1x4x128xf32>
    %c0_1228 = arith.constant 0 : index
    %c3_1229 = arith.constant 3 : index
    %c0_1230 = arith.constant 0 : index
    %c0_1231 = arith.constant 0 : index
    %1472 = vector.load %arg7[%c0_1228, %c3_1229, %c0_1230, %c0_1231] : memref<1x4x6x128xf32, #tpu.memory_space<vmem>>, vector<1x1x4x128xf32>
    %1473 = vector.shape_cast %1472 : vector<1x1x4x128xf32> to vector<1x4x128xf32>
    %1474 = vector.shape_cast %1285 : vector<4x128xf32> to vector<1x4x128xf32>
    %1475 = arith.mulf %1473, %1474 : vector<1x4x128xf32>
    %1476 = arith.addf %1471, %1475 : vector<1x4x128xf32>
    %c0_1232 = arith.constant 0 : index
    %c3_1233 = arith.constant 3 : index
    %c1_1234 = arith.constant 1 : index
    %c0_1235 = arith.constant 0 : index
    %1477 = vector.load %arg7[%c0_1232, %c3_1233, %c1_1234, %c0_1235] : memref<1x4x6x128xf32, #tpu.memory_space<vmem>>, vector<1x1x4x128xf32>
    %1478 = vector.shape_cast %1477 : vector<1x1x4x128xf32> to vector<1x4x128xf32>
    %1479 = vector.shape_cast %1290 : vector<4x128xf32> to vector<1x4x128xf32>
    %1480 = arith.mulf %1478, %1479 : vector<1x4x128xf32>
    %1481 = arith.addf %1476, %1480 : vector<1x4x128xf32>
    %c0_1236 = arith.constant 0 : index
    %c3_1237 = arith.constant 3 : index
    %c2_1238 = arith.constant 2 : index
    %c0_1239 = arith.constant 0 : index
    %1482 = vector.load %arg7[%c0_1236, %c3_1237, %c2_1238, %c0_1239] : memref<1x4x6x128xf32, #tpu.memory_space<vmem>>, vector<1x1x4x128xf32>
    %1483 = vector.shape_cast %1482 : vector<1x1x4x128xf32> to vector<1x4x128xf32>
    %1484 = vector.shape_cast %1295 : vector<4x128xf32> to vector<1x4x128xf32>
    %1485 = arith.mulf %1483, %1484 : vector<1x4x128xf32>
    %1486 = arith.addf %1481, %1485 : vector<1x4x128xf32>
    %1487 = vector.shape_cast %1313 : vector<4x128xf32> to vector<1x4x128xf32>
    %1488 = arith.addf %1486, %1487 : vector<1x4x128xf32>
    %c0_1240 = arith.constant 0 : index
    %c332_1241 = arith.constant 332 : index
    %c0_1242 = arith.constant 0 : index
    %1489 = vector.load %arg4[%c0_1240, %c332_1241, %c0_1242] : memref<1x336x128xf32, #tpu.memory_space<vmem>>, vector<1x4x128xf32>
    tpu.vector_store %arg4[%c0_1240, %c332_1241, %c0_1242], %1488 {strides = array<i32>} : memref<1x336x128xf32, #tpu.memory_space<vmem>>, vector<1x4x128xf32>,
    return
  }
  func.func @transform_0(%arg0: i32) -> (i32, i32) {
    %c0_i32 = arith.constant 0 : i32
    %c0_i32_0 = arith.constant 0 : i32
    %c0_i32_1 = arith.constant 0 : i32
    return %c0_i32, %c0_i32_0 : i32, i32
  }
  func.func @transform_1(%arg0: i32) -> (i32, i32) {
    %c0_i32 = arith.constant 0 : i32
    %c0_i32_0 = arith.constant 0 : i32
    %c0_i32_1 = arith.constant 0 : i32
    return %c0_i32, %c0_i32_0 : i32, i32
  }
  func.func @transform_2(%arg0: i32) -> (i32, i32, i32) {
    %c0_i32 = arith.constant 0 : i32
    %c0_i32_0 = arith.constant 0 : i32
    %c0_i32_1 = arith.constant 0 : i32
    return %arg0, %c0_i32, %c0_i32_0 : i32, i32, i32
  }
  func.func @transform_3(%arg0: i32) -> (i32, i32, i32) {
    %c0_i32 = arith.constant 0 : i32
    %c0_i32_0 = arith.constant 0 : i32
    %c0_i32_1 = arith.constant 0 : i32
    return %arg0, %c0_i32, %c0_i32_0 : i32, i32, i32
  }
}

</mosaic_0001>

<bundles_post_ra>
// kernel: dwconv.1
= control target key start
LH: loop header
LB: loop body
LE: loop exit
PB: predicated region body
PF: predicated region fallthrough
CT: control target
= control target key end

     0   :  { %8 = vsyncpa [#allocation6], 0  ;;  %s3152_s0 = inlined_call_operand.vmem [shape: f32[9,128], index: 0, kind: input, shape index: {}]   ;;  %s3153_s1 = inlined_call_operand.vmem [shape: f32[1,128], index: 1, kind: input, shape index: {}]   ;;  %s3154_s2 = inlined_call_operand.hbm [shape: f32[2,336,128], index: 2, kind: input, shape index: {}]   ;;  %s3155_s3 = inlined_call_operand.hbm [shape: f32[2,336,128], index: 3, kind: output, shape index: {}]  }
   0x1   :  { %10 = vsyncpa [#allocation6 + $0x1], 0 }
   0x2   :  { %11 = vsyncpa [#allocation7], 0 }
   0x3   :  { %13 = vsyncpa [#allocation7 + $0x1], 0  ;;  %s1981_s12 = smov 0   ;;  %s1983_s13 = smov 0  }
   0x4   :  { %s1985_s14 = smov 0   ;;  %s1987_s15 = smov 0  }
   0x5 LB: > { %s2002_s16 = sadd.s32 4294967295, %s1952_s15   ;;  %s1759_s17 = sadd.s32 4294967294, %s1952_s15   ;;  %s1952_s15 = sphi %s1987_s15, %s3191_s15   ;;  %s1948_s14 = sphi %s1985_s14, %s3190_s14   ;;  %s1944_s13 = sphi %s1983_s13, %s3189_s13   ;;  %s1940_s12 = sphi %s1981_s12, %s3188_s12  }
   0x6   : > { %s2006_s18 = sadd.s32 1, %s1952_s15   ;;  %s68_s19 = sadd.s32 1, %s1948_s14 }
   0x7   : > { %s65_s20 = ssub.s32 %s1952_s15, %s2006_s18  ;;  %p75_p0 = scmp.ne.s32.totalorder %s1948_s14, %s1944_s13 }
   0x8   : > { %p66_p1 = scmp.eq.s32.totalorder %s65_s20, 0  ;;  %p76_p2 = scmp.eq.s32.totalorder %s1952_s15, 0 }
   0x9   : > { %p81_p3 = scmp.ne.s32.totalorder %s1944_s13, %s1940_s12  ;;  %p82_p4 = scmp.eq.s32.totalorder %s2002_s16, 0 }
   0xa   : > { %s2018_s21 = scalar_select %p66_p1, %s1948_s14, %s68_s19  }
   0xb   : > { %p77_p5 = por %p76_p2, %p75_p0  ;;  %p2020_p6 = por %p82_p4, %p81_p3 }
   0xc   : > { %p105_p7 = scmp.eq.s32.totalorder %s2002_s16, 1  ;;  %p111_p8 = scmp.eq.s32.totalorder %s1759_s17, 1 }
   0xd   : > { %s3168_s22 = scalar_select %p2020_p6, 1, 0 }
   0xe   : > { %p1811_p10 = scmp.lt.s32.totalorder %s1952_s15, 2  ;;  %p2027_p11 = por %p105_p7, %p75_p0 }
   0xf   : > { %p2031_p12 = por %p111_p8, %p81_p3  ;;  %s137_s25 = sand.u32 1, %s1948_s14  }
  0x10   : > { %s3169_s23 = scalar_select %p2027_p11, 1, 0 }
  0x11   : > { %s3170_s24 = scalar_select %p2031_p12, 1, 0 }
  0x12   : > { %s1796_s26 = smul.u32 5376, %s1952_s15  ;;  %p2042_p13 = pnand %p1811_p10, %p77_p5 }
  0x13   : > { %s1795_s27 = smul.u32 336, %s137_s25  ;;  %s2048_s7 = scalar_lea.sflag [#allocation6], %s137_s25 }
  0x14   : > { %s2040_s30 = scalar_lea.hbm %s3154_s2, %s1796_s26  ;;  %p1862_p1 = pneg %p2042_p13 }
  0x15   : > { %s141_s5 = scalar_lea.vmem [#allocation5], %s1795_s27  ;;  %s1860_s8 = scalar_lea.hbm %s2040_s30, 5376 }
  0x16   : > { %s148_s6 = sshll.u32 %s141_s5, 4  ;;  %p1861_p0 = scmp.ne.s32.totalorder %s2040_s30, %s1860_s8  ;;  %s2046_s6 = int_to_ptr.vmem [resolvable:$true] %s148_s6 }
  0x17   : > { %s1865_s11 = scalar_lea.hbm %s3154_s2, 10752  ;;  %p1866_p4 = scmp.lt.s32.totalorder %s2040_s30, %s3154_s2 }
  0x18   : > { %p1863_p2 = pnand %p1862_p1, %p1861_p0  ;;  %p1867_p5 = scmp.lt.s32.totalorder %s1865_s11, %s1860_s8 }
  0x1a   : > { %p1864_p3 = pneg %p1863_p2  ;;  %p1868_p7 = por %p1867_p5, %p1866_p4 }
  0x1c   : > { %p1869_p8 = pnand %p1868_p7, %p1864_p3 }
  0x1e   : > { %1872 = shalt.err (!%p1869_p8)
}
  0x1f   : > { %s1873_s20 = scalar_lea.vmem %s2046_s6, 5376  ;;  %s1954_s25 = smov [#allocation5]  }
  0x20   : > { %p1874_p10 = scmp.ne.s32.totalorder %s2046_s6, %s1873_s20  ;;  %s1878_s26 = sshll.u32 %s1954_s25, 4  ;;  %s1879_s26 = int_to_ptr.vmem [resolvable:$false] %s1878_s26 }
  0x21   : > { %s1880_s27 = scalar_lea.vmem %s1879_s26, 10752  ;;  %p1881_p2 = scmp.lt.s32.totalorder %s2046_s6, %s1879_s26 }
  0x22   : > { %p1876_p9 = pnand %p1874_p10, %p1862_p1  ;;  %p1882_p12 = scmp.lt.s32.totalorder %s1880_s27, %s1873_s20 }
  0x24   : > { %p1877_p0 = pneg %p1876_p9  ;;  %p1883_p11 = por %p1882_p12, %p1881_p2 }
  0x26   : > { %p1884_p6 = pnand %p1883_p11, %p1877_p0 }
  0x28   : > { %1887 = shalt.err (!%p1884_p6)
}
  0x29   : > { %s1955_s28 = smov 128   ;;  %s1956_s29 = smov 8  }
  0x2a   : > { %1806 = dma.hbm_to_vmem [thread:$0]  (!%p2042_p13), %s2040_s30, 5376, %s2046_s6, %s2048_s7, %s1955_s28, %s1955_s28, %s1956_s29  }
  0x2b   : > { %p1763_p9 = scmp.ge.s32.totalorder %s1952_s15, 1  ;;  %p156_p1 = scmp.lt.s32.totalorder %s1952_s15, 3 }
  0x2d   : > { %p157_p3 = pnand %p1763_p9, %p156_p1 }
  0x2f   : > { %160 = sbr.rel (%p157_p3) target bundleno = 322 (0x142), region = 32 }
  0x34   : > { %s2072_s5 = sand.u32 1, %s1944_s13   ;;  %p3172_p6 = scmp.ne.s32.totalorder %s3168_s22, 0 }
  0x35   : > { %s1797_s8 = smul.u32 336, %s2072_s5  ;;  %s163_s9 = scalar_lea.sflag [#allocation6], %s2072_s5 }
  0x37   : > { %s2078_s10 = scalar_lea.vmem [#allocation5], %s1797_s8 }
  0x38   : > { %1931 = dma.done.wait (%p3172_p6), %s163_s9, 5376  }
  0x39   : > { %1933 = vsyncadd (%p3172_p6), %s163_s9, 4294961920  ;;  %v1957_v0 = vmov 0.0   ;;  %v2153_v1 = vld [vmem:[%s2078_s10] sm:$0xff]  ;;  %v2156_v2 = vld [vmem:[%s2078_s10 + $0x8] sm:$0xff]  ;;  %s2370_s7 = scalar_lea.vmem [#allocation8], %s1797_s8  ;;  %s1798_s20 = smul.u32 5376, %s2002_s16 }
  0x3a   : > { %199 = vst [vmem:[#allocation2] sm:$0xff] %v1957_v0  ;;  %200 = vst [vmem:[#allocation2 + $0x8] sm:$0xff] %v1957_v0  ;;  %v2159_v3 = vld [vmem:[%s2078_s10 + $0x10] sm:$0xff]  ;;  %v2165_v4 = vld [vmem:[%s2078_s10 + $0x18] sm:$0xff]  ;;  %s1686_s25 = sshll.u32 %s2370_s7, 4  ;;  %s1673_s16 = scalar_lea.sflag [#allocation7], %s2072_s5  ;;  %s3107_s25 = int_to_ptr.vmem [resolvable:$true] %s1686_s25 }
  0x3b   : > { %201 = vst [vmem:[#allocation2 + $0x10] sm:$0x3] %v1957_v0  ;;  %202 = vst [vmem:[#allocation2 + $0x18] sm:$0xff] %v1957_v0  ;;  %v2168_v5 = vld [vmem:[%s2078_s10 + $0x20] sm:$0xff]  ;;  %v2171_v6 = vld [vmem:[%s2078_s10 + $0x28] sm:$0xff]  ;;  %s3105_s28 = scalar_lea.hbm %s3155_s3, %s1798_s20  ;;  %s1888_s29 = scalar_lea.vmem %s3107_s25, 5376 }
  0x3c   : > { %203 = vst [vmem:[#allocation2 + $0x20] sm:$0xff] %v1957_v0  ;;  %204 = vst [vmem:[#allocation2 + $0x28] sm:$0x3] %v1957_v0  ;;  %v2177_v7 = vld [vmem:[%s2078_s10 + $0x30] sm:$0xff]  ;;  %v2180_v8 = vld [vmem:[%s2078_s10 + $0x38] sm:$0xff]  ;;  %p1889_p11 = scmp.ne.s32.totalorder %s3107_s25, %s1888_s29  ;;  %p3185_p12 = scmp.ne.s32.totalorder %s3169_s23, 0 }
  0x3d   : > { %205 = vst [vmem:[#allocation2 + $0x30] sm:$0xff] %v1957_v0  ;;  %206 = vst [vmem:[#allocation2 + $0x38] sm:$0xff] %v1957_v0  ;;  %v2183_v9 = vld [vmem:[%s2078_s10 + $0x40] sm:$0xff]  ;;  %v2189_v10 = vld [vmem:[%s2078_s10 + $0x48] sm:$0xff]  ;;  %s1958_s9 = smov [#allocation8]  }
  0x3e   : > { %207 = vst [vmem:[#allocation2 + $0x40] sm:$0x3] %v1957_v0  ;;  %208 = vst [vmem:[#allocation2 + $0x48] sm:$0xff] %v1957_v0  ;;  %v2192_v11 = vld [vmem:[%s2078_s10 + $0x50] sm:$0xff]  ;;  %v2195_v12 = vld [vmem:[%s2078_s10 + $0x58] sm:$0xff]  ;;  %p1890_p13 = pnand %p1889_p11, %p3185_p12 }
  0x3f   : > { %209 = vst [vmem:[#allocation2 + $0x50] sm:$0xff] %v1957_v0  ;;  %210 = vst [vmem:[#allocation2 + $0x58] sm:$0x3] %v1957_v0  ;;  %v2201_v13 = vld [vmem:[%s2078_s10 + $0x60] sm:$0xff]  ;;  %v277_v14 = vld [vmem:[%s2078_s10 + $0x68] sm:$0xff] }
  0x40   : > { %211 = vst [vmem:[#allocation2 + $0x60] sm:$0xff] %v1957_v0  ;;  %212 = vst [vmem:[#allocation2 + $0x68] sm:$0xff] %v1957_v0  ;;  %v281_v15 = vld [vmem:[%s2078_s10 + $0x70] sm:$0xff]  ;;  %v282_v16 = vld [vmem:[%s2078_s10 + $0x78] sm:$0xff]  ;;  %p1891_p4 = pneg %p1890_p13 }
  0x41   : > { %213 = vst [vmem:[#allocation2 + $0x70] sm:$0x3] %v1957_v0  ;;  %214 = vst [vmem:[#allocation2 + $0x78] sm:$0xff] %v1957_v0  ;;  %v286_v17 = vld [vmem:[%s2078_s10 + $0x80] sm:$0xff]  ;;  %v287_v18 = vld [vmem:[%s2078_s10 + $0x88] sm:$0xff] }
  0x42   : > { %215 = vst [vmem:[#allocation2 + $0x80] sm:$0xff] %v1957_v0  ;;  %216 = vst [vmem:[#allocation2 + $0x88] sm:$0x3] %v1957_v0  ;;  %v291_v19 = vld [vmem:[%s2078_s10 + $0x90] sm:$0xff]  ;;  %v292_v20 = vld [vmem:[%s2078_s10 + $0x98] sm:$0xff] }
  0x43   : > { %217 = vst [vmem:[#allocation2 + $0x90] sm:$0xff] %v1957_v0  ;;  %218 = vst [vmem:[#allocation2 + $0x98] sm:$0xff] %v1957_v0  ;;  %v296_v21 = vld [vmem:[%s2078_s10 + $0xa0] sm:$0xff]  ;;  %v297_v22 = vld [vmem:[%s2078_s10 + $0xa8] sm:$0xff] }
  0x44   : > { %219 = vst [vmem:[#allocation2 + $0xa0] sm:$0x3] %v1957_v0  ;;  %220 = vst [vmem:[#allocation2 + $0xa8] sm:$0xff] %v1957_v0  ;;  %v301_v23 = vld [vmem:[%s2078_s10 + $0xb0] sm:$0xff]  ;;  %v302_v24 = vld [vmem:[%s2078_s10 + $0xb8] sm:$0xff] }
  0x45   : > { %221 = vst [vmem:[#allocation2 + $0xb0] sm:$0xff] %v1957_v0  ;;  %222 = vst [vmem:[#allocation2 + $0xb8] sm:$0x3] %v1957_v0  ;;  %v306_v25 = vld [vmem:[%s2078_s10 + $0xc0] sm:$0xff]  ;;  %v307_v26 = vld [vmem:[%s2078_s10 + $0xc8] sm:$0xff] }
  0x46   : > { %223 = vst [vmem:[#allocation2 + $0xc0] sm:$0xff] %v1957_v0  ;;  %224 = vst [vmem:[#allocation2 + $0xc8] sm:$0xff] %v1957_v0  ;;  %v311_v27 = vld [vmem:[%s2078_s10 + $0xd0] sm:$0xff]  ;;  %v312_v28 = vld [vmem:[%s2078_s10 + $0xd8] sm:$0xff] }
  0x47   : > { %225 = vst [vmem:[#allocation2 + $0xd0] sm:$0x3] %v1957_v0  ;;  %226 = vst [vmem:[#allocation2 + $0xd8] sm:$0xff] %v1957_v0  ;;  %v1253_v29 = vld [vmem:[%s2078_s10 + $0x100] sm:$0xff]  ;;  %v1255_v30 = vld [vmem:[%s2078_s10 + $0x108] sm:$0xff] }
  0x48   : > { %227 = vst [vmem:[#allocation2 + $0xe0] sm:$0xff] %v1957_v0  ;;  %228 = vst [vmem:[#allocation2 + $0xe8] sm:$0x3] %v1957_v0  ;;  %v1258_v31 = vld [vmem:[%s2078_s10 + $0x110] sm:$0xff]  ;;  %v1261_v32 = vld [vmem:[%s2078_s10 + $0x118] sm:$0xff] }
  0x49   : > { %229 = vst [vmem:[#allocation2 + $0xf0] sm:$0xff] %v1957_v0  ;;  %230 = vst [vmem:[#allocation2 + $0xf8] sm:$0xff] %v1957_v0  ;;  %v1264_v33 = vld [vmem:[%s2078_s10 + $0x120] sm:$0xff]  ;;  %v1267_v34 = vld [vmem:[%s2078_s10 + $0x128] sm:$0xff] }
  0x4a   : > { %231 = vst [vmem:[#allocation2 + $0x100] sm:$0x3] %v1957_v0  ;;  %232 = vst [vmem:[#allocation2 + $0x108] sm:$0xff] %v1957_v0  ;;  %v1531_v35 = vld [vmem:[%s2078_s10 + $0x140] sm:$0xf]  ;;  %v2231_v38 = vld [vmem:[%s2078_s10 + $0xe8] sm:$0xff] }
  0x4b   : > { %233 = vst [vmem:[#allocation2 + $0x110] sm:$0xff] %v1957_v0  ;;  %234 = vst [vmem:[#allocation2 + $0x118] sm:$0x3] %v1957_v0  ;;  %v1533_v36 = vld [vmem:[%s2078_s10 + $0x144] sm:$0xf]  ;;  %v2234_v39 = vld [vmem:[%s2078_s10 + $0x130] sm:$0xff] }
  0x4c   : > { %235 = vst [vmem:[#allocation2 + $0x120] sm:$0xff] %v1957_v0  ;;  %236 = vst [vmem:[#allocation2 + $0x128] sm:$0xff] %v1957_v0  ;;  %v2228_v37 = vld [vmem:[%s2078_s10 + $0xe0] sm:$0xff]  ;;  %v1536_v40 = vld [vmem:[%s2078_s10 + $0x148] sm:$0xf] }
  0x4d   : > { %237 = vst [vmem:[#allocation2 + $0x130] sm:$0x3] %v1957_v0  ;;  %238 = vst [vmem:[#allocation2 + $0x138] sm:$0xff] %v1957_v0  ;;  %v2241_v41 = vld [vmem:[%s2078_s10 + $0xf0] sm:$0xff]  ;;  %v322_v42 = vld [vmem:[%s2078_s10 + $0xf8] sm:$0xff] }
  0x4e   : > { %239 = vst [vmem:[#allocation2 + $0x140] sm:$0xff] %v1957_v0  ;;  %240 = vst [vmem:[#allocation2 + $0x148] sm:$0x3] %v1957_v0  ;;  %v2246_v43 = vld [vmem:[%s2078_s10 + $0x138] sm:$0xff]  ;;  %v1539_v44 = vld [vmem:[%s2078_s10 + $0x14c] sm:$0xf] }
  0x4f   : > { %241 = vst [vmem:[#allocation2 + $0x150] sm:$0xff] %v1957_v0  ;;  %242 = vst [vmem:[#allocation2 + $0x158] sm:$0xff] %v1957_v0  ;;  %v2253_v45 = vld [vmem:[%s3152_s0 + $0x3] ss:$0 sm:$0xff]  ;;  %v2258_v46 = vld [vmem:[%s3152_s0 + $0x4] ss:$0 sm:$0xff] }
  0x50   : > { %243 = vst [vmem:[#allocation2 + $0x160] sm:$0x3] %v1957_v0  ;;  %244 = vst [vmem:[#allocation2 + $0x168] sm:$0xff] %v1957_v0  ;;  %v2263_v47 = vld [vmem:[%s3152_s0 + $0x5] ss:$0 sm:$0xff]  ;;  %v340_v51 = vmul.f32 %v2258_v46, %v2153_v1  ;;  %v341_v55 = vmul.f32 %v2258_v46, %v2156_v2  ;;  %v1287_v56 = vmul.f32 %v2258_v46, %v1253_v29  ;;  %s1892_s10 = sshll.u32 %s1958_s9, 4  ;;  %s1893_s10 = int_to_ptr.vmem [resolvable:$false] %s1892_s10 }
  0x51   : > { %245 = vst [vmem:[#allocation2 + $0x170] sm:$0xff] %v1957_v0  ;;  %246 = vst [vmem:[#allocation2 + $0x178] sm:$0x3] %v1957_v0  ;;  %v2268_v48 = vld [vmem:[%s3152_s0 + $0x6] ss:$0 sm:$0xff]  ;;  %v2292_v57 = vmul.f32 %v2258_v46, %v322_v42  ;;  %s1894_s22 = scalar_lea.vmem %s1893_s10, 10752  ;;  %p1895_p5 = scmp.lt.s32.totalorder %s3107_s25, %s1893_s10 }
  0x52   : > { %1237 = vst [vmem:[#allocation3] sm:$0xff] %v1957_v0  ;;  %1238 = vst [vmem:[#allocation3 + $0x8] sm:$0x3] %v1957_v0  ;;  %v2273_v49 = vld [vmem:[%s3152_s0 + $0x7] ss:$0 sm:$0xff]  ;;  %p1896_p7 = scmp.lt.s32.totalorder %s1894_s22, %s1888_s29 }
  0x53   : > { %1239 = vst [vmem:[#allocation3 + $0x10] sm:$0xff] %v1957_v0  ;;  %1240 = vst [vmem:[#allocation3 + $0x18] sm:$0x3] %v1957_v0  ;;  %v2278_v50 = vld [vmem:[%s3152_s0 + $0x8] ss:$0 sm:$0xff]  ;;  %v370_v59 = vmul.f32 %v2273_v49, %v2159_v3  ;;  %v371_v63 = vmul.f32 %v2273_v49, %v2165_v4 }
  0x54   : > { %1241 = vst [vmem:[#allocation3 + $0x20] sm:$0xff] %v1957_v0  ;;  %1242 = vst [vmem:[#allocation3 + $0x28] sm:$0x3] %v1957_v0  ;;  %p1897_p8 = por %p1896_p7, %p1895_p5 }
  0x55   : > { %1243 = vst [vmem:[#allocation3 + $0x30] sm:$0xff] %v1957_v0  ;;  %1244 = vst [vmem:[#allocation3 + $0x38] sm:$0x3] %v1957_v0 }
  0x56   : > { %1245 = vst [vmem:[#allocation3 + $0x40] sm:$0xff] %v1957_v0  ;;  %1246 = vst [vmem:[#allocation3 + $0x48] sm:$0x3] %v1957_v0  ;;  %p1898_p10 = pnand %p1897_p8, %p1891_p4 }
  0x57   : > { %1247 = vst [vmem:[#allocation3 + $0x50] sm:$0xff] %v1957_v0  ;;  %1248 = vst [vmem:[#allocation3 + $0x58] sm:$0x3] %v1957_v0 }
  0x58   : > { %1249 = vst [vmem:[#allocation3 + $0x60] sm:$0xff] %v1957_v0  ;;  %1250 = vst [vmem:[#allocation3 + $0x68] sm:$0x3] %v1957_v0 }
  0x59   : > { %1251 = vst [vmem:[#allocation3 + $0x70] sm:$0xff] %v1957_v0  ;;  %1252 = vst [vmem:[#allocation3 + $0x78] sm:$0x3] %v1957_v0 }
  0x5a   : > { %1527 = vst [vmem:[#allocation4] sm:$0x3f] %v1957_v0  ;;  %1528 = vst [vmem:[#allocation4 + $0x8] sm:$0x3f] %v1957_v0 }
  0x5b   : > { %1529 = vst [vmem:[#allocation4 + $0x10] sm:$0x3f] %v1957_v0  ;;  %1530 = vst [vmem:[#allocation4 + $0x18] sm:$0x3f] %v1957_v0  ;;  %v1308_v0 = vmul.f32 %v2273_v49, %v1255_v30 }
  0x5c   : > { %249 = vst [vmem:[#allocation2 + $0x1] sm:$0xff] %v2153_v1  ;;  %250 = vst [vmem:[#allocation2 + $0x9] sm:$0xff] %v2156_v2 }
  0x5d   : > { %254 = vst [vmem:[#allocation2 + $0x19] sm:$0xff] %v2159_v3  ;;  %255 = vst [vmem:[#allocation2 + $0x21] sm:$0xff] %v2165_v4 }
  0x5e   : > { %259 = vst [vmem:[#allocation2 + $0x31] sm:$0xff] %v2168_v5  ;;  %260 = vst [vmem:[#allocation2 + $0x39] sm:$0xff] %v2171_v6 }
  0x5f   : > { %3173 = vst [vmem:[#allocation11_spill] sm:$0xff] %v2180_v8  ;;  %3174 = vst [vmem:[#allocation12_spill] sm:$0xff] %v2183_v9 }
  0x60   : > { %264 = vst [vmem:[#allocation2 + $0x49] sm:$0xff] %v2177_v7  ;;  %265 = vst [vmem:[#allocation2 + $0x51] sm:$0xff] %v2180_v8 }
  0x61   : > { %269 = vst [vmem:[#allocation2 + $0x61] sm:$0xff] %v2183_v9  ;;  %3175 = vst [vmem:[#allocation13_spill] sm:$0xff] %v2189_v10 }
  0x62   : > { %3176 = vst [vmem:[#allocation14_spill] sm:$0xff] %v2192_v11  ;;  %3177 = vst [vmem:[#allocation15_spill] sm:$0xff] %v2195_v12 }
  0x63   : > { %270 = vst [vmem:[#allocation2 + $0x69] sm:$0xff] %v2189_v10  ;;  %274 = vst [vmem:[#allocation2 + $0x79] sm:$0xff] %v2192_v11  ;;  %v2282_v52 = vld [vmem:[#allocation2] sm:$0xff]  ;;  %v2300_v61 = vld [vmem:[#allocation2 + $0x8] sm:$0xff] }
  0x64   : > { %275 = vst [vmem:[#allocation2 + $0x81] sm:$0xff] %v2195_v12  ;;  %3178 = vst [vmem:[#allocation16_spill] sm:$0xff] %v2201_v13  ;;  %v2284_v53 = vld [vmem:[#allocation2 + $0x2] sm:$0xff]  ;;  %v2286_v54 = vld [vmem:[#allocation2 + $0x18] sm:$0xff]  ;;  %v332_v58 = vmul.f32 %v2253_v45, %v2282_v52 }
  0x65   : > { %279 = vst [vmem:[#allocation2 + $0x91] sm:$0xff] %v2201_v13  ;;  %280 = vst [vmem:[#allocation2 + $0x99] sm:$0xff] %v277_v14  ;;  %v2298_v60 = vld [vmem:[#allocation2 + $0x1a] sm:$0xff]  ;;  %v2302_v62 = vld [vmem:[#allocation2 + $0xa] sm:$0xff]  ;;  %v350_v14 = vmul.f32 %v2263_v47, %v2284_v53 }
  0x66   : > { %284 = vst [vmem:[#allocation2 + $0xa9] sm:$0xff] %v281_v15  ;;  %285 = vst [vmem:[#allocation2 + $0xb1] sm:$0xff] %v282_v16  ;;  %v360_v15 = vmul.f32 %v2268_v48, %v2286_v54  ;;  %v380_v16 = vmul.f32 %v2278_v50, %v2298_v60 }
  0x67   : > { %289 = vst [vmem:[#allocation2 + $0xc1] sm:$0xff] %v286_v17  ;;  %290 = vst [vmem:[#allocation2 + $0xc9] sm:$0xff] %v287_v18  ;;  %v333_v17 = vmul.f32 %v2253_v45, %v2300_v61  ;;  %v2315_v18 = vld [vmem:[#allocation2 + $0x20] sm:$0xff] }
  0x68   : > { %294 = vst [vmem:[#allocation2 + $0xd9] sm:$0xff] %v291_v19  ;;  %295 = vst [vmem:[#allocation2 + $0xe1] sm:$0xff] %v292_v20  ;;  %v2317_v19 = vld [vmem:[#allocation2 + $0x22] sm:$0xff] }
  0x69   : > { %299 = vst [vmem:[#allocation2 + $0xf1] sm:$0xff] %v296_v21  ;;  %300 = vst [vmem:[#allocation2 + $0xf9] sm:$0xff] %v297_v22  ;;  %v342_v21 = vadd.f32 %v340_v51, %v332_v58  ;;  %v351_v22 = vmul.f32 %v2263_v47, %v2302_v62 }
  0x6a   : > { %304 = vst [vmem:[#allocation2 + $0x109] sm:$0xff] %v301_v23  ;;  %305 = vst [vmem:[#allocation2 + $0x111] sm:$0xff] %v302_v24  ;;  %v361_v23 = vmul.f32 %v2268_v48, %v2315_v18 }
  0x6b   : > { %309 = vst [vmem:[#allocation2 + $0x121] sm:$0xff] %v306_v25  ;;  %310 = vst [vmem:[#allocation2 + $0x129] sm:$0xff] %v307_v26 }
  0x6c   : > { %314 = vst [vmem:[#allocation2 + $0x139] sm:$0xff] %v311_v27  ;;  %315 = vst [vmem:[#allocation2 + $0x141] sm:$0xff] %v312_v28  ;;  %v343_v28 = vadd.f32 %v341_v55, %v333_v17 }
  0x6d   : > { %1254 = vst [vmem:[#allocation3 + $0x1] sm:$0xff] %v1253_v29  ;;  %1257 = vst [vmem:[#allocation3 + $0x11] sm:$0xff] %v1255_v30  ;;  %v381_v29 = vmul.f32 %v2278_v50, %v2317_v19 }
  0x6e   : > { %1260 = vst [vmem:[#allocation3 + $0x21] sm:$0xff] %v1258_v31  ;;  %1263 = vst [vmem:[#allocation3 + $0x31] sm:$0xff] %v1261_v32  ;;  %v353_v55 = vadd.f32 %v351_v22, %v343_v28 }
  0x6f   : > { %1266 = vst [vmem:[#allocation3 + $0x41] sm:$0xff] %v1264_v33  ;;  %1269 = vst [vmem:[#allocation3 + $0x51] sm:$0xff] %v1267_v34 }
  0x70   : > { %1532 = vst [vmem:[#allocation4 + $0x1] sm:$0xf] %v1531_v35  ;;  %1535 = vst [vmem:[#allocation4 + $0x9] sm:$0xf] %v1533_v36  ;;  %v352_v35 = vadd.f32 %v350_v14, %v342_v21  ;;  %v2346_v14 = vld [vmem:[%s3152_s0 + $0x2] ss:$0 sm:$0xff] }
  0x71   : > { %319 = vst [vmem:[#allocation2 + $0x151] sm:$0xff] %v2228_v37  ;;  %320 = vst [vmem:[#allocation2 + $0x159] sm:$0xff] %v2231_v38 }
  0x72   : > { %1272 = vst [vmem:[#allocation3 + $0x61] sm:$0xff] %v2234_v39  ;;  %1538 = vst [vmem:[#allocation4 + $0x11] sm:$0xf] %v1536_v40  ;;  %v362_v21 = vadd.f32 %v360_v15, %v352_v35 }
  0x73   : > { %324 = vst [vmem:[#allocation2 + $0x169] sm:$0xff] %v2241_v41  ;;  %325 = vst [vmem:[#allocation2 + $0x171] sm:$0xff] %v322_v42 }
  0x74   : > { %1275 = vst [vmem:[#allocation3 + $0x71] sm:$0xff] %v2246_v43  ;;  %1541 = vst [vmem:[#allocation4 + $0x19] sm:$0xf] %v1539_v44  ;;  %v1276_v20 = vld [vmem:[#allocation3] sm:$0xff]  ;;  %v1296_v26 = vld [vmem:[#allocation3 + $0x10] sm:$0xff]  ;;  %v372_v10 = vadd.f32 %v370_v59, %v362_v21 }
  0x75   : > { %v1281_v24 = vmul.f32 %v2253_v45, %v1276_v20  ;;  %v1289_v25 = vld [vmem:[#allocation3 + $0x2] sm:$0xff]  ;;  %v1310_v27 = vld [vmem:[#allocation3 + $0x12] sm:$0xff]  ;;  %v1301_v31 = vmul.f32 %v2268_v48, %v1296_v26  ;;  %v2336_v26 = vld [vmem:[%s3152_s0] ss:$0 sm:$0xff] }
  0x76   : > { %v1294_v30 = vmul.f32 %v2263_v47, %v1289_v25  ;;  %v1315_v17 = vmul.f32 %v2278_v50, %v1310_v27 }
  0x77   : > { %v1542_v32 = vld [vmem:[#allocation4] sm:$0xf]  ;;  %v1288_v36 = vadd.f32 %v1287_v56, %v1281_v24  ;;  %v1562_v44 = vld [vmem:[#allocation4 + $0x8] sm:$0xf] }
  0x78   : > { %v1548_v33 = vld [vmem:[#allocation4 + $0x1] sm:$0xf]  ;;  %v1547_v40 = vmul.f32 %v2253_v45, %v1542_v32  ;;  %v1569_v51 = vld [vmem:[#allocation4 + $0x9] sm:$0xf]  ;;  %v1567_v25 = vmul.f32 %v2268_v48, %v1562_v44  ;;  %v1191_v28 = vld [vmem:[#allocation2 + $0x158] sm:$0xff] }
  0x79   : > { %v1555_v34 = vld [vmem:[#allocation4 + $0x2] sm:$0xf]  ;;  %v1553_v42 = vmul.f32 %v2258_v46, %v1548_v33  ;;  %v1576_v58 = vld [vmem:[#allocation4 + $0xa] sm:$0xf]  ;;  %v2341_v56 = vld [vmem:[%s3152_s0 + $0x1] ss:$0 sm:$0xff]  ;;  %v1295_v22 = vadd.f32 %v1294_v30, %v1288_v36  ;;  %v1574_v27 = vmul.f32 %v2273_v49, %v1569_v51  ;;  %v1193_v44 = vmul.f32 %v2336_v26, %v1191_v28 }
  0x7a   : > { %v1560_v20 = vmul.f32 %v2263_v47, %v1555_v34  ;;  %v1201_v32 = vld [vmem:[#allocation2 + $0x15a] sm:$0xff]  ;;  %v1207_v33 = vld [vmem:[#allocation2 + $0x170] sm:$0xff]  ;;  %v363_v34 = vadd.f32 %v361_v23, %v353_v55  ;;  %v1197_v13 = vmul.f32 %v2341_v56, %v2231_v38  ;;  %v1581_v15 = vmul.f32 %v2278_v50, %v1576_v58  ;;  %v1504_v30 = vld [vmem:[#allocation3 + $0x62] sm:$0xff] }
  0x7b   : > { %v1554_v24 = vadd.f32 %v1553_v42, %v1547_v40  ;;  %v1203_v12 = vmul.f32 %v2346_v14, %v1201_v32  ;;  %v1499_v11 = vld [vmem:[#allocation3 + $0x60] sm:$0xff]  ;;  %v1302_v9 = vadd.f32 %v1301_v31, %v1295_v22  ;;  %v1507_v35 = vld [vmem:[#allocation3 + $0x70] sm:$0xff]  ;;  %v1209_v42 = vmul.f32 %v2253_v45, %v1207_v33 }
  0x7c   : > { %v2357_v36 = vld [vmem:[%s3153_s1] ss:$0 sm:$0xff]  ;;  %v373_v23 = vadd.f32 %v371_v63, %v363_v34  ;;  %v1199_v40 = vadd.f32 %v1197_v13, %v1193_v44  ;;  %v1500_v38 = vmul.f32 %v2336_v26, %v1499_v11  ;;  %v382_v51 = vadd.f32 %v380_v16, %v372_v10  ;;  %v1219_v31 = vld [vmem:[#allocation2 + $0x172] sm:$0xff] }
  0x7d   : > { %v1561_v8 = vadd.f32 %v1560_v20, %v1554_v24  ;;  %v1309_v55 = vadd.f32 %v1308_v0, %v1302_v9  ;;  %v1502_v58 = vmul.f32 %v2341_v56, %v2234_v39  ;;  %v1505_v22 = vmul.f32 %v2346_v14, %v1504_v30  ;;  %v1513_v11 = vld [vmem:[#allocation3 + $0x72] sm:$0xff]  ;;  %v1585_v33 = vld [vmem:[#allocation4] sm:$0xf] }
  0x7e   : > { %v383_v20 = vadd.f32 %v381_v29, %v373_v23  ;;  %v1205_v21 = vadd.f32 %v1203_v12, %v1199_v40  ;;  %v1508_v24 = vmul.f32 %v2253_v45, %v1507_v35  ;;  %v390_v13 = vadd.f32 %v2357_v36, %v382_v51  ;;  %v1653_v0 = vld [vmem:[#allocation4 + $0x10] sm:$0xf]  ;;  %v1661_v34 = vld [vmem:[#allocation4 + $0x18] sm:$0xf] }
  0x7f   : > { %v1568_v59 = vadd.f32 %v1567_v25, %v1561_v8  ;;  %v1316_v63 = vadd.f32 %v1315_v17, %v1309_v55  ;;  %v1503_v32 = vadd.f32 %v1502_v58, %v1500_v38  ;;  %v1221_v8 = vmul.f32 %v2263_v47, %v1219_v31  ;;  %v1655_v17 = vld [vmem:[#allocation4 + $0x11] sm:$0xf]  ;;  %v1591_v38 = vld [vmem:[#allocation4 + $0x1] sm:$0xf]  ;;  %v1664_v55 = vld [vmem:[#allocation4 + $0x19] sm:$0xf] }
  0x80   : > { %v391_v10 = vadd.f32 %v2357_v36, %v383_v20  ;;  %v1211_v9 = vadd.f32 %v1209_v42, %v1205_v21  ;;  %392 = vst [vmem:[%s2370_s7] sm:$0xff] %v390_v13  ;;  %v1511_v29 = vmul.f32 %v2258_v46, %v2246_v43  ;;  %v1658_v25 = vld [vmem:[#allocation4 + $0x12] sm:$0xf]  ;;  %v1214_v30 = vmul.f32 %v2258_v46, %v2241_v41  ;;  %v1206_v21 = vld [vmem:[#allocation2 + $0x168] sm:$0xff] }
  0x81   : > { %v1575_v28 = vadd.f32 %v1574_v27, %v1568_v59  ;;  %v1317_v12 = vadd.f32 %v2357_v36, %v1316_v63  ;;  %v1506_v16 = vadd.f32 %v1505_v22, %v1503_v32  ;;  %v1190_v44 = vld [vmem:[#allocation2 + $0x150] sm:$0xff]  ;;  %v1514_v23 = vmul.f32 %v2263_v47, %v1513_v11  ;;  %v1625_v13 = vld [vmem:[#allocation4 + $0x8] sm:$0xf] }
  0x82   : > { %393 = vst [vmem:[%s2370_s7 + $0x8] sm:$0xff] %v391_v10  ;;  %v1217_v27 = vadd.f32 %v2292_v57, %v1211_v9  ;;  %v1654_v43 = vmul.f32 %v2336_v26, %v1653_v0  ;;  %v1200_v40 = vld [vmem:[#allocation2 + $0x152] sm:$0xff]  ;;  %v1656_v57 = vmul.f32 %v2341_v56, %v1655_v17  ;;  %v1659_v51 = vmul.f32 %v2346_v14, %v1658_v25  ;;  %v1218_v17 = vld [vmem:[#allocation2 + $0x16a] sm:$0xff] }
  0x83   : > { %v1582_v39 = vadd.f32 %v1581_v15, %v1575_v28  ;;  %1318 = vst [vmem:[%s2370_s7 + $0x100] sm:$0xff] %v1317_v12  ;;  %v1509_v15 = vadd.f32 %v1508_v24, %v1506_v16  ;;  %v424_v59 = vmul.f32 %v2253_v45, %v2286_v54  ;;  %v2390_v31 = vmul.f32 %v2336_v26, %v1585_v33  ;;  %v1598_v24 = vld [vmem:[#allocation4 + $0x2] sm:$0xf]  ;;  %v1667_v28 = vld [vmem:[#allocation4 + $0x1a] sm:$0xf] }
  0x84   : > { %v1223_v42 = vadd.f32 %v1221_v8, %v1217_v27  ;;  %v1662_v58 = vmul.f32 %v2253_v45, %v1661_v34  ;;  %v1192_v20 = vmul.f32 %v2336_v26, %v1190_v44  ;;  %v1657_v63 = vadd.f32 %v1656_v57, %v1654_v43  ;;  %v1627_v12 = vld [vmem:[#allocation4 + $0x9] sm:$0xf] }
  0x85   : > { %v1583_v35 = vadd.f32 %v2357_v36, %v1582_v39  ;;  %v1512_v41 = vadd.f32 %v1511_v29, %v1509_v15  ;;  %v1196_v32 = vmul.f32 %v2341_v56, %v2228_v37  ;;  %v1202_v10 = vmul.f32 %v2346_v14, %v1200_v40 }
  0x86   : > { %v1225_v22 = vadd.f32 %v2357_v36, %v1223_v42  ;;  %v2399_v8 = vmul.f32 %v2341_v56, %v1591_v38  ;;  %v1665_v11 = vmul.f32 %v2258_v46, %v1664_v55  ;;  %v400_v0 = vmul.f32 %v2336_v26, %v2282_v52 }
  0x87   : > { %1584 = vst [vmem:[%s2370_s7 + $0x140] sm:$0xf] %v1583_v35  ;;  %v1515_v9 = vadd.f32 %v1514_v23, %v1512_v41  ;;  %v1660_v39 = vadd.f32 %v1659_v51, %v1657_v63  ;;  %v1198_v16 = vadd.f32 %v1196_v32, %v1192_v20  ;;  %v1208_v29 = vmul.f32 %v2253_v45, %v1206_v21  ;;  %v2418_v23 = vld [vmem:[#allocation2 + $0x30] sm:$0xff] }
  0x88   : > { %1227 = vst [vmem:[%s2370_s7 + $0xf8] sm:$0xff] %v1225_v22  ;;  %v408_v37 = vmul.f32 %v2341_v56, %v2153_v1  ;;  %v2410_v27 = vmul.f32 %v2346_v14, %v1598_v24  ;;  %v2413_v33 = vmul.f32 %v2336_v26, %v1625_v13  ;;  %v1668_v52 = vmul.f32 %v2263_v47, %v1667_v28  ;;  %v2441_v28 = vld [vmem:[#allocation2 + $0x38] sm:$0xff] }
  0x89   : > { %v1516_v25 = vadd.f32 %v2357_v36, %v1515_v9  ;;  %v1663_v34 = vadd.f32 %v1662_v58, %v1660_v39  ;;  %v1204_v44 = vadd.f32 %v1202_v10, %v1198_v16  ;;  %v418_v15 = vmul.f32 %v2346_v14, %v2284_v53 }
  0x8a   : > { %v410_v35 = vadd.f32 %v408_v37, %v400_v0  ;;  %v2422_v1 = vmul.f32 %v2341_v56, %v1627_v12  ;;  %v1220_v43 = vmul.f32 %v2263_v47, %v1218_v17  ;;  %v401_v40 = vmul.f32 %v2336_v26, %v2300_v61  ;;  %v453_v17 = vld [vmem:[#allocation2 + $0x3a] sm:$0xff] }
  0x8b   : > { %1517 = vst [vmem:[%s2370_s7 + $0x138] sm:$0xff] %v1516_v25  ;;  %v409_v42 = vmul.f32 %v2341_v56, %v2156_v2  ;;  %v1666_v38 = vadd.f32 %v1665_v11, %v1663_v34  ;;  %v1210_v57 = vadd.f32 %v1208_v29, %v1204_v44  ;;  %v430_v53 = vmul.f32 %v2258_v46, %v2159_v3  ;;  %v452_v2 = vld [vmem:[#allocation2 + $0x32] sm:$0xff] }
  0x8c   : > { %v420_v51 = vadd.f32 %v418_v15, %v410_v35  ;;  %v436_v55 = vmul.f32 %v2263_v47, %v2298_v60  ;;  %v442_v41 = vmul.f32 %v2268_v48, %v2418_v23  ;;  %v419_v20 = vmul.f32 %v2346_v14, %v2302_v62 }
  0x8d   : > { %v411_v58 = vadd.f32 %v409_v42, %v401_v40  ;;  %v1669_v61 = vadd.f32 %v1668_v52, %v1666_v38  ;;  %v1216_v21 = vadd.f32 %v1214_v30, %v1210_v57  ;;  %v425_v24 = vmul.f32 %v2253_v45, %v2315_v18 }
  0x8e   : > { %v426_v22 = vadd.f32 %v424_v59, %v420_v51  ;;  %v431_v63 = vmul.f32 %v2258_v46, %v2165_v4  ;;  %v464_v32 = vmul.f32 %v2336_v26, %v2286_v54  ;;  %v468_v62 = vmul.f32 %v2341_v56, %v2159_v3 }
  0x8f   : > { %v421_v13 = vadd.f32 %v419_v20, %v411_v58  ;;  %v1670_v30 = vadd.f32 %v2357_v36, %v1669_v61  ;;  %v1222_v59 = vadd.f32 %v1220_v43, %v1216_v21  ;;  %v448_v9 = vmul.f32 %v2273_v49, %v2168_v5 }
  0x90   : > { %v432_v10 = vadd.f32 %v430_v53, %v426_v22  ;;  %v454_v11 = vmul.f32 %v2278_v50, %v452_v2  ;;  %v470_v12 = vadd.f32 %v468_v62, %v464_v32  ;;  %v474_v39 = vmul.f32 %v2346_v14, %v2298_v60  ;;  %v2463_v60 = vld [vmem:[#allocation2 + $0x48] sm:$0xff] }
  0x91   : > { %v427_v0 = vadd.f32 %v425_v24, %v421_v13  ;;  %1671 = vst [vmem:[%s2370_s7 + $0x14c] sm:$0xf] %v1670_v30  ;;  %v1224_v54 = vadd.f32 %v2357_v36, %v1222_v59  ;;  %v437_v3 = vmul.f32 %v2263_v47, %v2317_v19  ;;  %v443_v29 = vmul.f32 %v2268_v48, %v2441_v28  ;;  %v2484_v24 = vld [vmem:[#allocation2 + $0x50] sm:$0xff] }
  0x92   : > { %v438_v16 = vadd.f32 %v436_v55, %v432_v10  ;;  %v476_v25 = vadd.f32 %v474_v39, %v470_v12  ;;  %v480_v52 = vmul.f32 %v2253_v45, %v2418_v23  ;;  %v486_v34 = vmul.f32 %v2258_v46, %v2168_v5  ;;  %v2476_v55 = vld [vmem:[#allocation2 + $0x4a] sm:$0xff]  ;;  %v509_v39 = vld [vmem:[#allocation2 + $0x52] sm:$0xff] }
  0x93   : > { %v433_v37 = vadd.f32 %v431_v63, %v427_v0  ;;  %1226 = vst [vmem:[%s2370_s7 + $0xf0] sm:$0xff] %v1224_v54  ;;  %v449_v35 = vmul.f32 %v2273_v49, %v2171_v6  ;;  %v465_v15 = vmul.f32 %v2336_v26, %v2315_v18  ;;  %v469_v43 = vmul.f32 %v2341_v56, %v2165_v4 }
  0x94   : > { %v444_v44 = vadd.f32 %v442_v41, %v438_v16  ;;  %v455_v42 = vmul.f32 %v2278_v50, %v453_v17  ;;  %v482_v38 = vadd.f32 %v480_v52, %v476_v25  ;;  %v492_v57 = vmul.f32 %v2263_v47, %v452_v2  ;;  %v2505_v25 = vld [vmem:[#allocation2 + $0x60] sm:$0xff] }
  0x95   : > { %v439_v40 = vadd.f32 %v437_v3, %v433_v37  ;;  %v498_v53 = vmul.f32 %v2268_v48, %v2463_v60  ;;  %v471_v41 = vadd.f32 %v469_v43, %v465_v15  ;;  %v475_v58 = vmul.f32 %v2346_v14, %v2317_v19 }
  0x96   : > { %v450_v51 = vadd.f32 %v448_v9, %v444_v44  ;;  %v488_v20 = vadd.f32 %v486_v34, %v482_v38  ;;  %v481_v4 = vmul.f32 %v2253_v45, %v2441_v28  ;;  %v487_v61 = vmul.f32 %v2258_v46, %v2171_v6 }
  0x97   : > { %v445_v18 = vadd.f32 %v443_v29, %v439_v40  ;;  %v477_v22 = vadd.f32 %v475_v58, %v471_v41  ;;  %v520_v13 = vmul.f32 %v2336_v26, %v2418_v23  ;;  %v524_v63 = vmul.f32 %v2341_v56, %v2168_v5  ;;  %v2520_v58 = vld [vmem:[#allocation2 + $0x62] sm:$0xff] }
  0x98   : > { %v456_v21 = vadd.f32 %v454_v11, %v450_v51  ;;  %v494_v32 = vadd.f32 %v492_v57, %v488_v20  ;;  %v504_v62 = vmul.f32 %v2273_v49, %v2177_v7  ;;  %v510_v30 = vmul.f32 %v2278_v50, %v2476_v55 }
  0x99   : > { %v451_v19 = vadd.f32 %v449_v35, %v445_v18  ;;  %v483_v10 = vadd.f32 %v481_v4, %v477_v22  ;;  %v526_v9 = vadd.f32 %v524_v63, %v520_v13  ;;  %v530_v11 = vmul.f32 %v2346_v14, %v452_v2  ;;  %v3179_v35 = vld [vmem:[#allocation11_spill] sm:$0xff]  ;;  %v3180_v13 = vld [vmem:[#allocation12_spill] sm:$0xff] }
  0x9a   : > { %v458_v59 = vadd.f32 %v2357_v36, %v456_v21  ;;  %v500_v12 = vadd.f32 %v498_v53, %v494_v32  ;;  %v493_v23 = vmul.f32 %v2263_v47, %v453_v17  ;;  %v499_v5 = vmul.f32 %v2268_v48, %v2484_v24 }
  0x9b   : > { %v457_v0 = vadd.f32 %v455_v42, %v451_v19  ;;  %v489_v54 = vadd.f32 %v487_v61, %v483_v10  ;;  %v532_v16 = vadd.f32 %v530_v11, %v526_v9  ;;  %v536_v3 = vmul.f32 %v2253_v45, %v2463_v60  ;;  %v553_v9 = vld [vmem:[#allocation2 + $0x68] sm:$0xff] }
  0x9c   : > { %460 = vst [vmem:[%s2370_s7 + $0x10] sm:$0xff] %v458_v59  ;;  %v542_v29 = vmul.f32 %v2258_v46, %v2177_v7  ;;  %v506_v37 = vadd.f32 %v504_v62, %v500_v12  ;;  %v521_v52 = vmul.f32 %v2336_v26, %v2441_v28  ;;  %v525_v34 = vmul.f32 %v2341_v56, %v2171_v6  ;;  %v1630_v28 = vld [vmem:[#allocation4 + $0xa] sm:$0xf] }
  0x9d   : > { %v459_v2 = vadd.f32 %v2357_v36, %v457_v0  ;;  %v495_v44 = vadd.f32 %v493_v23, %v489_v54  ;;  %v505_v15 = vmul.f32 %v2273_v49, %v3179_v35  ;;  %v511_v43 = vmul.f32 %v2278_v50, %v509_v39  ;;  %v2540_v11 = vld [vmem:[#allocation2 + $0x6a] sm:$0xff] }
  0x9e   : > { %v538_v40 = vadd.f32 %v536_v3, %v532_v16  ;;  %v512_v42 = vadd.f32 %v510_v30, %v506_v37  ;;  %v548_v38 = vmul.f32 %v2263_v47, %v2476_v55  ;;  %v527_v57 = vadd.f32 %v525_v34, %v521_v52  ;;  %v3181_v52 = vld [vmem:[#allocation13_spill] sm:$0xff] }
  0x9f   : > { %461 = vst [vmem:[%s2370_s7 + $0x18] sm:$0xff] %v459_v2  ;;  %v531_v51 = vmul.f32 %v2346_v14, %v453_v17  ;;  %v501_v53 = vadd.f32 %v499_v5, %v495_v44  ;;  %v554_v6 = vmul.f32 %v2268_v48, %v2505_v25  ;;  %v537_v18 = vmul.f32 %v2253_v45, %v2484_v24 }
  0xa0   : > { %v544_v41 = vadd.f32 %v542_v29, %v538_v40  ;;  %v514_v20 = vadd.f32 %v2357_v36, %v512_v42  ;;  %v543_v61 = vmul.f32 %v2258_v46, %v3179_v35  ;;  %v576_v17 = vmul.f32 %v2336_v26, %v2463_v60 }
  0xa1   : > { %v533_v4 = vadd.f32 %v531_v51, %v527_v57  ;;  %v507_v21 = vadd.f32 %v505_v15, %v501_v53  ;;  %v560_v63 = vmul.f32 %v2273_v49, %v3180_v13  ;;  %v580_v19 = vmul.f32 %v2341_v56, %v2177_v7  ;;  %v620_v57 = vld [vmem:[#allocation2 + $0x7a] sm:$0xff] }
  0xa2   : > { %v550_v22 = vadd.f32 %v548_v38, %v544_v41  ;;  %v2534_v32 = vmul.f32 %v2346_v14, %v1630_v28  ;;  %516 = vst [vmem:[%s2370_s7 + $0x20] sm:$0xff] %v514_v20  ;;  %v566_v62 = vmul.f32 %v2278_v50, %v2520_v58  ;;  %v549_v59 = vmul.f32 %v2263_v47, %v509_v39 }
  0xa3   : > { %v539_v30 = vadd.f32 %v537_v18, %v533_v4  ;;  %v513_v10 = vadd.f32 %v511_v43, %v507_v21  ;;  %v582_v0 = vadd.f32 %v580_v19, %v576_v17  ;;  %v586_v7 = vmul.f32 %v2346_v14, %v2476_v55  ;;  %v2566_v18 = vld [vmem:[#allocation2 + $0x80] sm:$0xff] }
  0xa4   : > { %v556_v60 = vadd.f32 %v554_v6, %v550_v22  ;;  %v592_v23 = vmul.f32 %v2253_v45, %v2505_v25  ;;  %v598_v5 = vmul.f32 %v2258_v46, %v3180_v13  ;;  %v577_v54 = vmul.f32 %v2336_v26, %v2484_v24  ;;  %v608_v24 = vld [vmem:[#allocation2 + $0x78] sm:$0xff] }
  0xa5   : > { %v545_v12 = vadd.f32 %v543_v61, %v539_v30  ;;  %v515_v16 = vadd.f32 %v2357_v36, %v513_v10  ;;  %v588_v29 = vadd.f32 %v586_v7, %v582_v0  ;;  %v581_v2 = vmul.f32 %v2341_v56, %v3179_v35  ;;  %v3182_v61 = vld [vmem:[#allocation14_spill] sm:$0xff]  ;;  %v635_v30 = vld [vmem:[#allocation2 + $0x69] sm:$0xff] }
  0xa6   : > { %v562_v3 = vadd.f32 %v560_v63, %v556_v60  ;;  %v555_v55 = vmul.f32 %v2268_v48, %v553_v9  ;;  %v561_v34 = vmul.f32 %v2273_v49, %v3181_v52  ;;  %v567_v44 = vmul.f32 %v2278_v50, %v2540_v11  ;;  %v2581_v10 = vld [vmem:[#allocation2 + $0x82] sm:$0xff] }
  0xa7   : > { %v551_v37 = vadd.f32 %v549_v59, %v545_v12  ;;  %517 = vst [vmem:[%s2370_s7 + $0x28] sm:$0xff] %v515_v16  ;;  %v594_v43 = vadd.f32 %v592_v23, %v588_v29  ;;  %v583_v40 = vadd.f32 %v581_v2, %v577_v54  ;;  %v587_v42 = vmul.f32 %v2346_v14, %v509_v39 }
  0xa8   : > { %v568_v15 = vadd.f32 %v566_v62, %v562_v3  ;;  %v604_v35 = vmul.f32 %v2263_v47, %v2520_v58  ;;  %v593_v51 = vmul.f32 %v2253_v45, %v553_v9  ;;  %v599_v28 = vmul.f32 %v2258_v46, %v3181_v52  ;;  %v2590_v3 = vld [vmem:[#allocation2 + $0x90] sm:$0xff] }
  0xa9   : > { %v557_v38 = vadd.f32 %v555_v55, %v551_v37  ;;  %v600_v41 = vadd.f32 %v598_v5, %v594_v43  ;;  %v589_v6 = vadd.f32 %v587_v42, %v583_v40  ;;  %v632_v20 = vmul.f32 %v2336_v26, %v2505_v25  ;;  %v3183_v55 = vld [vmem:[#allocation15_spill] sm:$0xff] }
  0xaa   : > { %v570_v53 = vadd.f32 %v2357_v36, %v568_v15  ;;  %v610_v4 = vmul.f32 %v2268_v48, %v608_v24  ;;  %v616_v17 = vmul.f32 %v2273_v49, %v3182_v61  ;;  %v636_v21 = vmul.f32 %v2341_v56, %v3180_v13  ;;  %v653_v40 = vld [vmem:[#allocation2 + $0x81] sm:$0xff] }
  0xab   : > { %v563_v39 = vadd.f32 %v561_v34, %v557_v38  ;;  %v606_v22 = vadd.f32 %v604_v35, %v600_v41  ;;  %v622_v63 = vmul.f32 %v2278_v50, %v620_v57  ;;  %v595_v19 = vadd.f32 %v593_v51, %v589_v6  ;;  %v690_v34 = vld [vmem:[#allocation2 + $0x79] sm:$0xff] }
  0xac   : > { %572 = vst [vmem:[%s2370_s7 + $0x30] sm:$0xff] %v570_v53  ;;  %v605_v62 = vmul.f32 %v2263_v47, %v2540_v11  ;;  %v611_v25 = vmul.f32 %v2268_v48, %v2566_v18  ;;  %v638_v60 = vadd.f32 %v636_v21, %v632_v20  ;;  %v642_v13 = vmul.f32 %v2346_v14, %v2520_v58  ;;  %v676_v53 = vld [vmem:[#allocation2 + $0x92] sm:$0xff] }
  0xad   : > { %v569_v59 = vadd.f32 %v567_v44, %v563_v39  ;;  %v612_v0 = vadd.f32 %v610_v4, %v606_v22  ;;  %v601_v7 = vadd.f32 %v599_v28, %v595_v19  ;;  %v648_v12 = vmul.f32 %v2253_v45, %v608_v24  ;;  %v2605_v6 = vld [vmem:[#allocation2 + $0x98] sm:$0xff] }
  0xae   : > { %v633_v23 = vmul.f32 %v2336_v26, %v553_v9  ;;  %v644_v54 = vadd.f32 %v642_v13, %v638_v60  ;;  %v654_v16 = vmul.f32 %v2258_v46, %v3182_v61  ;;  %v637_v29 = vmul.f32 %v2341_v56, %v635_v30  ;;  %v3184_v61 = vld [vmem:[#allocation16_spill] sm:$0xff]  ;;  %v671_v19 = vld [vmem:[#allocation2 + $0x99] sm:$0xff]  ;;  %v708_v13 = vld [vmem:[#allocation2 + $0x91] sm:$0xff] }
  0xaf   : > { %v571_v5 = vadd.f32 %v2357_v36, %v569_v59  ;;  %v618_v2 = vadd.f32 %v616_v17, %v612_v0  ;;  %v607_v37 = vadd.f32 %v605_v62, %v601_v7  ;;  %v617_v58 = vmul.f32 %v2273_v49, %v3183_v55 }
  0xb0   : > { %v623_v52 = vmul.f32 %v2278_v50, %v2581_v10  ;;  %v650_v9 = vadd.f32 %v648_v12, %v644_v54  ;;  %v660_v44 = vmul.f32 %v2263_v47, %v620_v57  ;;  %v639_v15 = vadd.f32 %v637_v29, %v633_v23  ;;  %v677_v12 = vld [vmem:[#allocation2 + $0x9a] sm:$0xff] }
  0xb1   : > { %573 = vst [vmem:[%s2370_s7 + $0x38] sm:$0xff] %v571_v5  ;;  %v643_v43 = vmul.f32 %v2346_v14, %v2540_v11  ;;  %v624_v42 = vadd.f32 %v622_v63, %v618_v2  ;;  %v613_v38 = vadd.f32 %v611_v25, %v607_v37  ;;  %v666_v35 = vmul.f32 %v2268_v48, %v2590_v3 }
  0xb2   : > { %v649_v51 = vmul.f32 %v2253_v45, %v2566_v18  ;;  %v656_v28 = vadd.f32 %v654_v16, %v650_v9  ;;  %v688_v20 = vmul.f32 %v2336_v26, %v608_v24  ;;  %v692_v39 = vmul.f32 %v2341_v56, %v690_v34  ;;  %v2624_v16 = vld [vmem:[#allocation2 + $0xa8] sm:$0xff] }
  0xb3   : > { %v645_v41 = vadd.f32 %v643_v43, %v639_v15  ;;  %v626_v11 = vadd.f32 %v2357_v36, %v624_v42  ;;  %v619_v4 = vadd.f32 %v617_v58, %v613_v38  ;;  %v672_v17 = vmul.f32 %v2273_v49, %v3184_v61  ;;  %v721_v61 = vld [vmem:[#allocation2 + $0xb0] sm:$0xff] }
  0xb4   : > { %v655_v21 = vmul.f32 %v2258_v46, %v653_v40  ;;  %v662_v22 = vadd.f32 %v660_v44, %v656_v28  ;;  %v694_v62 = vadd.f32 %v692_v39, %v688_v20  ;;  %v698_v30 = vmul.f32 %v2346_v14, %v620_v57  ;;  %v726_v44 = vld [vmem:[#allocation2 + $0xa9] sm:$0xff] }
  0xb5   : > { %v651_v63 = vadd.f32 %v649_v51, %v645_v41  ;;  %628 = vst [vmem:[%s2370_s7 + $0x40] sm:$0xff] %v626_v11  ;;  %v625_v59 = vadd.f32 %v623_v52, %v619_v4  ;;  %v678_v24 = vmul.f32 %v2278_v50, %v676_v53  ;;  %v661_v25 = vmul.f32 %v2263_v47, %v2581_v10 }
  0xb6   : > { %v667_v60 = vmul.f32 %v2268_v48, %v2605_v6  ;;  %v668_v0 = vadd.f32 %v666_v35, %v662_v22  ;;  %v700_v23 = vadd.f32 %v698_v30, %v694_v62  ;;  %v704_v5 = vmul.f32 %v2253_v45, %v2590_v3  ;;  %v2637_v35 = vld [vmem:[#allocation2 + $0xaa] sm:$0xff] }
  0xb7   : > { %v657_v7 = vadd.f32 %v655_v21, %v651_v63  ;;  %v627_v57 = vadd.f32 %v2357_v36, %v625_v59  ;;  %v673_v54 = vmul.f32 %v2273_v49, %v671_v19  ;;  %v689_v29 = vmul.f32 %v2336_v26, %v2566_v18 }
  0xb8   : > { %v693_v2 = vmul.f32 %v2341_v56, %v653_v40  ;;  %v674_v37 = vadd.f32 %v672_v17, %v668_v0  ;;  %v706_v58 = vadd.f32 %v704_v5, %v700_v23  ;;  %v710_v52 = vmul.f32 %v2258_v46, %v708_v13  ;;  %v2656_v5 = vld [vmem:[#allocation2 + $0xc0] sm:$0xff] }
  0xb9   : > { %v663_v55 = vadd.f32 %v661_v25, %v657_v7  ;;  %629 = vst [vmem:[%s2370_s7 + $0x48] sm:$0xff] %v627_v57  ;;  %v679_v34 = vmul.f32 %v2278_v50, %v677_v12  ;;  %v716_v9 = vmul.f32 %v2263_v47, %v676_v53  ;;  %v699_v43 = vmul.f32 %v2346_v14, %v2581_v10 }
  0xba   : > { %v695_v15 = vadd.f32 %v693_v2, %v689_v29  ;;  %v680_v42 = vadd.f32 %v678_v24, %v674_v37  ;;  %v712_v18 = vadd.f32 %v710_v52, %v706_v58  ;;  %v722_v40 = vmul.f32 %v2268_v48, %v2624_v16  ;;  %v727_v24 = vld [vmem:[#allocation2 + $0xb1] sm:$0xff] }
  0xbb   : > { %v669_v38 = vadd.f32 %v667_v60, %v663_v55  ;;  %v705_v28 = vmul.f32 %v2253_v45, %v2605_v6  ;;  %v744_v41 = vmul.f32 %v2336_v26, %v2590_v3  ;;  %v748_v20 = vmul.f32 %v2341_v56, %v708_v13  ;;  %v733_v13 = vld [vmem:[#allocation2 + $0xb2] sm:$0xff] }
  0xbc   : > { %v701_v51 = vadd.f32 %v699_v43, %v695_v15  ;;  %v682_v10 = vadd.f32 %v2357_v36, %v680_v42  ;;  %v718_v11 = vadd.f32 %v716_v9, %v712_v18  ;;  %v728_v4 = vmul.f32 %v2273_v49, %v726_v44 }
  0xbd   : > { %v675_v39 = vadd.f32 %v673_v54, %v669_v38  ;;  %v711_v21 = vmul.f32 %v2258_v46, %v671_v19  ;;  %v750_v22 = vadd.f32 %v748_v20, %v744_v41  ;;  %v754_v63 = vmul.f32 %v2346_v14, %v676_v53  ;;  %v2670_v38 = vld [vmem:[#allocation2 + $0xc2] sm:$0xff] }
  0xbe   : > { %v707_v17 = vadd.f32 %v705_v28, %v701_v51  ;;  %684 = vst [vmem:[%s2370_s7 + $0x50] sm:$0xff] %v682_v10  ;;  %v724_v30 = vadd.f32 %v722_v40, %v718_v11  ;;  %v734_v3 = vmul.f32 %v2278_v50, %v2637_v35  ;;  %v717_v59 = vmul.f32 %v2263_v47, %v677_v12  ;;  %v777_v10 = vld [vmem:[#allocation2 + $0xc8] sm:$0xff] }
  0xbf   : > { %v681_v62 = vadd.f32 %v679_v34, %v675_v39  ;;  %v723_v60 = vmul.f32 %v2268_v48, %v721_v61  ;;  %v756_v0 = vadd.f32 %v754_v63, %v750_v22  ;;  %v760_v7 = vmul.f32 %v2253_v45, %v2624_v16  ;;  %v782_v34 = vld [vmem:[#allocation2 + $0xc1] sm:$0xff] }
  0xc0   : > { %v713_v25 = vadd.f32 %v711_v21, %v707_v17  ;;  %v730_v23 = vadd.f32 %v728_v4, %v724_v30  ;;  %v745_v57 = vmul.f32 %v2336_v26, %v2605_v6  ;;  %v749_v54 = vmul.f32 %v2341_v56, %v671_v19 }
  0xc1   : > { %v683_v53 = vadd.f32 %v2357_v36, %v681_v62  ;;  %v729_v2 = vmul.f32 %v2273_v49, %v727_v24  ;;  %v762_v37 = vadd.f32 %v760_v7, %v756_v0  ;;  %v766_v55 = vmul.f32 %v2258_v46, %v726_v44  ;;  %v783_v62 = vld [vmem:[#allocation2 + $0xc9] sm:$0xff] }
  0xc2   : > { %v719_v29 = vadd.f32 %v717_v59, %v713_v25  ;;  %v736_v58 = vadd.f32 %v734_v3, %v730_v23  ;;  %v735_v52 = vmul.f32 %v2278_v50, %v733_v13  ;;  %v751_v9 = vadd.f32 %v749_v54, %v745_v57  ;;  %v2692_v23 = vld [vmem:[#allocation2 + $0xd8] sm:$0xff] }
  0xc3   : > { %685 = vst [vmem:[%s2370_s7 + $0x58] sm:$0xff] %v683_v53  ;;  %v755_v15 = vmul.f32 %v2346_v14, %v677_v12  ;;  %v768_v42 = vadd.f32 %v766_v55, %v762_v37  ;;  %v772_v6 = vmul.f32 %v2263_v47, %v2637_v35  ;;  %v778_v19 = vmul.f32 %v2268_v48, %v2656_v5 }
  0xc4   : > { %v725_v43 = vadd.f32 %v723_v60, %v719_v29  ;;  %v738_v18 = vadd.f32 %v2357_v36, %v736_v58  ;;  %v761_v51 = vmul.f32 %v2253_v45, %v721_v61  ;;  %v800_v28 = vmul.f32 %v2336_v26, %v2624_v16  ;;  %v2683_v16 = vld [vmem:[#allocation2 + $0xca] sm:$0xff]  ;;  %v2700_v58 = vld [vmem:[#allocation2 + $0xda] sm:$0xff] }
  0xc5   : > { %v757_v40 = vadd.f32 %v755_v15, %v751_v9  ;;  %v774_v12 = vadd.f32 %v772_v6, %v768_v42  ;;  %v784_v20 = vmul.f32 %v2273_v49, %v782_v34  ;;  %v804_v39 = vmul.f32 %v2341_v56, %v726_v44 }
  0xc6   : > { %v731_v41 = vadd.f32 %v729_v2, %v725_v43  ;;  %740 = vst [vmem:[%s2370_s7 + $0x60] sm:$0xff] %v738_v18  ;;  %v790_v11 = vmul.f32 %v2278_v50, %v2670_v38  ;;  %v767_v17 = vmul.f32 %v2258_v46, %v727_v24  ;;  %v773_v21 = vmul.f32 %v2263_v47, %v733_v13 }
  0xc7   : > { %v763_v4 = vadd.f32 %v761_v51, %v757_v40  ;;  %v780_v63 = vadd.f32 %v778_v19, %v774_v12  ;;  %v806_v30 = vadd.f32 %v804_v39, %v800_v28  ;;  %v810_v3 = vmul.f32 %v2346_v14, %v2637_v35  ;;  %v2709_v40 = vld [vmem:[#allocation2 + $0xe0] sm:$0xff] }
  0xc8   : > { %v737_v22 = vadd.f32 %v735_v52, %v731_v41  ;;  %v779_v59 = vmul.f32 %v2268_v48, %v777_v10  ;;  %v816_v25 = vmul.f32 %v2253_v45, %v2656_v5  ;;  %v801_v60 = vmul.f32 %v2336_v26, %v721_v61  ;;  %v838_v61 = vld [vmem:[#allocation2 + $0xd9] sm:$0xff]  ;;  %v2716_v12 = vld [vmem:[#allocation2 + $0xe1] sm:$0xff] }
  0xc9   : > { %v769_v44 = vadd.f32 %v767_v17, %v763_v4  ;;  %v786_v7 = vadd.f32 %v784_v20, %v780_v63  ;;  %v812_v53 = vadd.f32 %v810_v3, %v806_v30  ;;  %v805_v57 = vmul.f32 %v2341_v56, %v727_v24 }
  0xca   : > { %v739_v0 = vadd.f32 %v2357_v36, %v737_v22  ;;  %v785_v29 = vmul.f32 %v2273_v49, %v783_v62  ;;  %v791_v35 = vmul.f32 %v2278_v50, %v2683_v16  ;;  %v822_v2 = vmul.f32 %v2258_v46, %v782_v34  ;;  %v2725_v22 = vld [vmem:[#allocation2 + $0xe2] sm:$0xff] }
  0xcb   : > { %v775_v54 = vadd.f32 %v773_v21, %v769_v44  ;;  %v792_v37 = vadd.f32 %v790_v11, %v786_v7  ;;  %v818_v55 = vadd.f32 %v816_v25, %v812_v53  ;;  %v807_v52 = vadd.f32 %v805_v57, %v801_v60 }
  0xcc   : > { %741 = vst [vmem:[%s2370_s7 + $0x68] sm:$0xff] %v739_v0  ;;  %v811_v9 = vmul.f32 %v2346_v14, %v733_v13  ;;  %v828_v24 = vmul.f32 %v2263_v47, %v2670_v38  ;;  %v834_v43 = vmul.f32 %v2268_v48, %v2692_v23  ;;  %v817_v42 = vmul.f32 %v2253_v45, %v777_v10  ;;  %v2735_v0 = vld [vmem:[#allocation2 + $0xf0] sm:$0xff] }
  0xcd   : > { %v781_v15 = vadd.f32 %v779_v59, %v775_v54  ;;  %v794_v6 = vadd.f32 %v2357_v36, %v792_v37  ;;  %v824_v19 = vadd.f32 %v822_v2, %v818_v55  ;;  %v856_v51 = vmul.f32 %v2336_v26, %v2656_v5  ;;  %v2751_v37 = vld [vmem:[%s3152_s0 + $0x6] ss:$0 sm:$0xff] }
  0xce   : > { %v813_v18 = vadd.f32 %v811_v9, %v807_v52  ;;  %v840_v13 = vmul.f32 %v2273_v49, %v838_v61  ;;  %v846_v41 = vmul.f32 %v2278_v50, %v2700_v58  ;;  %v860_v20 = vmul.f32 %v2341_v56, %v782_v34  ;;  %v2764_v9 = vld [vmem:[#allocation2 + $0xf8] sm:$0xff] }
  0xcf   : > { %v787_v28 = vadd.f32 %v785_v29, %v781_v15  ;;  %796 = vst [vmem:[%s2370_s7 + $0x70] sm:$0xff] %v794_v6  ;;  %v830_v39 = vadd.f32 %v828_v24, %v824_v19  ;;  %v823_v4 = vmul.f32 %v2258_v46, %v783_v62  ;;  %v829_v17 = vmul.f32 %v2263_v47, %v2683_v16  ;;  %v2744_v29 = vld [vmem:[#allocation2 + $0xf1] sm:$0xff]  ;;  %v2773_v6 = vld [vmem:[%s3152_s0 + $0x7] ss:$0 sm:$0xff] }
  0xd0   : > { %v819_v11 = vadd.f32 %v817_v42, %v813_v18  ;;  %v835_v5 = vmul.f32 %v2268_v48, %v2709_v40  ;;  %v862_v63 = vadd.f32 %v860_v20, %v856_v51  ;;  %v866_v30 = vmul.f32 %v2346_v14, %v2670_v38  ;;  %v2780_v18 = vld [vmem:[%s3152_s0 + $0x4] ss:$0 sm:$0xff] }
  0xd1   : > { %v793_v21 = vadd.f32 %v791_v35, %v787_v28  ;;  %v836_v34 = vadd.f32 %v834_v43, %v830_v39  ;;  %v841_v44 = vmul.f32 %v2273_v49, %v2716_v12  ;;  %v857_v59 = vmul.f32 %v2336_v26, %v777_v10  ;;  %v2784_v28 = vld [vmem:[#allocation2 + $0xf9] sm:$0xff]  ;;  %v2792_v39 = vld [vmem:[%s3152_s0 + $0x8] ss:$0 sm:$0xff] }
  0xd2   : > { %v825_v3 = vadd.f32 %v823_v4, %v819_v11  ;;  %v868_v60 = vadd.f32 %v866_v30, %v862_v63  ;;  %v872_v48 = vmul.f32 %v2253_v45, %v2692_v23  ;;  %v861_v7 = vmul.f32 %v2341_v56, %v783_v62  ;;  %v2799_v4 = vld [vmem:[%s3152_s0 + $0x5] ss:$0 sm:$0xff]  ;;  %v2805_v63 = vld [vmem:[#allocation2 + $0xfa] sm:$0xff] }
  0xd3   : > { %v795_v25 = vadd.f32 %v2357_v36, %v793_v21  ;;  %v842_v53 = vadd.f32 %v840_v13, %v836_v34  ;;  %v847_v38 = vmul.f32 %v2278_v50, %v2725_v22  ;;  %v878_v54 = vmul.f32 %v2258_v46, %v838_v61 }
  0xd4   : > { %v831_v57 = vadd.f32 %v829_v17, %v825_v3  ;;  %v874_v49 = vadd.f32 %v872_v48, %v868_v60  ;;  %v884_v10 = vmul.f32 %v2263_v47, %v2700_v58  ;;  %v863_v35 = vadd.f32 %v861_v7, %v857_v59  ;;  %v2758_v47 = vld [vmem:[%s3152_s0 + $0x3] ss:$0 sm:$0xff]  ;;  %v2812_v59 = vld [vmem:[#allocation2 + $0x108] sm:$0xff] }
  0xd5   : > { %797 = vst [vmem:[%s2370_s7 + $0x78] sm:$0xff] %v795_v25  ;;  %v867_v45 = vmul.f32 %v2346_v14, %v2683_v16  ;;  %v848_v2 = vadd.f32 %v846_v41, %v842_v53  ;;  %v890_v46 = vmul.f32 %v2751_v37, %v2735_v0  ;;  %v873_v50 = vmul.f32 %v2758_v47, %v2709_v40  ;;  %v2762_v16 = vld [vmem:[#allocation2 + $0xf2] sm:$0xff] }
  0xd6   : > { %v837_v62 = vadd.f32 %v835_v5, %v831_v57  ;;  %v880_v55 = vadd.f32 %v878_v54, %v874_v49  ;;  %v912_v15 = vmul.f32 %v2336_v26, %v2692_v23  ;;  %v916_v24 = vmul.f32 %v2341_v56, %v838_v61  ;;  %v2825_v49 = vld [vmem:[#allocation2 + $0x109] sm:$0xff] }
  0xd7   : > { %v869_v52 = vadd.f32 %v867_v45, %v863_v35  ;;  %v850_v43 = vadd.f32 %v2357_v36, %v848_v2  ;;  %v896_v19 = vmul.f32 %v2773_v6, %v2744_v29  ;;  %v879_v23 = vmul.f32 %v2780_v18, %v2716_v12  ;;  %v2831_v45 = vld [vmem:[#allocation2 + $0x10a] sm:$0xff] }
  0xd8   : > { %v843_v42 = vadd.f32 %v841_v44, %v837_v62  ;;  %v886_v61 = vadd.f32 %v884_v10, %v880_v55  ;;  %v918_v13 = vadd.f32 %v916_v24, %v912_v15  ;;  %v922_v41 = vmul.f32 %v2346_v14, %v2700_v58 }
  0xd9   : > { %v875_v51 = vadd.f32 %v873_v50, %v869_v52  ;;  %852 = vst [vmem:[%s2370_s7 + $0x80] sm:$0xff] %v850_v43  ;;  %v902_v11 = vmul.f32 %v2792_v39, %v2762_v16  ;;  %v885_v17 = vmul.f32 %v2799_v4, %v2725_v22  ;;  %v891_v58 = vmul.f32 %v2751_v37, %v2764_v9  ;;  %v945_v43 = vld [vmem:[#allocation2 + $0x110] sm:$0xff] }
  0xda   : > { %v849_v20 = vadd.f32 %v847_v38, %v843_v42  ;;  %v892_v21 = vadd.f32 %v890_v46, %v886_v61  ;;  %v924_v30 = vadd.f32 %v922_v41, %v918_v13  ;;  %v928_v34 = vmul.f32 %v2758_v47, %v2735_v0  ;;  %v2838_v46 = vld [vmem:[%s3152_s0] ss:$0 sm:$0xff]  ;;  %v951_v41 = vld [vmem:[#allocation2 + $0x111] sm:$0xff] }
  0xdb   : > { %v881_v5 = vadd.f32 %v879_v23, %v875_v51  ;;  %v897_v44 = vmul.f32 %v2773_v6, %v2784_v28  ;;  %v913_v25 = vmul.f32 %v2336_v26, %v2709_v40  ;;  %v917_v60 = vmul.f32 %v2341_v56, %v2716_v12  ;;  %v2857_v23 = vld [vmem:[%s3152_s0 + $0x2] ss:$0 sm:$0xff] }
  0xdc   : > { %v851_v3 = vadd.f32 %v2357_v36, %v849_v20  ;;  %v898_v48 = vadd.f32 %v896_v19, %v892_v21  ;;  %v930_v53 = vadd.f32 %v928_v34, %v924_v30  ;;  %v934_v57 = vmul.f32 %v2780_v18, %v2744_v29  ;;  %v2874_v21 = vld [vmem:[%s3153_s1] ss:$0 sm:$0xff] }
  0xdd   : > { %v887_v7 = vadd.f32 %v885_v17, %v881_v5  ;;  %v903_v38 = vmul.f32 %v2792_v39, %v2805_v63  ;;  %v940_v54 = vmul.f32 %v2799_v4, %v2762_v16  ;;  %v919_v10 = vadd.f32 %v917_v60, %v913_v25  ;;  %v2867_v17 = vld [vmem:[#allocation2 + $0x112] sm:$0xff]  ;;  %v2877_v34 = vld [vmem:[#allocation2 + $0x120] sm:$0xff] }
  0xde   : > { %853 = vst [vmem:[%s2370_s7 + $0x88] sm:$0xff] %v851_v3  ;;  %v923_v26 = vmul.f32 %v2346_v14, %v2725_v22  ;;  %v904_v56 = vadd.f32 %v902_v11, %v898_v48  ;;  %v936_v12 = vadd.f32 %v934_v57, %v930_v53  ;;  %v946_v35 = vmul.f32 %v2751_v37, %v2812_v59  ;;  %v2845_v22 = vld [vmem:[%s3152_s0 + $0x1] ss:$0 sm:$0xff] }
  0xdf   : > { %v893_v40 = vadd.f32 %v891_v58, %v887_v7  ;;  %v929_v62 = vmul.f32 %v2758_v47, %v2764_v9  ;;  %v968_v14 = vmul.f32 %v2838_v46, %v2735_v0  ;;  %v972_v50 = vmul.f32 %v2845_v22, %v2744_v29 }
  0xe0   : > { %v925_v2 = vadd.f32 %v923_v26, %v919_v10  ;;  %v906_v55 = vadd.f32 %v2357_v36, %v904_v56  ;;  %v942_v15 = vadd.f32 %v940_v54, %v936_v12  ;;  %v952_v24 = vmul.f32 %v2773_v6, %v2825_v49 }
  0xe1   : > { %v899_v52 = vadd.f32 %v897_v44, %v893_v40  ;;  %v935_v0 = vmul.f32 %v2780_v18, %v2784_v28  ;;  %v974_v19 = vadd.f32 %v972_v50, %v968_v14  ;;  %v978_v29 = vmul.f32 %v2857_v23, %v2762_v16  ;;  %v2895_v40 = vld [vmem:[#allocation2 + $0x122] sm:$0xff] }
  0xe2   : > { %v931_v42 = vadd.f32 %v929_v62, %v925_v2  ;;  %908 = vst [vmem:[%s2370_s7 + $0x90] sm:$0xff] %v906_v55  ;;  %v948_v61 = vadd.f32 %v946_v35, %v942_v15  ;;  %v958_v51 = vmul.f32 %v2792_v39, %v2831_v45  ;;  %v941_v13 = vmul.f32 %v2799_v4, %v2805_v63  ;;  %v1001_v55 = vld [vmem:[#allocation2 + $0x128] sm:$0xff] }
  0xe3   : > { %v905_v36 = vadd.f32 %v903_v38, %v899_v52  ;;  %v947_v11 = vmul.f32 %v2751_v37, %v945_v43  ;;  %v980_v58 = vadd.f32 %v978_v29, %v974_v19  ;;  %v984_v16 = vmul.f32 %v2758_v47, %v2812_v59  ;;  %v1006_v38 = vld [vmem:[#allocation2 + $0x121] sm:$0xff]  ;;  %v1007_v29 = vld [vmem:[#allocation2 + $0x129] sm:$0xff] }
  0xe4   : > { %v937_v20 = vadd.f32 %v935_v0, %v931_v42  ;;  %v954_v30 = vadd.f32 %v952_v24, %v948_v61  ;;  %v969_v3 = vmul.f32 %v2838_v46, %v2764_v9  ;;  %v973_v44 = vmul.f32 %v2845_v22, %v2784_v28 }
  0xe5   : > { %v907_v5 = vadd.f32 %v2874_v21, %v905_v36  ;;  %v953_v60 = vmul.f32 %v2773_v6, %v951_v41  ;;  %v986_v48 = vadd.f32 %v984_v16, %v980_v58  ;;  %v990_v7 = vmul.f32 %v2780_v18, %v2825_v49  ;;  %v2910_v36 = vld [vmem:[#allocation2 + $0x12a] sm:$0xff] }
  0xe6   : > { %v943_v25 = vadd.f32 %v941_v13, %v937_v20  ;;  %v960_v53 = vadd.f32 %v958_v51, %v954_v30  ;;  %v959_v57 = vmul.f32 %v2792_v39, %v2867_v17  ;;  %v975_v54 = vadd.f32 %v973_v44, %v969_v3  ;;  %v2919_v30 = vld [vmem:[#allocation2 + $0x138] sm:$0xff] }
  0xe7   : > { %909 = vst [vmem:[%s2370_s7 + $0x98] sm:$0xff] %v907_v5  ;;  %v979_v9 = vmul.f32 %v2857_v23, %v2805_v63  ;;  %v992_v28 = vadd.f32 %v990_v7, %v986_v48  ;;  %v996_v26 = vmul.f32 %v2799_v4, %v2831_v45  ;;  %v1002_v56 = vmul.f32 %v2751_v37, %v2877_v34 }
  0xe8   : > { %v949_v10 = vadd.f32 %v947_v11, %v943_v25  ;;  %v962_v12 = vadd.f32 %v2874_v21, %v960_v53  ;;  %v985_v2 = vmul.f32 %v2758_v47, %v945_v43  ;;  %v1024_v62 = vmul.f32 %v2838_v46, %v2812_v59  ;;  %v1068_v53 = vld [vmem:[#allocation2 + $0x13a] sm:$0xff] }
  0xe9   : > { %v981_v35 = vadd.f32 %v979_v9, %v975_v54  ;;  %v998_v63 = vadd.f32 %v996_v26, %v992_v28  ;;  %v1008_v50 = vmul.f32 %v2773_v6, %v1006_v38  ;;  %v1028_v52 = vmul.f32 %v2845_v22, %v2825_v49 }
  0xea   : > { %v955_v14 = vadd.f32 %v953_v60, %v949_v10  ;;  %964 = vst [vmem:[%s2370_s7 + $0xa0] sm:$0xff] %v962_v12  ;;  %v1014_v15 = vmul.f32 %v2792_v39, %v2895_v40  ;;  %v991_v42 = vmul.f32 %v2780_v18, %v951_v41  ;;  %v997_v0 = vmul.f32 %v2799_v4, %v2867_v17 }
  0xeb   : > { %v987_v24 = vadd.f32 %v985_v2, %v981_v35  ;;  %v1004_v59 = vadd.f32 %v1002_v56, %v998_v63  ;;  %v1030_v61 = vadd.f32 %v1028_v52, %v1024_v62  ;;  %v1034_v49 = vmul.f32 %v2857_v23, %v2831_v45  ;;  %v2935_v35 = vld [vmem:[#allocation2 + $0x140] sm:$0xff] }
  0xec   : > { %v961_v19 = vadd.f32 %v959_v57, %v955_v14  ;;  %v1003_v13 = vmul.f32 %v2751_v37, %v1001_v55  ;;  %v1040_v20 = vmul.f32 %v2758_v47, %v2877_v34  ;;  %v1025_v11 = vmul.f32 %v2838_v46, %v945_v43  ;;  %v1062_v43 = vld [vmem:[#allocation2 + $0x139] sm:$0xff]  ;;  %v2941_v63 = vld [vmem:[#allocation2 + $0x141] sm:$0xff] }
  0xed   : > { %v993_v51 = vadd.f32 %v991_v42, %v987_v24  ;;  %v1010_v16 = vadd.f32 %v1008_v50, %v1004_v59  ;;  %v1036_v5 = vadd.f32 %v1034_v49, %v1030_v61  ;;  %v1029_v3 = vmul.f32 %v2845_v22, %v951_v41 }
  0xee   : > { %v963_v58 = vadd.f32 %v2874_v21, %v961_v19  ;;  %v1009_v25 = vmul.f32 %v2773_v6, %v1007_v29  ;;  %v1015_v45 = vmul.f32 %v2792_v39, %v2910_v36  ;;  %v1046_v60 = vmul.f32 %v2780_v18, %v1006_v38  ;;  %v2950_v19 = vld [vmem:[#allocation2 + $0x142] sm:$0xff] }
  0xef   : > { %v999_v44 = vadd.f32 %v997_v0, %v993_v51  ;;  %v1016_v48 = vadd.f32 %v1014_v15, %v1010_v16  ;;  %v1042_v7 = vadd.f32 %v1040_v20, %v1036_v5  ;;  %v1031_v57 = vadd.f32 %v1029_v3, %v1025_v11  ;;  %v1112_v16 = vld [vmem:[#allocation2 + $0x150] sm:$0xff] }
  0xf0   : > { %965 = vst [vmem:[%s2370_s7 + $0xa8] sm:$0xff] %v963_v58  ;;  %v1035_v54 = vmul.f32 %v2857_v23, %v2867_v17  ;;  %v1052_v41 = vmul.f32 %v2799_v4, %v2895_v40  ;;  %v1058_v10 = vmul.f32 %v2751_v37, %v2919_v30  ;;  %v1041_v28 = vmul.f32 %v2758_v47, %v1001_v55 }
  0xf1   : > { %v1005_v9 = vadd.f32 %v1003_v13, %v999_v44  ;;  %v1018_v26 = vadd.f32 %v2874_v21, %v1016_v48  ;;  %v1048_v56 = vadd.f32 %v1046_v60, %v1042_v7  ;;  %v1080_v2 = vmul.f32 %v2838_v46, %v2877_v34 }
  0xf2   : > { %v1037_v12 = vadd.f32 %v1035_v54, %v1031_v57  ;;  %v1064_v17 = vmul.f32 %v2773_v6, %v1062_v43  ;;  %v1070_v14 = vmul.f32 %v2792_v39, %v1068_v53  ;;  %v1084_v50 = vmul.f32 %v2845_v22, %v1006_v38 }
  0xf3   : > { %v1011_v62 = vadd.f32 %v1009_v25, %v1005_v9  ;;  %1020 = vst [vmem:[%s2370_s7 + $0xb0] sm:$0xff] %v1018_v26  ;;  %v1054_v52 = vadd.f32 %v1052_v41, %v1048_v56  ;;  %v1047_v24 = vmul.f32 %v2780_v18, %v1007_v29  ;;  %v1053_v42 = vmul.f32 %v2799_v4, %v2910_v36  ;;  %v1118_v41 = vld [vmem:[#allocation2 + $0x151] sm:$0xff] }
  0xf4   : > { %v1043_v15 = vadd.f32 %v1041_v28, %v1037_v12  ;;  %v1059_v34 = vmul.f32 %v2751_v37, %v2935_v35  ;;  %v1086_v59 = vadd.f32 %v1084_v50, %v1080_v2  ;;  %v1090_v61 = vmul.f32 %v2857_v23, %v2895_v40 }
  0xf5   : > { %v1017_v0 = vadd.f32 %v1015_v45, %v1011_v62  ;;  %v1060_v38 = vadd.f32 %v1058_v10, %v1054_v52  ;;  %v1065_v51 = vmul.f32 %v2773_v6, %v2941_v63  ;;  %v1081_v13 = vmul.f32 %v2838_v46, %v1001_v55  ;;  %v1124_v10 = vld [vmem:[#allocation2 + $0x152] sm:$0xff] }
  0xf6   : > { %v1049_v49 = vadd.f32 %v1047_v24, %v1043_v15  ;;  %v1092_v11 = vadd.f32 %v1090_v61, %v1086_v59  ;;  %v1096_v58 = vmul.f32 %v2758_v47, %v2919_v30  ;;  %v1085_v5 = vmul.f32 %v2845_v22, %v1007_v29  ;;  %v1113_v62 = vld [vmem:[#allocation2 + $0x158] sm:$0xff] }
  0xf7   : > { %v1019_v20 = vadd.f32 %v2874_v21, %v1017_v0  ;;  %v1066_v3 = vadd.f32 %v1064_v17, %v1060_v38  ;;  %v1071_v40 = vmul.f32 %v2792_v39, %v2950_v19  ;;  %v1102_v25 = vmul.f32 %v2780_v18, %v1062_v43  ;;  %v1119_v52 = vld [vmem:[#allocation2 + $0x159] sm:$0xff] }
  0xf8   : > { %v1055_v44 = vadd.f32 %v1053_v42, %v1049_v49  ;;  %v1098_v45 = vadd.f32 %v1096_v58, %v1092_v11  ;;  %v1108_v55 = vmul.f32 %v2799_v4, %v1068_v53  ;;  %v1087_v60 = vadd.f32 %v1085_v5, %v1081_v13 }
  0xf9   : > { %1021 = vst [vmem:[%s2370_s7 + $0xb8] sm:$0xff] %v1019_v20  ;;  %v1091_v48 = vmul.f32 %v2857_v23, %v2910_v36  ;;  %v1072_v7 = vadd.f32 %v1070_v14, %v1066_v3  ;;  %v1114_v54 = vmul.f32 %v2751_v37, %v1112_v16  ;;  %v1097_v29 = vmul.f32 %v2758_v47, %v2935_v35 }
  0xfa   : > { %v1061_v57 = vadd.f32 %v1059_v34, %v1055_v44  ;;  %v1104_v9 = vadd.f32 %v1102_v25, %v1098_v45  ;;  %v1136_v26 = vmul.f32 %v2838_v46, %v2919_v30  ;;  %v1140_v56 = vmul.f32 %v2845_v22, %v1062_v43  ;;  %v1319_v44 = vld [vmem:[#allocation3] sm:$0xff]  ;;  %v1174_v45 = vld [vmem:[#allocation2 + $0x169] sm:$0xff] }
  0xfb   : > { %v1093_v28 = vadd.f32 %v1091_v48, %v1087_v60  ;;  %v1074_v12 = vadd.f32 %v2874_v21, %v1072_v7  ;;  %v1103_v2 = vmul.f32 %v2780_v18, %v2941_v63  ;;  %v1146_v17 = vmul.f32 %v2857_v23, %v1068_v53 }
  0xfc   : > { %v1067_v36 = vadd.f32 %v1065_v51, %v1061_v57  ;;  %v1110_v14 = vadd.f32 %v1108_v55, %v1104_v9  ;;  %v1142_v15 = vadd.f32 %v1140_v56, %v1136_v26  ;;  %v1152_v24 = vmul.f32 %v2758_v47, %v1112_v16  ;;  %v1168_v51 = vld [vmem:[#allocation2 + $0x168] sm:$0xff]  ;;  %v1125_v16 = vld [vmem:[#allocation2 + $0x15a] sm:$0xff] }
  0xfd   : > { %v1099_v50 = vadd.f32 %v1097_v29, %v1093_v28  ;;  %1076 = vst [vmem:[%s2370_s7 + $0xc0] sm:$0xff] %v1074_v12  ;;  %v1120_v30 = vmul.f32 %v2773_v6, %v1118_v41  ;;  %v1126_v43 = vmul.f32 %v2792_v39, %v1124_v10  ;;  %v1109_v0 = vmul.f32 %v2799_v4, %v2950_v19  ;;  %v1180_v9 = vld [vmem:[#allocation2 + $0x16a] sm:$0xff] }
  0xfe   : > { %v1073_v42 = vadd.f32 %v1071_v40, %v1067_v36  ;;  %v1116_v34 = vadd.f32 %v1114_v54, %v1110_v14  ;;  %v1115_v53 = vmul.f32 %v2751_v37, %v1113_v62  ;;  %v1148_v61 = vadd.f32 %v1146_v17, %v1142_v15  ;;  %v1325_v40 = vld [vmem:[#allocation3 + $0x1] sm:$0xff]  ;;  %v1169_v36 = vld [vmem:[#allocation2 + $0x170] sm:$0xff] }
  0xff   : > { %v1105_v59 = vadd.f32 %v1103_v2, %v1099_v50  ;;  %v1121_v49 = vmul.f32 %v2773_v6, %v1119_v52  ;;  %v1137_v13 = vmul.f32 %v2838_v46, %v2935_v35  ;;  %v1141_v20 = vmul.f32 %v2845_v22, %v2941_v63  ;;  %v1332_v54 = vld [vmem:[#allocation3 + $0x2] sm:$0xff]  ;;  %v1339_v2 = vld [vmem:[#allocation3 + $0x10] sm:$0xff] }
 0x100   : > { %v1075_v38 = vadd.f32 %v2874_v21, %v1073_v42  ;;  %v1122_v11 = vadd.f32 %v1120_v30, %v1116_v34  ;;  %v1154_v5 = vadd.f32 %v1152_v24, %v1148_v61  ;;  %v1158_v3 = vmul.f32 %v2780_v18, %v1118_v41  ;;  %v1342_v15 = vld [vmem:[#allocation3 + $0x11] sm:$0xff] }
 0x101   : > { %v1111_v58 = vadd.f32 %v1109_v0, %v1105_v59  ;;  %v1164_v25 = vmul.f32 %v2799_v4, %v1124_v10  ;;  %v1143_v55 = vadd.f32 %v1141_v20, %v1137_v13  ;;  %v1147_v60 = vmul.f32 %v2857_v23, %v2950_v19  ;;  %v1175_v0 = vld [vmem:[#allocation2 + $0x171] sm:$0xff]  ;;  %v1348_v13 = vld [vmem:[#allocation3 + $0x20] sm:$0xff] }
 0x102   : > { %1077 = vst [vmem:[%s2370_s7 + $0xc8] sm:$0xff] %v1075_v38  ;;  %v1153_v35 = vmul.f32 %v2758_v47, %v1113_v62  ;;  %v1128_v48 = vadd.f32 %v1126_v43, %v1122_v11  ;;  %v1160_v7 = vadd.f32 %v1158_v3, %v1154_v5  ;;  %v1170_v57 = vmul.f32 %v2751_v37, %v1168_v51  ;;  %v1345_v38 = vld [vmem:[#allocation3 + $0x12] sm:$0xff] }
 0x103   : > { %v1117_v63 = vadd.f32 %v1115_v53, %v1111_v58  ;;  %v1127_v29 = vmul.f32 %v2792_v39, %v1125_v16  ;;  %v1149_v41 = vadd.f32 %v1147_v60, %v1143_v55  ;;  %v1324_v10 = vmul.f32 %v2838_v46, %v1319_v44  ;;  %v1181_v53 = vld [vmem:[#allocation2 + $0x172] sm:$0xff] }
 0x104   : > { %v1330_v28 = vmul.f32 %v2845_v22, %v1325_v40  ;;  %v1130_v26 = vadd.f32 %v2874_v21, %v1128_v48  ;;  %v1166_v56 = vadd.f32 %v1164_v25, %v1160_v7  ;;  %v1176_v12 = vmul.f32 %v2773_v6, %v1174_v45  ;;  %v1351_v25 = vld [vmem:[#allocation3 + $0x21] sm:$0xff] }
 0x105   : > { %v1123_v19 = vadd.f32 %v1121_v49, %v1117_v63  ;;  %v1155_v62 = vadd.f32 %v1153_v35, %v1149_v41  ;;  %v1159_v17 = vmul.f32 %v2780_v18, %v1119_v52  ;;  %v1337_v50 = vmul.f32 %v2857_v23, %v1332_v54  ;;  %v1354_v7 = vld [vmem:[#allocation3 + $0x22] sm:$0xff] }
 0x106   : > { %v1331_v14 = vadd.f32 %v1330_v28, %v1324_v10  ;;  %1132 = vst [vmem:[%s2370_s7 + $0xd0] sm:$0xff] %v1130_v26  ;;  %v1172_v42 = vadd.f32 %v1170_v57, %v1166_v56  ;;  %v1182_v30 = vmul.f32 %v2792_v39, %v1180_v9  ;;  %v1165_v43 = vmul.f32 %v2799_v4, %v1125_v16  ;;  %v1376_v26 = vld [vmem:[#allocation3 + $0x30] sm:$0xff] }
 0x107   : > { %v1129_v24 = vadd.f32 %v1127_v29, %v1123_v19  ;;  %v1161_v34 = vadd.f32 %v1159_v17, %v1155_v62  ;;  %v1171_v59 = vmul.f32 %v2751_v37, %v1169_v36  ;;  %v1340_v52 = vmul.f32 %v2758_v47, %v1339_v2  ;;  %v1379_v62 = vld [vmem:[#allocation3 + $0x31] sm:$0xff] }
 0x108   : > { %v1338_v61 = vadd.f32 %v1337_v50, %v1331_v14  ;;  %v1178_v51 = vadd.f32 %v1176_v12, %v1172_v42  ;;  %v1360_v20 = vmul.f32 %v2838_v46, %v1339_v2  ;;  %v1362_v11 = vmul.f32 %v2845_v22, %v1342_v15  ;;  %v1382_v50 = vld [vmem:[#allocation3 + $0x32] sm:$0xff] }
 0x109   : > { %v1131_v49 = vadd.f32 %v2874_v21, %v1129_v24  ;;  %v1167_v58 = vadd.f32 %v1165_v43, %v1161_v34  ;;  %v1177_v16 = vmul.f32 %v2773_v6, %v1175_v0  ;;  %v1343_v3 = vmul.f32 %v2780_v18, %v1342_v15 }
 0x10a   : > { %v1341_v5 = vadd.f32 %v1340_v52, %v1338_v61  ;;  %v1184_v44 = vadd.f32 %v1182_v30, %v1178_v51  ;;  %v1183_v40 = vmul.f32 %v2792_v39, %v1181_v53  ;;  %v1363_v45 = vadd.f32 %v1362_v11, %v1360_v20  ;;  %v1404_v61 = vld [vmem:[#allocation3 + $0x40] sm:$0xff] }
 0x10b   : > { %1133 = vst [vmem:[%s2370_s7 + $0xd8] sm:$0xff] %v1131_v49  ;;  %v1365_v55 = vmul.f32 %v2857_v23, %v1345_v38  ;;  %v1173_v60 = vadd.f32 %v1171_v59, %v1167_v58  ;;  %v1346_v48 = vmul.f32 %v2799_v4, %v1345_v38  ;;  %v1349_v63 = vmul.f32 %v2751_v37, %v1348_v13  ;;  %v1407_v58 = vld [vmem:[#allocation3 + $0x41] sm:$0xff] }
 0x10c   : > { %v1344_v35 = vadd.f32 %v1343_v3, %v1341_v5  ;;  %v1186_v57 = vadd.f32 %v2874_v21, %v1184_v44  ;;  %v1368_v29 = vmul.f32 %v2758_v47, %v1348_v13  ;;  %v1388_v9 = vmul.f32 %v2838_v46, %v1348_v13 }
 0x10d   : > { %v1366_v54 = vadd.f32 %v1365_v55, %v1363_v45  ;;  %v1179_v41 = vadd.f32 %v1177_v16, %v1173_v60  ;;  %v1352_v28 = vmul.f32 %v2773_v6, %v1351_v25  ;;  %v1390_v19 = vmul.f32 %v2845_v22, %v1351_v25  ;;  %v1410_v16 = vld [vmem:[#allocation3 + $0x42] sm:$0xff] }
 0x10e   : > { %v1347_v10 = vadd.f32 %v1346_v48, %v1344_v35  ;;  %1188 = vst [vmem:[%s2370_s7 + $0xe0] sm:$0xff] %v1186_v57  ;;  %v1355_v56 = vmul.f32 %v2792_v39, %v1354_v7  ;;  %v1371_v36 = vmul.f32 %v2780_v18, %v1351_v25  ;;  %v1374_v2 = vmul.f32 %v2799_v4, %v1354_v7  ;;  %v1432_v48 = vld [vmem:[#allocation3 + $0x50] sm:$0xff] }
 0x10f   : > { %v1369_v12 = vadd.f32 %v1368_v29, %v1366_v54  ;;  %v1185_v17 = vadd.f32 %v1183_v40, %v1179_v41  ;;  %v1391_v15 = vadd.f32 %v1390_v19, %v1388_v9  ;;  %v1393_v24 = vmul.f32 %v2857_v23, %v1354_v7  ;;  %v1435_v29 = vld [vmem:[#allocation3 + $0x51] sm:$0xff] }
 0x110   : > { %v1350_v14 = vadd.f32 %v1349_v63, %v1347_v10  ;;  %v1377_v30 = vmul.f32 %v2751_v37, %v1376_v26  ;;  %v1396_v43 = vmul.f32 %v2758_v47, %v1376_v26  ;;  %v1416_v0 = vmul.f32 %v2838_v46, %v1376_v26 }
 0x111   : > { %v1372_v42 = vadd.f32 %v1371_v36, %v1369_v12  ;;  %v1187_v34 = vadd.f32 %v2874_v21, %v1185_v17  ;;  %v1394_v53 = vadd.f32 %v1393_v24, %v1391_v15  ;;  %v1418_v52 = vmul.f32 %v2845_v22, %v1379_v62  ;;  %v1438_v12 = vld [vmem:[#allocation3 + $0x52] sm:$0xff] }
 0x112   : > { %v1353_v59 = vadd.f32 %v1352_v28, %v1350_v14  ;;  %v1380_v49 = vmul.f32 %v2773_v6, %v1379_v62  ;;  %v1383_v51 = vmul.f32 %v2792_v39, %v1382_v50  ;;  %v1399_v13 = vmul.f32 %v2780_v18, %v1379_v62 }
 0x113   : > { %v1375_v38 = vadd.f32 %v1374_v2, %v1372_v42  ;;  %1189 = vst [vmem:[%s2370_s7 + $0xe8] sm:$0xff] %v1187_v34  ;;  %v1397_v11 = vadd.f32 %v1396_v43, %v1394_v53  ;;  %v1419_v5 = vadd.f32 %v1418_v52, %v1416_v0  ;;  %v1421_v3 = vmul.f32 %v2857_v23, %v1382_v50 }
 0x114   : > { %v1356_v20 = vadd.f32 %v1355_v56, %v1353_v59  ;;  %v1402_v40 = vmul.f32 %v2799_v4, %v1382_v50  ;;  %v1405_v25 = vmul.f32 %v2751_v37, %v1404_v61  ;;  %v1424_v45 = vmul.f32 %v2758_v47, %v1404_v61  ;;  %v1460_v50 = vld [vmem:[#allocation3 + $0x60] sm:$0xff] }
 0x115   : > { %v1378_v44 = vadd.f32 %v1377_v30, %v1375_v38  ;;  %v1400_v60 = vadd.f32 %v1399_v13, %v1397_v11  ;;  %v1422_v35 = vadd.f32 %v1421_v3, %v1419_v5  ;;  %v1444_v63 = vmul.f32 %v2838_v46, %v1404_v61  ;;  %v1463_v61 = vld [vmem:[#allocation3 + $0x61] sm:$0xff] }
 0x116   : > { %v1357_v55 = vadd.f32 %v2874_v21, %v1356_v20  ;;  %v1408_v57 = vmul.f32 %v2773_v6, %v1407_v58  ;;  %v1411_v54 = vmul.f32 %v2792_v39, %v1410_v16  ;;  %v1446_v9 = vmul.f32 %v2845_v22, %v1407_v58  ;;  %v1466_v38 = vld [vmem:[#allocation3 + $0x62] sm:$0xff] }
 0x117   : > { %v1381_v7 = vadd.f32 %v1380_v49, %v1378_v44  ;;  %v1403_v41 = vadd.f32 %v1402_v40, %v1400_v60  ;;  %v1425_v10 = vadd.f32 %v1424_v45, %v1422_v35  ;;  %v1427_v28 = vmul.f32 %v2780_v18, %v1407_v58  ;;  %v1605_v58 = vld [vmem:[#allocation4 + $0x8] sm:$0xf]  ;;  %v1488_v44 = vld [vmem:[#allocation3 + $0x70] sm:$0xff] }
 0x118   : > { %1358 = vst [vmem:[%s2370_s7 + $0x108] sm:$0xff] %v1357_v55  ;;  %v1430_v26 = vmul.f32 %v2799_v4, %v1410_v16  ;;  %v1433_v56 = vmul.f32 %v2751_v37, %v1432_v48  ;;  %v1447_v36 = vadd.f32 %v1446_v9, %v1444_v63  ;;  %v1449_v2 = vmul.f32 %v2857_v23, %v1410_v16  ;;  %v1633_v35 = vld [vmem:[#allocation4 + $0x10] sm:$0xf] }
 0x119   : > { %v1384_v19 = vadd.f32 %v1383_v51, %v1381_v7  ;;  %v1406_v62 = vadd.f32 %v1405_v25, %v1403_v41  ;;  %v1428_v17 = vadd.f32 %v1427_v28, %v1425_v10  ;;  %v1436_v14 = vmul.f32 %v2773_v6, %v1435_v29  ;;  %v1608_v25 = vld [vmem:[#allocation4 + $0x9] sm:$0xf]  ;;  %v1491_v28 = vld [vmem:[#allocation3 + $0x71] sm:$0xff] }
 0x11a   : > { %v1472_v15 = vmul.f32 %v2838_v46, %v1432_v48  ;;  %v1450_v42 = vadd.f32 %v1449_v2, %v1447_v36  ;;  %v1452_v30 = vmul.f32 %v2758_v47, %v1432_v48  ;;  %v1474_v43 = vmul.f32 %v2845_v22, %v1435_v29  ;;  %v1614_v36 = vld [vmem:[#allocation4 + $0x10] sm:$0xf] }
 0x11b   : > { %v1385_v24 = vadd.f32 %v2874_v21, %v1384_v19  ;;  %v1409_v0 = vadd.f32 %v1408_v57, %v1406_v62  ;;  %v1431_v34 = vadd.f32 %v1430_v26, %v1428_v17  ;;  %v1439_v59 = vmul.f32 %v2792_v39, %v1438_v12 }
 0x11c   : > { %v1455_v53 = vmul.f32 %v2780_v18, %v1435_v29  ;;  %v1453_v52 = vadd.f32 %v1452_v30, %v1450_v42  ;;  %v1475_v49 = vadd.f32 %v1474_v43, %v1472_v15  ;;  %v1477_v46 = vmul.f32 %v2857_v23, %v1438_v12  ;;  %v1642_v15 = vld [vmem:[#allocation4 + $0x18] sm:$0xf] }
 0x11d   : > { %1386 = vst [vmem:[%s2370_s7 + $0x110] sm:$0xff] %v1385_v24  ;;  %v1480_v51 = vmul.f32 %v2758_v47, %v1460_v50  ;;  %v1412_v13 = vadd.f32 %v1411_v54, %v1409_v0  ;;  %v1434_v20 = vadd.f32 %v1433_v56, %v1431_v34  ;;  %v1458_v11 = vmul.f32 %v2799_v4, %v1438_v12 }
 0x11e   : > { %v1461_v22 = vmul.f32 %v2751_v37, %v1460_v50  ;;  %v1456_v16 = vadd.f32 %v1455_v53, %v1453_v52  ;;  %v1464_v5 = vmul.f32 %v2773_v6, %v1463_v61  ;;  %v1478_v3 = vadd.f32 %v1477_v46, %v1475_v49  ;;  %v1620_v53 = vld [vmem:[#allocation4 + $0x12] sm:$0xf] }
 0x11f   : > { %v1597_v40 = vadd.f32 %v2399_v8, %v2390_v31  ;;  %v1413_v23 = vadd.f32 %v2874_v21, %v1412_v13  ;;  %v1437_v45 = vadd.f32 %v1436_v14, %v1434_v20  ;;  %v1483_v55 = vmul.f32 %v2780_v18, %v1463_v61  ;;  %v1611_v8 = vld [vmem:[#allocation4 + $0xa] sm:$0xf]  ;;  %v1494_v14 = vld [vmem:[#allocation3 + $0x72] sm:$0xff] }
 0x120   : > { %v1486_v60 = vmul.f32 %v2799_v4, %v1466_v38  ;;  %v1459_v48 = vadd.f32 %v1458_v11, %v1456_v16  ;;  %v1481_v63 = vadd.f32 %v1480_v51, %v1478_v3  ;;  %v1606_v57 = vmul.f32 %v2758_v47, %v1605_v58  ;;  %v1645_v13 = vld [vmem:[#allocation4 + $0x19] sm:$0xf] }
 0x121   : > { %v1604_v7 = vadd.f32 %v2410_v27, %v1597_v40  ;;  %1414 = vst [vmem:[%s2370_s7 + $0x118] sm:$0xff] %v1413_v23  ;;  %v1440_v54 = vadd.f32 %v1439_v59, %v1437_v45  ;;  %v1489_v29 = vmul.f32 %v2751_v37, %v1488_v44  ;;  %v1609_v31 = vmul.f32 %v2780_v18, %v1608_v25  ;;  %v1636_v27 = vld [vmem:[#allocation4 + $0x11] sm:$0xf] }
 0x122   : > { %v1629_v9 = vadd.f32 %v2422_v1, %v2413_v33  ;;  %v1462_v41 = vadd.f32 %v1461_v22, %v1459_v48  ;;  %v1484_v10 = vadd.f32 %v1483_v55, %v1481_v63  ;;  %v1634_v19 = vmul.f32 %v2758_v47, %v1633_v35  ;;  %v1639_v1 = vld [vmem:[#allocation4 + $0x12] sm:$0xf] }
 0x123   : > { %v1607_v26 = vadd.f32 %v1606_v57, %v1604_v7  ;;  %v1441_v56 = vadd.f32 %v2874_v21, %v1440_v54  ;;  %v1467_v12 = vmul.f32 %v2792_v39, %v1466_v38  ;;  %v1612_v33 = vmul.f32 %v2799_v4, %v1611_v8  ;;  %v1617_v47 = vld [vmem:[#allocation4 + $0x11] sm:$0xf] }
 0x124   : > { %v1632_v2 = vadd.f32 %v2534_v32, %v1629_v9  ;;  %v1465_v62 = vadd.f32 %v1464_v5, %v1462_v41  ;;  %v1487_v17 = vadd.f32 %v1486_v60, %v1484_v10  ;;  %v1492_v24 = vmul.f32 %v2773_v6, %v1491_v28 }
 0x125   : > { %v1610_v50 = vadd.f32 %v1609_v31, %v1607_v26  ;;  %1442 = vst [vmem:[%s2370_s7 + $0x120] sm:$0xff] %v1441_v56  ;;  %v1637_v30 = vmul.f32 %v2780_v18, %v1636_v27  ;;  %v1615_v32 = vmul.f32 %v2751_v37, %v1614_v36  ;;  %v1495_v59 = vmul.f32 %v2792_v39, %v1494_v14 }
 0x126   : > { %v1635_v42 = vadd.f32 %v1634_v19, %v1632_v2  ;;  %v1468_v43 = vadd.f32 %v1467_v12, %v1465_v62  ;;  %v1490_v0 = vadd.f32 %v1489_v29, %v1487_v17  ;;  %v1640_v52 = vmul.f32 %v2799_v4, %v1639_v1  ;;  %v1648_v4 = vld [vmem:[#allocation4 + $0x1a] sm:$0xf] }
 0x127   : > { %v1613_v34 = vadd.f32 %v1612_v33, %v1610_v50  ;;  %v1643_v38 = vmul.f32 %v2751_v37, %v1642_v15  ;;  %v1618_v18 = vmul.f32 %v2773_v6, %v1617_v47  ;;  %v1621_v58 = vmul.f32 %v2792_v39, %v1620_v53 }
 0x128   : > { %v1638_v61 = vadd.f32 %v1637_v30, %v1635_v42  ;;  %v1469_v49 = vadd.f32 %v2874_v21, %v1468_v43  ;;  %v1493_v46 = vadd.f32 %v1492_v24, %v1490_v0  ;;  %v1646_v16 = vmul.f32 %v2773_v6, %v1645_v13 }
 0x129   : > { %v1616_v51 = vadd.f32 %v1615_v32, %v1613_v34  ;;  %v1649_v40 = vmul.f32 %v2792_v39, %v1648_v4 }
 0x12a   : > { %v1641_v20 = vadd.f32 %v1640_v52, %v1638_v61  ;;  %1470 = vst [vmem:[%s2370_s7 + $0x128] sm:$0xff] %v1469_v49  ;;  %v1496_v11 = vadd.f32 %v1495_v59, %v1493_v46 }
 0x12b   : > { %v1619_v22 = vadd.f32 %v1618_v18, %v1616_v51 }
 0x12c   : > { %v1644_v37 = vadd.f32 %v1643_v38, %v1641_v20  ;;  %v1497_v5 = vadd.f32 %v2874_v21, %v1496_v11 }
 0x12d   : > { %v1622_v3 = vadd.f32 %v1621_v58, %v1619_v22 }
 0x12e   : > { %v1647_v44 = vadd.f32 %v1646_v16, %v1644_v37  ;;  %1498 = vst [vmem:[%s2370_s7 + $0x130] sm:$0xff] %v1497_v5 }
 0x12f   : > { %v1623_v25 = vadd.f32 %v2874_v21, %v1622_v3 }
 0x130   : > { %v1650_v23 = vadd.f32 %v1649_v40, %v1647_v44 }
 0x131   : > { %1624 = vst [vmem:[%s2370_s7 + $0x144] sm:$0xf] %v1623_v25 }
 0x132   : > { %v1651_v6 = vadd.f32 %v2874_v21, %v1650_v23 }
 0x134   : > { %1652 = vst [vmem:[%s2370_s7 + $0x148] sm:$0xf] %v1651_v6 }
 0x135   : > { %1901 = shalt.err (!%p1898_p10)
}
 0x136   : > { %s1902_s7 = scalar_lea.hbm %s3105_s28, 5376  ;;  %s1906_s6 = scalar_lea.hbm %s3155_s3, 10752 }
 0x137   : > { %p1903_p0 = scmp.ne.s32.totalorder %s3105_s28, %s1902_s7  ;;  %p1907_p1 = scmp.lt.s32.totalorder %s3105_s28, %s3155_s3 }
 0x138   : > { %p1908_p3 = scmp.lt.s32.totalorder %s1906_s6, %s1902_s7 }
 0x139   : > { %p1904_p2 = pnand %p1903_p0, %p3185_p12 }
 0x13a   : > { %p1909_p6 = por %p1908_p3, %p1907_p1 }
 0x13b   : > { %p1905_p9 = pneg %p1904_p2 }
 0x13d   : > { %p1910_p11 = pnand %p1909_p6, %p1905_p9 }
 0x13f   : > { %1913 = shalt.err (!%p1910_p11)
}
 0x140   : > { %s1959_s17 = smov 128   ;;  %s1960_s19 = smov 8  }
 0x141   : > { %1801 = dma.vmem_to_hbm [thread:$0]  (%p3185_p12), %s3107_s25, 5376, %s3105_s28, %s1673_s16, %s1959_s17, %s1959_s17, %s1960_s19  }
 0x142 PF: > { %s1701_s20 = sand.u32 1, %s1940_s12   ;;  %p3186_p13 = scmp.ne.s32.totalorder %s3170_s24, 0 }
 0x143   : > { %p3187_p4 = scmp.ge.s32.totalorder %s1952_s15, 2  ;;  %s1702_s26 = scalar_lea.sflag [#allocation7], %s1701_s20 }
 0x145   : > { %p1808_p5 = pnand %p3187_p4, %p3186_p13 }
 0x147   : > { %p1809_p7 = pneg %p1808_p5 }
 0x149   : > { %1935 = dma.done.wait (%p1809_p7), %s1702_s26, 5376  }
 0x14a   : > { %1937 = vsyncadd (%p1809_p7), %s1702_s26, 4294961920  ;;  %p16_p8 = scmp.ge.s32.totalorder %s2006_s18, 4   ;;  %s3188_s12 = smov %s1944_s13 }
 0x14b   : > { %s3189_s13 = smov %s1948_s14  ;;  %s3190_s14 = smov %s2018_s21 }
 0x14c   : > { %s3191_s15 = smov %s2006_s18  ;;  %18 = sbr.rel (!%p16_p8) target bundleno = 5 (0x5), region = 102 }
 0x151   :  { %1707 = vsyncpa [#allocation6], 1 }
 0x152   :  { %1709 = vsyncpa [#allocation6 + $0x1], 1 }
 0x153   :  { %1710 = vsyncpa [#allocation7], 1 }
 0x154   :  { %1712 = vsyncpa [#allocation7 + $0x1], 1 }

</bundles_post_ra>
